<compile_context>
chip_gen: v7x
topology: tpu7x:2x2x1
jax: 0.10.0
libtpu: 0.0.40
codegen_flags: <defaults>
</compile_context>

<pallas_src>
import collections
import functools

import numpy as np

import jax
import jax.numpy as jnp
from jax.experimental import pallas as pl
from jax.experimental.pallas import tpu as pltpu

NEG_SLOPE = 0.01      # torch.nn.LeakyReLU default negative_slope
HIDDEN_PAD = 128      # head hidden width 100 padded to 128 (lane aligned)

# Static per-layer geometry (hashable -> usable as a jit static argument).
LayerMeta = collections.namedtuple(
    "LayerMeta",
    ["k", "stride", "cin", "cout", "Ho", "Ho_blk", "Wo", "Wg", "G", "Lg",
     "pad_lanes", "has_s"])


# ------------------------------ fused kernel ------------------------------- #
def _fused_forward_kernel(*refs, metas, p, training):
    # refs = [x, u0, u1] + per-layer ([S]?, WB, bias) + [w1, b1, w2, b2, out]
    x_ref, u0_ref, u1_ref = refs[0], refs[1], refs[2]
    o_ref = refs[-1]
    idx = 3

    a = x_ref[0]                                            # (H, Wp*Cin) bf16
    for m in metas:
        if m.has_s:
            s_ref = refs[idx]; idx += 1
        wb_ref, bias_ref = refs[idx], refs[idx + 1]; idx += 2

        # Zero-pad the lane (width*Cin) dim so every group window is in range.
        if m.pad_lanes:
            a = jnp.concatenate(
                [a, jnp.zeros((a.shape[0], m.pad_lanes), a.dtype)], axis=1)

        # H-direction shift + stride.
        if m.has_s:                                         # stride-2 layers
            r_all = jnp.dot(s_ref[...], a,
                            preferred_element_type=jnp.float32).astype(jnp.bfloat16)
            rows = [r_all[di * m.Ho_blk: di * m.Ho_blk + m.Ho, :]
                    for di in range(m.k)]
        else:                                               # stride-1: plain slices
            rows = [a[di: di + m.Ho, :] for di in range(m.k)]

        # W-direction + channel mixing: one matmul per group of Wg output cols,
        # contracting over all kh taps at once against the shared weight block.
        wb = wb_ref[...]
        outs = []
        for g in range(m.G):
            c0 = g * m.Wg * m.stride * m.cin
            parts = [r[:, c0: c0 + m.Lg] for r in rows]
            lhs = parts[0] if len(parts) == 1 else jnp.concatenate(parts, axis=1)
            outs.append(jnp.dot(lhs, wb, preferred_element_type=jnp.float32))
        acc = outs[0] if len(outs) == 1 else jnp.concatenate(outs, axis=1)
        acc = acc + bias_ref[...]
        a = jnp.where(acc >= 0.0, acc, NEG_SLOPE * acc).astype(jnp.bfloat16)

    # a is now (1, 256): the flattened CNN features (== x.view(-1, 256)) of
    # this grid step's sample.
    w1_ref, b1_ref, w2_ref, b2_ref = refs[idx], refs[idx + 1], refs[idx + 2], refs[idx + 3]
    scale = 1.0 / (1.0 - p) if p < 1.0 else 0.0
    feat = a
    if training and p > 0.0:                                # Dropout(p)
        feat = jnp.where(u0_ref[0] >= p,
                         feat.astype(jnp.float32) * scale, 0.0).astype(jnp.bfloat16)
    h = jnp.dot(feat, w1_ref[...], preferred_element_type=jnp.float32) + b1_ref[...]
    h = jnp.maximum(h, 0.0)                                 # ReLU
    if training and p > 0.0:                                # Dropout(p)
        h = jnp.where(u1_ref[0] >= p, h * scale, 0.0)
    out = jnp.dot(h.astype(jnp.bfloat16), w2_ref[...],
                  preferred_element_type=jnp.float32) + b2_ref[...]
    o_ref[0] = out.astype(o_ref.dtype)


def dropout_forward(folded, metas, x, key, *, p=0.25, training=True):
    """x: (B, img_stack, 96, 96) NCHW like the PyTorch module -> (B, n_actions)."""
    B, C, H, W = x.shape
    n_actions = folded["head"][2].shape[1]

    # One NCHW -> (B, H, Wp*C) bf16 relayout done by XLA in the wrapper (~150 KB).
    m0 = metas[0]
    wp0 = (m0.G * m0.Wg - 1) * m0.stride + m0.k             # physical input width
    xb = jnp.transpose(x, (0, 2, 3, 1))                     # (B, H, W, C)
    if wp0 > W:
        xb = jnp.pad(xb, ((0, 0), (0, 0), (0, wp0 - W), (0, 0)))
    xb = xb.reshape(B, H, wp0 * C).astype(jnp.bfloat16)

    k0, k1 = jax.random.split(key)
    u0 = jax.random.uniform(k0, (B, 1, 256), jnp.float32)
    u1 = jax.random.uniform(k1, (B, 1, HIDDEN_PAD), jnp.float32)

    def const_spec(arr):                                    # whole array, fetched once
        nd = arr.ndim
        return pl.BlockSpec(arr.shape, lambda b, _nd=nd: (0,) * _nd)

    operands = [xb, u0, u1]
    in_specs = [pl.BlockSpec((1, H, wp0 * C), lambda b: (b, 0, 0)),
                pl.BlockSpec((1, 1, 256), lambda b: (b, 0, 0)),
                pl.BlockSpec((1, 1, HIDDEN_PAD), lambda b: (b, 0, 0))]
    for layer in folded["conv"]:
        for name in ("S", "WB", "bias"):
            if name in layer:
                operands.append(layer[name])
                in_specs.append(const_spec(layer[name]))
    for arr in folded["head"]:
        operands.append(arr)
        in_specs.append(const_spec(arr))

    kernel = functools.partial(_fused_forward_kernel, metas=metas,
                               p=float(p), training=bool(training))
    out = pl.pallas_call(
        kernel,
        out_shape=jax.ShapeDtypeStruct((B, 1, n_actions), jnp.float32),
        grid=(B,),
        in_specs=in_specs,
        out_specs=pl.BlockSpec((1, 1, n_actions), lambda b: (b, 0, 0)),
        compiler_params=pltpu.CompilerParams(
            dimension_semantics=("parallel",),
            vmem_limit_bytes=32 * 1024 * 1024),
    )(*operands)
    return out[:, 0, :]


# -------------------------- parameter init / fold --------------------------- #
def init_params(key, img_stack, n_actions):
    cfg = [(img_stack, 8, 4, 2), (8, 16, 3, 2), (16, 32, 3, 2),
           (32, 64, 3, 2), (64, 128, 3, 1), (128, 256, 3, 1)]
    keys = jax.random.split(key, len(cfg) + 2)
    gain = float(np.sqrt(2.0))                              # calculate_gain('relu')
    conv = []
    for i, (cin, cout, k, s) in enumerate(cfg):
        fan_in, fan_out = cin * k * k, cout * k * k
        bound = gain * float(np.sqrt(6.0 / (fan_in + fan_out)))   # xavier_uniform_
        w = jax.random.uniform(keys[i], (cout, cin, k, k), jnp.float32, -bound, bound)
        b = jnp.full((cout,), 0.1, jnp.float32)                   # constant_(bias, 0.1)
        conv.append((w, b, s))

    def linear(k, fi, fo):                                  # PyTorch default Linear init
        bound = 1.0 / float(np.sqrt(fi))
        kw_, kb_ = jax.random.split(k)
        w = jax.random.uniform(kw_, (fi, fo), jnp.float32, -bound, bound)
        b = jax.random.uniform(kb_, (fo,), jnp.float32, -bound, bound)
        return w, b

    return {"conv": conv, "lin": [linear(keys[-2], 256, 100),
                                  linear(keys[-1], 100, n_actions)]}


def fold_params(params, height=96, width=96):
    """One-time pre-fold of all weights into compact, batch-free constants.

    Per conv layer l (input (H, W, Cin), output (Ho, Wo, Cout)):
      * S   (stride>1 only): (k*Ho_blk, H) 0/1 row select+stride matrix.
      * WB  : shared grouped weight block (k*Lg, Wg*Cout); group g covers
              output columns [g*Wg, (g+1)*Wg), block identical for every g.
      * bias: (1, G*Wg*Cout).
    Columns jo >= Wo of a layer's output are garbage but are never read by
    real outputs of later layers (kept only for 128-lane alignment)."""
    conv_arrays, metas = [], []
    H, Wreal = height, width
    Wp = width
    for li, (w, b, s) in enumerate(params["conv"]):
        w = np.asarray(w, np.float32)
        b = np.asarray(b, np.float32)
        cout, cin, kh, kw = w.shape
        assert kh == kw
        k = kh
        Ho = (H - k) // s + 1
        Wo = (Wreal - k) // s + 1
        Wg = max(1, min(Wo, 128 // cout))                   # Wg*Cout == 128 (or Cout)
        G = -(-Wo // Wg)
        Wneed = (G * Wg - 1) * s + k
        if li == 0:
            Wp = Wneed                                      # wrapper pre-pads the input
            pad_lanes = 0
        else:
            pad_lanes = max(0, Wneed - Wp) * cin
        Lg = ((Wg - 1) * s + k) * cin
        Ho_blk = -(-Ho // 8) * 8                            # aligned sublane blocks

        layer = {}
        if s > 1:
            S = np.zeros((k * Ho_blk, H), np.float32)
            for di in range(k):
                for io in range(Ho):
                    S[di * Ho_blk + io, io * s + di] = 1.0
            layer["S"] = jnp.asarray(S, jnp.bfloat16)
        WB = np.zeros((k * Lg, Wg * cout), np.float32)
        for di in range(k):
            for wg in range(Wg):
                for dj in range(k):
                    w_rel = wg * s + dj
                    r0 = di * Lg + w_rel * cin
                    WB[r0:r0 + cin, wg * cout:(wg + 1) * cout] = w[:, :, di, dj].T
        layer["WB"] = jnp.asarray(WB, jnp.bfloat16)
        layer["bias"] = jnp.asarray(np.tile(b, G * Wg)[None, :], jnp.float32)
        conv_arrays.append(layer)
        metas.append(LayerMeta(k, s, cin, cout, Ho, Ho_blk, Wo, Wg, G, Lg,
                               pad_lanes, s > 1))
        H, Wreal, Wp = Ho, Wo, G * Wg

    assert H == 1 and Wreal == 1 and metas[-1].G * metas[-1].Wg == 1, \
        "conv stack must reduce the input to 1x1 (x.view(-1, 256))"

    (w1, b1), (w2, b2) = params["lin"]
    hid = w1.shape[1]
    w1p = np.zeros((w1.shape[0], HIDDEN_PAD), np.float32); w1p[:, :hid] = np.asarray(w1)
    b1p = np.zeros((1, HIDDEN_PAD), np.float32);           b1p[0, :hid] = np.asarray(b1)
    w2p = np.zeros((HIDDEN_PAD, w2.shape[1]), np.float32); w2p[:hid, :] = np.asarray(w2)
    head = (jnp.asarray(w1p, jnp.bfloat16), jnp.asarray(b1p, jnp.float32),
            jnp.asarray(w2p, jnp.bfloat16), jnp.asarray(np.asarray(b2)[None, :], jnp.float32))
    return {"conv": conv_arrays, "head": head}, tuple(metas)


# ------------------------------ pure-JAX reference --------------------------- #
def reference_forward(params, x):
    a = x
    for (w, b, s) in params["conv"]:
        a = jax.lax.conv_general_dilated(a, w, (s, s), "VALID",
                                         dimension_numbers=("NCHW", "OIHW", "NCHW"))
        a = a + b[None, :, None, None]
        a = jnp.where(a >= 0, a, NEG_SLOPE * a)
    a = a.reshape(-1, 256)
    (w1, b1), (w2, b2) = params["lin"]
    h = jnp.maximum(a @ w1 + b1, 0.0)
    return h @ w2 + b2


# ----------------------------------- main ------------------------------------ #
if __name__ == "__main__":
    img_stack, n_actions, batch = 4, 5, 2
    key = jax.random.PRNGKey(0)
    pkey, xkey, dkey = jax.random.split(key, 3)
    params = init_params(pkey, img_stack, n_actions)

    # 96x96 input is what the module requires: the conv stack reduces it to
    # 1x1x256 so that x.view(-1, 256) is valid.
    x = jax.random.normal(xkey, (batch, img_stack, 96, 96), jnp.float32)

    folded, metas = fold_params(params, 96, 96)
    fwd = jax.jit(dropout_forward, static_argnames=("metas", "p", "training"))

    # Eval mode (dropout off): check against a pure-JAX reference (bf16 tolerance).
    out_eval = jax.block_until_ready(fwd(folded, metas, x, dkey, p=0.25, training=False))
    ref_eval = reference_forward(params, x)
    err = float(jnp.max(jnp.abs(out_eval - ref_eval)) / (jnp.max(jnp.abs(ref_eval)) + 1e-6))
    assert out_eval.shape == (batch, n_actions)
    assert bool(jnp.all(jnp.isfinite(out_eval)))
    assert err < 0.1, f"mismatch vs reference: rel-to-max err = {err}"

    # Training mode (dropout on; masks derived from the provided key).
    out_train = jax.block_until_ready(fwd(folded, metas, x, dkey, p=0.25, training=True))
    assert out_train.shape == (batch, n_actions)
    assert bool(jnp.all(jnp.isfinite(out_train)))

    print("KERNEL_OK")
</pallas_src>

<mosaic_0001>
module attributes {stable_mosaic.version = 11 : i64} {
  func.func @_fused_forward_kernel(%arg0: i32, %arg1: memref<1x96x392xbf16, #tpu.memory_space<vmem>>, %arg2: memref<1x1x256xf32, #tpu.memory_space<vmem>>, %arg3: memref<1x1x128xf32, #tpu.memory_space<vmem>>, %arg4: memref<192x96xbf16, #tpu.memory_space<vmem>>, %arg5: memref<544x128xbf16, #tpu.memory_space<vmem>>, %arg6: memref<1x384xf32, #tpu.memory_space<vmem>>, %arg7: memref<72x47xbf16, #tpu.memory_space<vmem>>, %arg8: memref<408x128xbf16, #tpu.memory_space<vmem>>, %arg9: memref<1x384xf32, #tpu.memory_space<vmem>>, %arg10: memref<48x23xbf16, #tpu.memory_space<vmem>>, %arg11: memref<432x128xbf16, #tpu.memory_space<vmem>>, %arg12: memref<1x384xf32, #tpu.memory_space<vmem>>, %arg13: memref<24x11xbf16, #tpu.memory_space<vmem>>, %arg14: memref<480x128xbf16, #tpu.memory_space<vmem>>, %arg15: memref<1x384xf32, #tpu.memory_space<vmem>>, %arg16: memref<576x128xbf16, #tpu.memory_space<vmem>>, %arg17: memref<1x384xf32, #tpu.memory_space<vmem>>, %arg18: memref<1152x256xbf16, #tpu.memory_space<vmem>>, %arg19: memref<1x256xf32, #tpu.memory_space<vmem>>, %arg20: memref<256x128xbf16, #tpu.memory_space<vmem>>, %arg21: memref<1x128xf32, #tpu.memory_space<vmem>>, %arg22: memref<128x5xbf16, #tpu.memory_space<vmem>>, %arg23: memref<1x5xf32, #tpu.memory_space<vmem>>, %arg24: memref<1x1x5xf32, #tpu.memory_space<vmem>>) attributes {dimension_semantics = [#tpu.dimension_semantics<parallel>], iteration_bounds = array<i64: 2>, scalar_prefetch = 0 : i64, scratch_operands = 0 : i64, tpu.core_type = #tpu.core_type<tc>, window_params = [{transform_indices = @transform_0, window_bounds = array<i64: 1, 96, 392>}, {transform_indices = @transform_1, window_bounds = array<i64: 1, 1, 256>}, {transform_indices = @transform_2, window_bounds = array<i64: 1, 1, 128>}, {pipeline_mode = #tpu.pipeline_mode<synchronous>, transform_indices = @transform_3, window_bounds = array<i64: 192, 96>}, {pipeline_mode = #tpu.pipeline_mode<synchronous>, transform_indices = @transform_4, window_bounds = array<i64: 544, 128>}, {pipeline_mode = #tpu.pipeline_mode<synchronous>, transform_indices = @transform_5, window_bounds = array<i64: 1, 384>}, {pipeline_mode = #tpu.pipeline_mode<synchronous>, transform_indices = @transform_6, window_bounds = array<i64: 72, 47>}, {pipeline_mode = #tpu.pipeline_mode<synchronous>, transform_indices = @transform_7, window_bounds = array<i64: 408, 128>}, {pipeline_mode = #tpu.pipeline_mode<synchronous>, transform_indices = @transform_8, window_bounds = array<i64: 1, 384>}, {pipeline_mode = #tpu.pipeline_mode<synchronous>, transform_indices = @transform_9, window_bounds = array<i64: 48, 23>}, {pipeline_mode = #tpu.pipeline_mode<synchronous>, transform_indices = @transform_10, window_bounds = array<i64: 432, 128>}, {pipeline_mode = #tpu.pipeline_mode<synchronous>, transform_indices = @transform_11, window_bounds = array<i64: 1, 384>}, {pipeline_mode = #tpu.pipeline_mode<synchronous>, transform_indices = @transform_12, window_bounds = array<i64: 24, 11>}, {pipeline_mode = #tpu.pipeline_mode<synchronous>, transform_indices = @transform_13, window_bounds = array<i64: 480, 128>}, {pipeline_mode = #tpu.pipeline_mode<synchronous>, transform_indices = @transform_14, window_bounds = array<i64: 1, 384>}, {pipeline_mode = #tpu.pipeline_mode<synchronous>, transform_indices = @transform_15, window_bounds = array<i64: 576, 128>}, {pipeline_mode = #tpu.pipeline_mode<synchronous>, transform_indices = @transform_16, window_bounds = array<i64: 1, 384>}, {pipeline_mode = #tpu.pipeline_mode<synchronous>, transform_indices = @transform_17, window_bounds = array<i64: 1152, 256>}, {pipeline_mode = #tpu.pipeline_mode<synchronous>, transform_indices = @transform_18, window_bounds = array<i64: 1, 256>}, {pipeline_mode = #tpu.pipeline_mode<synchronous>, transform_indices = @transform_19, window_bounds = array<i64: 256, 128>}, {pipeline_mode = #tpu.pipeline_mode<synchronous>, transform_indices = @transform_20, window_bounds = array<i64: 1, 128>}, {pipeline_mode = #tpu.pipeline_mode<synchronous>, transform_indices = @transform_21, window_bounds = array<i64: 128, 5>}, {pipeline_mode = #tpu.pipeline_mode<synchronous>, transform_indices = @transform_22, window_bounds = array<i64: 1, 5>}, {transform_indices = @transform_23, window_bounds = array<i64: 1, 1, 5>}]} {
    %c0 = arith.constant 0 : index
    %c0_0 = arith.constant 0 : index
    %c0_1 = arith.constant 0 : index
    %0 = vector.load %arg1[%c0, %c0_0, %c0_1] : memref<1x96x392xbf16, #tpu.memory_space<vmem>>, vector<1x96x392xbf16>
    %1 = vector.shape_cast %0 : vector<1x96x392xbf16> to vector<96x392xbf16>
    %c0_2 = arith.constant 0 : index
    %c0_3 = arith.constant 0 : index
    %2 = vector.load %arg4[%c0_2, %c0_3] : memref<192x96xbf16, #tpu.memory_space<vmem>>, vector<192x96xbf16>
    %cst = arith.constant dense<0.000000e+00> : vector<192x392xf32>
    %3 = tpu.matmul %2, %1, %cst {dimension_numbers = #tpu.dot_dimension_numbers<[1], [0], [0], [1], [0, 0, 1, 1], [], []>} : vector<192x96xbf16>, vector<96x392xbf16>, vector<192x392xf32> -> vector<192x392xf32>
    %4 = arith.truncf %3 : vector<192x392xf32> to vector<192x392xbf16>
    %5 = vector.extract_strided_slice %4 {offsets = [0, 0], sizes = [47, 392], strides = [1, 1]} : vector<192x392xbf16> to vector<47x392xbf16>
    %6 = vector.extract_strided_slice %4 {offsets = [48, 0], sizes = [47, 392], strides = [1, 1]} : vector<192x392xbf16> to vector<47x392xbf16>
    %7 = vector.extract_strided_slice %4 {offsets = [96, 0], sizes = [47, 392], strides = [1, 1]} : vector<192x392xbf16> to vector<47x392xbf16>
    %8 = vector.extract_strided_slice %4 {offsets = [144, 0], sizes = [47, 392], strides = [1, 1]} : vector<192x392xbf16> to vector<47x392xbf16>
    %c0_4 = arith.constant 0 : index
    %c0_5 = arith.constant 0 : index
    %9 = vector.load %arg5[%c0_4, %c0_5] : memref<544x128xbf16, #tpu.memory_space<vmem>>, vector<544x128xbf16>
    %10 = vector.extract_strided_slice %5 {offsets = [0, 0], sizes = [47, 136], strides = [1, 1]} : vector<47x392xbf16> to vector<47x136xbf16>
    %11 = vector.extract_strided_slice %6 {offsets = [0, 0], sizes = [47, 136], strides = [1, 1]} : vector<47x392xbf16> to vector<47x136xbf16>
    %12 = vector.extract_strided_slice %7 {offsets = [0, 0], sizes = [47, 136], strides = [1, 1]} : vector<47x392xbf16> to vector<47x136xbf16>
    %13 = vector.extract_strided_slice %8 {offsets = [0, 0], sizes = [47, 136], strides = [1, 1]} : vector<47x392xbf16> to vector<47x136xbf16>
    %14 = tpu.concatenate %10, %11, %12, %13 in 1 : vector<47x136xbf16>, vector<47x136xbf16>, vector<47x136xbf16>, vector<47x136xbf16> -> vector<47x544xbf16>
    %cst_6 = arith.constant dense<0.000000e+00> : vector<47x128xf32>
    %15 = tpu.matmul %14, %9, %cst_6 {dimension_numbers = #tpu.dot_dimension_numbers<[1], [0], [0], [1], [0, 0, 1, 1], [], []>} : vector<47x544xbf16>, vector<544x128xbf16>, vector<47x128xf32> -> vector<47x128xf32>
    %16 = vector.extract_strided_slice %5 {offsets = [0, 128], sizes = [47, 136], strides = [1, 1]} : vector<47x392xbf16> to vector<47x136xbf16>
    %17 = vector.extract_strided_slice %6 {offsets = [0, 128], sizes = [47, 136], strides = [1, 1]} : vector<47x392xbf16> to vector<47x136xbf16>
    %18 = vector.extract_strided_slice %7 {offsets = [0, 128], sizes = [47, 136], strides = [1, 1]} : vector<47x392xbf16> to vector<47x136xbf16>
    %19 = vector.extract_strided_slice %8 {offsets = [0, 128], sizes = [47, 136], strides = [1, 1]} : vector<47x392xbf16> to vector<47x136xbf16>
    %20 = tpu.concatenate %16, %17, %18, %19 in 1 : vector<47x136xbf16>, vector<47x136xbf16>, vector<47x136xbf16>, vector<47x136xbf16> -> vector<47x544xbf16>
    %cst_7 = arith.constant dense<0.000000e+00> : vector<47x128xf32>
    %21 = tpu.matmul %20, %9, %cst_7 {dimension_numbers = #tpu.dot_dimension_numbers<[1], [0], [0], [1], [0, 0, 1, 1], [], []>} : vector<47x544xbf16>, vector<544x128xbf16>, vector<47x128xf32> -> vector<47x128xf32>
    %22 = vector.extract_strided_slice %5 {offsets = [0, 256], sizes = [47, 136], strides = [1, 1]} : vector<47x392xbf16> to vector<47x136xbf16>
    %23 = vector.extract_strided_slice %6 {offsets = [0, 256], sizes = [47, 136], strides = [1, 1]} : vector<47x392xbf16> to vector<47x136xbf16>
    %24 = vector.extract_strided_slice %7 {offsets = [0, 256], sizes = [47, 136], strides = [1, 1]} : vector<47x392xbf16> to vector<47x136xbf16>
    %25 = vector.extract_strided_slice %8 {offsets = [0, 256], sizes = [47, 136], strides = [1, 1]} : vector<47x392xbf16> to vector<47x136xbf16>
    %26 = tpu.concatenate %22, %23, %24, %25 in 1 : vector<47x136xbf16>, vector<47x136xbf16>, vector<47x136xbf16>, vector<47x136xbf16> -> vector<47x544xbf16>
    %cst_8 = arith.constant dense<0.000000e+00> : vector<47x128xf32>
    %27 = tpu.matmul %26, %9, %cst_8 {dimension_numbers = #tpu.dot_dimension_numbers<[1], [0], [0], [1], [0, 0, 1, 1], [], []>} : vector<47x544xbf16>, vector<544x128xbf16>, vector<47x128xf32> -> vector<47x128xf32>
    %28 = tpu.concatenate %15, %21, %27 in 1 : vector<47x128xf32>, vector<47x128xf32>, vector<47x128xf32> -> vector<47x384xf32>
    %c0_9 = arith.constant 0 : index
    %c0_10 = arith.constant 0 : index
    %29 = vector.load %arg6[%c0_9, %c0_10] : memref<1x384xf32, #tpu.memory_space<vmem>>, vector<1x384xf32>
    %30 = vector.broadcast %29 : vector<1x384xf32> to vector<47x384xf32>
    %31 = arith.addf %28, %30 : vector<47x384xf32>
    %cst_11 = arith.constant 0.000000e+00 : f32
    %32 = vector.broadcast %cst_11 : f32 to vector<47x384xf32>
    %33 = arith.cmpf oge, %31, %32 : vector<47x384xf32>
    %cst_12 = arith.constant 0.00999999977 : f32
    %34 = vector.broadcast %cst_12 : f32 to vector<47x384xf32>
    %35 = arith.mulf %34, %31 : vector<47x384xf32>
    %36 = arith.select %33, %31, %35 : vector<47x384xi1>, vector<47x384xf32>
    %37 = arith.truncf %36 : vector<47x384xf32> to vector<47x384xbf16>
    %cst_13 = arith.constant 0.000000e+00 : bf16
    %38 = vector.broadcast %cst_13 : bf16 to vector<47x8xbf16>
    %39 = tpu.concatenate %37, %38 in 1 : vector<47x384xbf16>, vector<47x8xbf16> -> vector<47x392xbf16>
    %c0_14 = arith.constant 0 : index
    %c0_15 = arith.constant 0 : index
    %40 = vector.load %arg7[%c0_14, %c0_15] : memref<72x47xbf16, #tpu.memory_space<vmem>>, vector<72x47xbf16>
    %cst_16 = arith.constant dense<0.000000e+00> : vector<72x392xf32>
    %41 = tpu.matmul %40, %39, %cst_16 {dimension_numbers = #tpu.dot_dimension_numbers<[1], [0], [0], [1], [0, 0, 1, 1], [], []>} : vector<72x47xbf16>, vector<47x392xbf16>, vector<72x392xf32> -> vector<72x392xf32>
    %42 = arith.truncf %41 : vector<72x392xf32> to vector<72x392xbf16>
    %43 = vector.extract_strided_slice %42 {offsets = [0, 0], sizes = [23, 392], strides = [1, 1]} : vector<72x392xbf16> to vector<23x392xbf16>
    %44 = vector.extract_strided_slice %42 {offsets = [24, 0], sizes = [23, 392], strides = [1, 1]} : vector<72x392xbf16> to vector<23x392xbf16>
    %45 = vector.extract_strided_slice %42 {offsets = [48, 0], sizes = [23, 392], strides = [1, 1]} : vector<72x392xbf16> to vector<23x392xbf16>
    %c0_17 = arith.constant 0 : index
    %c0_18 = arith.constant 0 : index
    %46 = vector.load %arg8[%c0_17, %c0_18] : memref<408x128xbf16, #tpu.memory_space<vmem>>, vector<408x128xbf16>
    %47 = vector.extract_strided_slice %43 {offsets = [0, 0], sizes = [23, 136], strides = [1, 1]} : vector<23x392xbf16> to vector<23x136xbf16>
    %48 = vector.extract_strided_slice %44 {offsets = [0, 0], sizes = [23, 136], strides = [1, 1]} : vector<23x392xbf16> to vector<23x136xbf16>
    %49 = vector.extract_strided_slice %45 {offsets = [0, 0], sizes = [23, 136], strides = [1, 1]} : vector<23x392xbf16> to vector<23x136xbf16>
    %50 = tpu.concatenate %47, %48, %49 in 1 : vector<23x136xbf16>, vector<23x136xbf16>, vector<23x136xbf16> -> vector<23x408xbf16>
    %cst_19 = arith.constant dense<0.000000e+00> : vector<23x128xf32>
    %51 = tpu.matmul %50, %46, %cst_19 {dimension_numbers = #tpu.dot_dimension_numbers<[1], [0], [0], [1], [0, 0, 1, 1], [], []>} : vector<23x408xbf16>, vector<408x128xbf16>, vector<23x128xf32> -> vector<23x128xf32>
    %52 = vector.extract_strided_slice %43 {offsets = [0, 128], sizes = [23, 136], strides = [1, 1]} : vector<23x392xbf16> to vector<23x136xbf16>
    %53 = vector.extract_strided_slice %44 {offsets = [0, 128], sizes = [23, 136], strides = [1, 1]} : vector<23x392xbf16> to vector<23x136xbf16>
    %54 = vector.extract_strided_slice %45 {offsets = [0, 128], sizes = [23, 136], strides = [1, 1]} : vector<23x392xbf16> to vector<23x136xbf16>
    %55 = tpu.concatenate %52, %53, %54 in 1 : vector<23x136xbf16>, vector<23x136xbf16>, vector<23x136xbf16> -> vector<23x408xbf16>
    %cst_20 = arith.constant dense<0.000000e+00> : vector<23x128xf32>
    %56 = tpu.matmul %55, %46, %cst_20 {dimension_numbers = #tpu.dot_dimension_numbers<[1], [0], [0], [1], [0, 0, 1, 1], [], []>} : vector<23x408xbf16>, vector<408x128xbf16>, vector<23x128xf32> -> vector<23x128xf32>
    %57 = vector.extract_strided_slice %43 {offsets = [0, 256], sizes = [23, 136], strides = [1, 1]} : vector<23x392xbf16> to vector<23x136xbf16>
    %58 = vector.extract_strided_slice %44 {offsets = [0, 256], sizes = [23, 136], strides = [1, 1]} : vector<23x392xbf16> to vector<23x136xbf16>
    %59 = vector.extract_strided_slice %45 {offsets = [0, 256], sizes = [23, 136], strides = [1, 1]} : vector<23x392xbf16> to vector<23x136xbf16>
    %60 = tpu.concatenate %57, %58, %59 in 1 : vector<23x136xbf16>, vector<23x136xbf16>, vector<23x136xbf16> -> vector<23x408xbf16>
    %cst_21 = arith.constant dense<0.000000e+00> : vector<23x128xf32>
    %61 = tpu.matmul %60, %46, %cst_21 {dimension_numbers = #tpu.dot_dimension_numbers<[1], [0], [0], [1], [0, 0, 1, 1], [], []>} : vector<23x408xbf16>, vector<408x128xbf16>, vector<23x128xf32> -> vector<23x128xf32>
    %62 = tpu.concatenate %51, %56, %61 in 1 : vector<23x128xf32>, vector<23x128xf32>, vector<23x128xf32> -> vector<23x384xf32>
    %c0_22 = arith.constant 0 : index
    %c0_23 = arith.constant 0 : index
    %63 = vector.load %arg9[%c0_22, %c0_23] : memref<1x384xf32, #tpu.memory_space<vmem>>, vector<1x384xf32>
    %64 = vector.broadcast %63 : vector<1x384xf32> to vector<23x384xf32>
    %65 = arith.addf %62, %64 : vector<23x384xf32>
    %cst_24 = arith.constant 0.000000e+00 : f32
    %66 = vector.broadcast %cst_24 : f32 to vector<23x384xf32>
    %67 = arith.cmpf oge, %65, %66 : vector<23x384xf32>
    %cst_25 = arith.constant 0.00999999977 : f32
    %68 = vector.broadcast %cst_25 : f32 to vector<23x384xf32>
    %69 = arith.mulf %68, %65 : vector<23x384xf32>
    %70 = arith.select %67, %65, %69 : vector<23x384xi1>, vector<23x384xf32>
    %71 = arith.truncf %70 : vector<23x384xf32> to vector<23x384xbf16>
    %cst_26 = arith.constant 0.000000e+00 : bf16
    %72 = vector.broadcast %cst_26 : bf16 to vector<23x16xbf16>
    %73 = tpu.concatenate %71, %72 in 1 : vector<23x384xbf16>, vector<23x16xbf16> -> vector<23x400xbf16>
    %c0_27 = arith.constant 0 : index
    %c0_28 = arith.constant 0 : index
    %74 = vector.load %arg10[%c0_27, %c0_28] : memref<48x23xbf16, #tpu.memory_space<vmem>>, vector<48x23xbf16>
    %cst_29 = arith.constant dense<0.000000e+00> : vector<48x400xf32>
    %75 = tpu.matmul %74, %73, %cst_29 {dimension_numbers = #tpu.dot_dimension_numbers<[1], [0], [0], [1], [0, 0, 1, 1], [], []>} : vector<48x23xbf16>, vector<23x400xbf16>, vector<48x400xf32> -> vector<48x400xf32>
    %76 = arith.truncf %75 : vector<48x400xf32> to vector<48x400xbf16>
    %77 = vector.extract_strided_slice %76 {offsets = [0, 0], sizes = [11, 400], strides = [1, 1]} : vector<48x400xbf16> to vector<11x400xbf16>
    %78 = vector.extract_strided_slice %76 {offsets = [16, 0], sizes = [11, 400], strides = [1, 1]} : vector<48x400xbf16> to vector<11x400xbf16>
    %79 = vector.extract_strided_slice %76 {offsets = [32, 0], sizes = [11, 400], strides = [1, 1]} : vector<48x400xbf16> to vector<11x400xbf16>
    %c0_30 = arith.constant 0 : index
    %c0_31 = arith.constant 0 : index
    %80 = vector.load %arg11[%c0_30, %c0_31] : memref<432x128xbf16, #tpu.memory_space<vmem>>, vector<432x128xbf16>
    %81 = vector.extract_strided_slice %77 {offsets = [0, 0], sizes = [11, 144], strides = [1, 1]} : vector<11x400xbf16> to vector<11x144xbf16>
    %82 = vector.extract_strided_slice %78 {offsets = [0, 0], sizes = [11, 144], strides = [1, 1]} : vector<11x400xbf16> to vector<11x144xbf16>
    %83 = vector.extract_strided_slice %79 {offsets = [0, 0], sizes = [11, 144], strides = [1, 1]} : vector<11x400xbf16> to vector<11x144xbf16>
    %84 = tpu.concatenate %81, %82, %83 in 1 : vector<11x144xbf16>, vector<11x144xbf16>, vector<11x144xbf16> -> vector<11x432xbf16>
    %cst_32 = arith.constant dense<0.000000e+00> : vector<11x128xf32>
    %85 = tpu.matmul %84, %80, %cst_32 {dimension_numbers = #tpu.dot_dimension_numbers<[1], [0], [0], [1], [0, 0, 1, 1], [], []>} : vector<11x432xbf16>, vector<432x128xbf16>, vector<11x128xf32> -> vector<11x128xf32>
    %86 = vector.extract_strided_slice %77 {offsets = [0, 128], sizes = [11, 144], strides = [1, 1]} : vector<11x400xbf16> to vector<11x144xbf16>
    %87 = vector.extract_strided_slice %78 {offsets = [0, 128], sizes = [11, 144], strides = [1, 1]} : vector<11x400xbf16> to vector<11x144xbf16>
    %88 = vector.extract_strided_slice %79 {offsets = [0, 128], sizes = [11, 144], strides = [1, 1]} : vector<11x400xbf16> to vector<11x144xbf16>
    %89 = tpu.concatenate %86, %87, %88 in 1 : vector<11x144xbf16>, vector<11x144xbf16>, vector<11x144xbf16> -> vector<11x432xbf16>
    %cst_33 = arith.constant dense<0.000000e+00> : vector<11x128xf32>
    %90 = tpu.matmul %89, %80, %cst_33 {dimension_numbers = #tpu.dot_dimension_numbers<[1], [0], [0], [1], [0, 0, 1, 1], [], []>} : vector<11x432xbf16>, vector<432x128xbf16>, vector<11x128xf32> -> vector<11x128xf32>
    %91 = vector.extract_strided_slice %77 {offsets = [0, 256], sizes = [11, 144], strides = [1, 1]} : vector<11x400xbf16> to vector<11x144xbf16>
    %92 = vector.extract_strided_slice %78 {offsets = [0, 256], sizes = [11, 144], strides = [1, 1]} : vector<11x400xbf16> to vector<11x144xbf16>
    %93 = vector.extract_strided_slice %79 {offsets = [0, 256], sizes = [11, 144], strides = [1, 1]} : vector<11x400xbf16> to vector<11x144xbf16>
    %94 = tpu.concatenate %91, %92, %93 in 1 : vector<11x144xbf16>, vector<11x144xbf16>, vector<11x144xbf16> -> vector<11x432xbf16>
    %cst_34 = arith.constant dense<0.000000e+00> : vector<11x128xf32>
    %95 = tpu.matmul %94, %80, %cst_34 {dimension_numbers = #tpu.dot_dimension_numbers<[1], [0], [0], [1], [0, 0, 1, 1], [], []>} : vector<11x432xbf16>, vector<432x128xbf16>, vector<11x128xf32> -> vector<11x128xf32>
    %96 = tpu.concatenate %85, %90, %95 in 1 : vector<11x128xf32>, vector<11x128xf32>, vector<11x128xf32> -> vector<11x384xf32>
    %c0_35 = arith.constant 0 : index
    %c0_36 = arith.constant 0 : index
    %97 = vector.load %arg12[%c0_35, %c0_36] : memref<1x384xf32, #tpu.memory_space<vmem>>, vector<1x384xf32>
    %98 = vector.broadcast %97 : vector<1x384xf32> to vector<11x384xf32>
    %99 = arith.addf %96, %98 : vector<11x384xf32>
    %cst_37 = arith.constant 0.000000e+00 : f32
    %100 = vector.broadcast %cst_37 : f32 to vector<11x384xf32>
    %101 = arith.cmpf oge, %99, %100 : vector<11x384xf32>
    %cst_38 = arith.constant 0.00999999977 : f32
    %102 = vector.broadcast %cst_38 : f32 to vector<11x384xf32>
    %103 = arith.mulf %102, %99 : vector<11x384xf32>
    %104 = arith.select %101, %99, %103 : vector<11x384xi1>, vector<11x384xf32>
    %105 = arith.truncf %104 : vector<11x384xf32> to vector<11x384xbf16>
    %cst_39 = arith.constant 0.000000e+00 : bf16
    %106 = vector.broadcast %cst_39 : bf16 to vector<11x32xbf16>
    %107 = tpu.concatenate %105, %106 in 1 : vector<11x384xbf16>, vector<11x32xbf16> -> vector<11x416xbf16>
    %c0_40 = arith.constant 0 : index
    %c0_41 = arith.constant 0 : index
    %108 = vector.load %arg13[%c0_40, %c0_41] : memref<24x11xbf16, #tpu.memory_space<vmem>>, vector<24x11xbf16>
    %cst_42 = arith.constant dense<0.000000e+00> : vector<24x416xf32>
    %109 = tpu.matmul %108, %107, %cst_42 {dimension_numbers = #tpu.dot_dimension_numbers<[1], [0], [0], [1], [0, 0, 1, 1], [], []>} : vector<24x11xbf16>, vector<11x416xbf16>, vector<24x416xf32> -> vector<24x416xf32>
    %110 = arith.truncf %109 : vector<24x416xf32> to vector<24x416xbf16>
    %111 = vector.extract_strided_slice %110 {offsets = [0, 0], sizes = [5, 416], strides = [1, 1]} : vector<24x416xbf16> to vector<5x416xbf16>
    %112 = vector.extract_strided_slice %110 {offsets = [8, 0], sizes = [5, 416], strides = [1, 1]} : vector<24x416xbf16> to vector<5x416xbf16>
    %113 = vector.extract_strided_slice %110 {offsets = [16, 0], sizes = [5, 416], strides = [1, 1]} : vector<24x416xbf16> to vector<5x416xbf16>
    %c0_43 = arith.constant 0 : index
    %c0_44 = arith.constant 0 : index
    %114 = vector.load %arg14[%c0_43, %c0_44] : memref<480x128xbf16, #tpu.memory_space<vmem>>, vector<480x128xbf16>
    %115 = vector.extract_strided_slice %111 {offsets = [0, 0], sizes = [5, 160], strides = [1, 1]} : vector<5x416xbf16> to vector<5x160xbf16>
    %116 = vector.extract_strided_slice %112 {offsets = [0, 0], sizes = [5, 160], strides = [1, 1]} : vector<5x416xbf16> to vector<5x160xbf16>
    %117 = vector.extract_strided_slice %113 {offsets = [0, 0], sizes = [5, 160], strides = [1, 1]} : vector<5x416xbf16> to vector<5x160xbf16>
    %118 = tpu.concatenate %115, %116, %117 in 1 : vector<5x160xbf16>, vector<5x160xbf16>, vector<5x160xbf16> -> vector<5x480xbf16>
    %cst_45 = arith.constant dense<0.000000e+00> : vector<5x128xf32>
    %119 = tpu.matmul %118, %114, %cst_45 {dimension_numbers = #tpu.dot_dimension_numbers<[1], [0], [0], [1], [0, 0, 1, 1], [], []>} : vector<5x480xbf16>, vector<480x128xbf16>, vector<5x128xf32> -> vector<5x128xf32>
    %120 = vector.extract_strided_slice %111 {offsets = [0, 128], sizes = [5, 160], strides = [1, 1]} : vector<5x416xbf16> to vector<5x160xbf16>
    %121 = vector.extract_strided_slice %112 {offsets = [0, 128], sizes = [5, 160], strides = [1, 1]} : vector<5x416xbf16> to vector<5x160xbf16>
    %122 = vector.extract_strided_slice %113 {offsets = [0, 128], sizes = [5, 160], strides = [1, 1]} : vector<5x416xbf16> to vector<5x160xbf16>
    %123 = tpu.concatenate %120, %121, %122 in 1 : vector<5x160xbf16>, vector<5x160xbf16>, vector<5x160xbf16> -> vector<5x480xbf16>
    %cst_46 = arith.constant dense<0.000000e+00> : vector<5x128xf32>
    %124 = tpu.matmul %123, %114, %cst_46 {dimension_numbers = #tpu.dot_dimension_numbers<[1], [0], [0], [1], [0, 0, 1, 1], [], []>} : vector<5x480xbf16>, vector<480x128xbf16>, vector<5x128xf32> -> vector<5x128xf32>
    %125 = vector.extract_strided_slice %111 {offsets = [0, 256], sizes = [5, 160], strides = [1, 1]} : vector<5x416xbf16> to vector<5x160xbf16>
    %126 = vector.extract_strided_slice %112 {offsets = [0, 256], sizes = [5, 160], strides = [1, 1]} : vector<5x416xbf16> to vector<5x160xbf16>
    %127 = vector.extract_strided_slice %113 {offsets = [0, 256], sizes = [5, 160], strides = [1, 1]} : vector<5x416xbf16> to vector<5x160xbf16>
    %128 = tpu.concatenate %125, %126, %127 in 1 : vector<5x160xbf16>, vector<5x160xbf16>, vector<5x160xbf16> -> vector<5x480xbf16>
    %cst_47 = arith.constant dense<0.000000e+00> : vector<5x128xf32>
    %129 = tpu.matmul %128, %114, %cst_47 {dimension_numbers = #tpu.dot_dimension_numbers<[1], [0], [0], [1], [0, 0, 1, 1], [], []>} : vector<5x480xbf16>, vector<480x128xbf16>, vector<5x128xf32> -> vector<5x128xf32>
    %130 = tpu.concatenate %119, %124, %129 in 1 : vector<5x128xf32>, vector<5x128xf32>, vector<5x128xf32> -> vector<5x384xf32>
    %c0_48 = arith.constant 0 : index
    %c0_49 = arith.constant 0 : index
    %131 = vector.load %arg15[%c0_48, %c0_49] : memref<1x384xf32, #tpu.memory_space<vmem>>, vector<1x384xf32>
    %132 = vector.broadcast %131 : vector<1x384xf32> to vector<5x384xf32>
    %133 = arith.addf %130, %132 : vector<5x384xf32>
    %cst_50 = arith.constant 0.000000e+00 : f32
    %134 = vector.broadcast %cst_50 : f32 to vector<5x384xf32>
    %135 = arith.cmpf oge, %133, %134 : vector<5x384xf32>
    %cst_51 = arith.constant 0.00999999977 : f32
    %136 = vector.broadcast %cst_51 : f32 to vector<5x384xf32>
    %137 = arith.mulf %136, %133 : vector<5x384xf32>
    %138 = arith.select %135, %133, %137 : vector<5x384xi1>, vector<5x384xf32>
    %139 = arith.truncf %138 : vector<5x384xf32> to vector<5x384xbf16>
    %140 = vector.extract_strided_slice %139 {offsets = [0, 0], sizes = [3, 384], strides = [1, 1]} : vector<5x384xbf16> to vector<3x384xbf16>
    %141 = vector.extract_strided_slice %139 {offsets = [1, 0], sizes = [3, 384], strides = [1, 1]} : vector<5x384xbf16> to vector<3x384xbf16>
    %142 = vector.extract_strided_slice %139 {offsets = [2, 0], sizes = [3, 384], strides = [1, 1]} : vector<5x384xbf16> to vector<3x384xbf16>
    %c0_52 = arith.constant 0 : index
    %c0_53 = arith.constant 0 : index
    %143 = vector.load %arg16[%c0_52, %c0_53] : memref<576x128xbf16, #tpu.memory_space<vmem>>, vector<576x128xbf16>
    %144 = vector.extract_strided_slice %140 {offsets = [0, 0], sizes = [3, 192], strides = [1, 1]} : vector<3x384xbf16> to vector<3x192xbf16>
    %145 = vector.extract_strided_slice %141 {offsets = [0, 0], sizes = [3, 192], strides = [1, 1]} : vector<3x384xbf16> to vector<3x192xbf16>
    %146 = vector.extract_strided_slice %142 {offsets = [0, 0], sizes = [3, 192], strides = [1, 1]} : vector<3x384xbf16> to vector<3x192xbf16>
    %147 = tpu.concatenate %144, %145, %146 in 1 : vector<3x192xbf16>, vector<3x192xbf16>, vector<3x192xbf16> -> vector<3x576xbf16>
    %cst_54 = arith.constant dense<0.000000e+00> : vector<3x128xf32>
    %148 = tpu.matmul %147, %143, %cst_54 {dimension_numbers = #tpu.dot_dimension_numbers<[1], [0], [0], [1], [0, 0, 1, 1], [], []>} : vector<3x576xbf16>, vector<576x128xbf16>, vector<3x128xf32> -> vector<3x128xf32>
    %149 = vector.extract_strided_slice %140 {offsets = [0, 64], sizes = [3, 192], strides = [1, 1]} : vector<3x384xbf16> to vector<3x192xbf16>
    %150 = vector.extract_strided_slice %141 {offsets = [0, 64], sizes = [3, 192], strides = [1, 1]} : vector<3x384xbf16> to vector<3x192xbf16>
    %151 = vector.extract_strided_slice %142 {offsets = [0, 64], sizes = [3, 192], strides = [1, 1]} : vector<3x384xbf16> to vector<3x192xbf16>
    %152 = tpu.concatenate %149, %150, %151 in 1 : vector<3x192xbf16>, vector<3x192xbf16>, vector<3x192xbf16> -> vector<3x576xbf16>
    %cst_55 = arith.constant dense<0.000000e+00> : vector<3x128xf32>
    %153 = tpu.matmul %152, %143, %cst_55 {dimension_numbers = #tpu.dot_dimension_numbers<[1], [0], [0], [1], [0, 0, 1, 1], [], []>} : vector<3x576xbf16>, vector<576x128xbf16>, vector<3x128xf32> -> vector<3x128xf32>
    %154 = vector.extract_strided_slice %140 {offsets = [0, 128], sizes = [3, 192], strides = [1, 1]} : vector<3x384xbf16> to vector<3x192xbf16>
    %155 = vector.extract_strided_slice %141 {offsets = [0, 128], sizes = [3, 192], strides = [1, 1]} : vector<3x384xbf16> to vector<3x192xbf16>
    %156 = vector.extract_strided_slice %142 {offsets = [0, 128], sizes = [3, 192], strides = [1, 1]} : vector<3x384xbf16> to vector<3x192xbf16>
    %157 = tpu.concatenate %154, %155, %156 in 1 : vector<3x192xbf16>, vector<3x192xbf16>, vector<3x192xbf16> -> vector<3x576xbf16>
    %cst_56 = arith.constant dense<0.000000e+00> : vector<3x128xf32>
    %158 = tpu.matmul %157, %143, %cst_56 {dimension_numbers = #tpu.dot_dimension_numbers<[1], [0], [0], [1], [0, 0, 1, 1], [], []>} : vector<3x576xbf16>, vector<576x128xbf16>, vector<3x128xf32> -> vector<3x128xf32>
    %159 = tpu.concatenate %148, %153, %158 in 1 : vector<3x128xf32>, vector<3x128xf32>, vector<3x128xf32> -> vector<3x384xf32>
    %c0_57 = arith.constant 0 : index
    %c0_58 = arith.constant 0 : index
    %160 = vector.load %arg17[%c0_57, %c0_58] : memref<1x384xf32, #tpu.memory_space<vmem>>, vector<1x384xf32>
    %161 = vector.broadcast %160 : vector<1x384xf32> to vector<3x384xf32>
    %162 = arith.addf %159, %161 : vector<3x384xf32>
    %cst_59 = arith.constant 0.000000e+00 : f32
    %163 = vector.broadcast %cst_59 : f32 to vector<3x384xf32>
    %164 = arith.cmpf oge, %162, %163 : vector<3x384xf32>
    %cst_60 = arith.constant 0.00999999977 : f32
    %165 = vector.broadcast %cst_60 : f32 to vector<3x384xf32>
    %166 = arith.mulf %165, %162 : vector<3x384xf32>
    %167 = arith.select %164, %162, %166 : vector<3x384xi1>, vector<3x384xf32>
    %168 = arith.truncf %167 : vector<3x384xf32> to vector<3x384xbf16>
    %169 = vector.extract_strided_slice %168 {offsets = [0, 0], sizes = [1, 384], strides = [1, 1]} : vector<3x384xbf16> to vector<1x384xbf16>
    %170 = vector.extract_strided_slice %168 {offsets = [1, 0], sizes = [1, 384], strides = [1, 1]} : vector<3x384xbf16> to vector<1x384xbf16>
    %171 = vector.extract_strided_slice %168 {offsets = [2, 0], sizes = [1, 384], strides = [1, 1]} : vector<3x384xbf16> to vector<1x384xbf16>
    %c0_61 = arith.constant 0 : index
    %c0_62 = arith.constant 0 : index
    %172 = vector.load %arg18[%c0_61, %c0_62] : memref<1152x256xbf16, #tpu.memory_space<vmem>>, vector<1152x256xbf16>
    %173 = tpu.concatenate %169, %170, %171 in 1 : vector<1x384xbf16>, vector<1x384xbf16>, vector<1x384xbf16> -> vector<1x1152xbf16>
    %cst_63 = arith.constant dense<0.000000e+00> : vector<1x256xf32>
    %174 = tpu.matmul %173, %172, %cst_63 {dimension_numbers = #tpu.dot_dimension_numbers<[1], [0], [0], [1], [0, 0, 1, 1], [], []>} : vector<1x1152xbf16>, vector<1152x256xbf16>, vector<1x256xf32> -> vector<1x256xf32>
    %c0_64 = arith.constant 0 : index
    %c0_65 = arith.constant 0 : index
    %175 = vector.load %arg19[%c0_64, %c0_65] : memref<1x256xf32, #tpu.memory_space<vmem>>, vector<1x256xf32>
    %176 = arith.addf %174, %175 : vector<1x256xf32>
    %cst_66 = arith.constant 0.000000e+00 : f32
    %177 = vector.broadcast %cst_66 : f32 to vector<1x256xf32>
    %178 = arith.cmpf oge, %176, %177 : vector<1x256xf32>
    %cst_67 = arith.constant 0.00999999977 : f32
    %179 = vector.broadcast %cst_67 : f32 to vector<1x256xf32>
    %180 = arith.mulf %179, %176 : vector<1x256xf32>
    %181 = arith.select %178, %176, %180 : vector<1x256xi1>, vector<1x256xf32>
    %182 = arith.truncf %181 : vector<1x256xf32> to vector<1x256xbf16>
    %c0_68 = arith.constant 0 : index
    %c0_69 = arith.constant 0 : index
    %183 = vector.load %arg20[%c0_68, %c0_69] : memref<256x128xbf16, #tpu.memory_space<vmem>>, vector<256x128xbf16>
    %cst_70 = arith.constant dense<0.000000e+00> : vector<1x128xf32>
    %184 = tpu.matmul %182, %183, %cst_70 {dimension_numbers = #tpu.dot_dimension_numbers<[1], [0], [0], [1], [0, 0, 1, 1], [], []>} : vector<1x256xbf16>, vector<256x128xbf16>, vector<1x128xf32> -> vector<1x128xf32>
    %c0_71 = arith.constant 0 : index
    %c0_72 = arith.constant 0 : index
    %185 = vector.load %arg21[%c0_71, %c0_72] : memref<1x128xf32, #tpu.memory_space<vmem>>, vector<1x128xf32>
    %186 = arith.addf %184, %185 : vector<1x128xf32>
    %cst_73 = arith.constant 0.000000e+00 : f32
    %187 = vector.broadcast %cst_73 : f32 to vector<1x128xf32>
    %188 = arith.maximumf %186, %187 : vector<1x128xf32>
    %189 = arith.truncf %188 : vector<1x128xf32> to vector<1x128xbf16>
    %c0_74 = arith.constant 0 : index
    %c0_75 = arith.constant 0 : index
    %190 = vector.load %arg22[%c0_74, %c0_75] : memref<128x5xbf16, #tpu.memory_space<vmem>>, vector<128x5xbf16>
    %cst_76 = arith.constant dense<0.000000e+00> : vector<1x5xf32>
    %191 = tpu.matmul %189, %190, %cst_76 {dimension_numbers = #tpu.dot_dimension_numbers<[1], [0], [0], [1], [0, 0, 1, 1], [], []>} : vector<1x128xbf16>, vector<128x5xbf16>, vector<1x5xf32> -> vector<1x5xf32>
    %c0_77 = arith.constant 0 : index
    %c0_78 = arith.constant 0 : index
    %192 = vector.load %arg23[%c0_77, %c0_78] : memref<1x5xf32, #tpu.memory_space<vmem>>, vector<1x5xf32>
    %193 = arith.addf %191, %192 : vector<1x5xf32>
    %c0_79 = arith.constant 0 : index
    %c0_80 = arith.constant 0 : index
    %c0_81 = arith.constant 0 : index
    %194 = vector.load %arg24[%c0_79, %c0_80, %c0_81] : memref<1x1x5xf32, #tpu.memory_space<vmem>>, vector<1x1x5xf32>
    %195 = vector.shape_cast %194 : vector<1x1x5xf32> to vector<1x5xf32>
    %196 = vector.shape_cast %193 : vector<1x5xf32> to vector<1x1x5xf32>
    tpu.vector_store %arg24[%c0_79, %c0_80, %c0_81], %196 {strides = array<i32>} : memref<1x1x5xf32, #tpu.memory_space<vmem>>, vector<1x1x5xf32>,
    return
  }
  func.func @transform_0(%arg0: i32) -> (i32, i32, i32) {
    %c0_i32 = arith.constant 0 : i32
    %c0_i32_0 = arith.constant 0 : i32
    %c0_i32_1 = arith.constant 0 : i32
    return %arg0, %c0_i32, %c0_i32_0 : i32, i32, i32
  }
  func.func @transform_1(%arg0: i32) -> (i32, i32, i32) {
    %c0_i32 = arith.constant 0 : i32
    %c0_i32_0 = arith.constant 0 : i32
    %c0_i32_1 = arith.constant 0 : i32
    return %arg0, %c0_i32, %c0_i32_0 : i32, i32, i32
  }
  func.func @transform_2(%arg0: i32) -> (i32, i32, i32) {
    %c0_i32 = arith.constant 0 : i32
    %c0_i32_0 = arith.constant 0 : i32
    %c0_i32_1 = arith.constant 0 : i32
    return %arg0, %c0_i32, %c0_i32_0 : i32, i32, i32
  }
  func.func @transform_3(%arg0: i32) -> (i32, i32) {
    %c0_i32 = arith.constant 0 : i32
    %c0_i32_0 = arith.constant 0 : i32
    %c0_i32_1 = arith.constant 0 : i32
    return %c0_i32, %c0_i32_0 : i32, i32
  }
  func.func @transform_4(%arg0: i32) -> (i32, i32) {
    %c0_i32 = arith.constant 0 : i32
    %c0_i32_0 = arith.constant 0 : i32
    %c0_i32_1 = arith.constant 0 : i32
    return %c0_i32, %c0_i32_0 : i32, i32
  }
  func.func @transform_5(%arg0: i32) -> (i32, i32) {
    %c0_i32 = arith.constant 0 : i32
    %c0_i32_0 = arith.constant 0 : i32
    %c0_i32_1 = arith.constant 0 : i32
    return %c0_i32, %c0_i32_0 : i32, i32
  }
  func.func @transform_6(%arg0: i32) -> (i32, i32) {
    %c0_i32 = arith.constant 0 : i32
    %c0_i32_0 = arith.constant 0 : i32
    %c0_i32_1 = arith.constant 0 : i32
    return %c0_i32, %c0_i32_0 : i32, i32
  }
  func.func @transform_7(%arg0: i32) -> (i32, i32) {
    %c0_i32 = arith.constant 0 : i32
    %c0_i32_0 = arith.constant 0 : i32
    %c0_i32_1 = arith.constant 0 : i32
    return %c0_i32, %c0_i32_0 : i32, i32
  }
  func.func @transform_8(%arg0: i32) -> (i32, i32) {
    %c0_i32 = arith.constant 0 : i32
    %c0_i32_0 = arith.constant 0 : i32
    %c0_i32_1 = arith.constant 0 : i32
    return %c0_i32, %c0_i32_0 : i32, i32
  }
  func.func @transform_9(%arg0: i32) -> (i32, i32) {
    %c0_i32 = arith.constant 0 : i32
    %c0_i32_0 = arith.constant 0 : i32
    %c0_i32_1 = arith.constant 0 : i32
    return %c0_i32, %c0_i32_0 : i32, i32
  }
  func.func @transform_10(%arg0: i32) -> (i32, i32) {
    %c0_i32 = arith.constant 0 : i32
    %c0_i32_0 = arith.constant 0 : i32
    %c0_i32_1 = arith.constant 0 : i32
    return %c0_i32, %c0_i32_0 : i32, i32
  }
  func.func @transform_11(%arg0: i32) -> (i32, i32) {
    %c0_i32 = arith.constant 0 : i32
    %c0_i32_0 = arith.constant 0 : i32
    %c0_i32_1 = arith.constant 0 : i32
    return %c0_i32, %c0_i32_0 : i32, i32
  }
  func.func @transform_12(%arg0: i32) -> (i32, i32) {
    %c0_i32 = arith.constant 0 : i32
    %c0_i32_0 = arith.constant 0 : i32
    %c0_i32_1 = arith.constant 0 : i32
    return %c0_i32, %c0_i32_0 : i32, i32
  }
  func.func @transform_13(%arg0: i32) -> (i32, i32) {
    %c0_i32 = arith.constant 0 : i32
    %c0_i32_0 = arith.constant 0 : i32
    %c0_i32_1 = arith.constant 0 : i32
    return %c0_i32, %c0_i32_0 : i32, i32
  }
  func.func @transform_14(%arg0: i32) -> (i32, i32) {
    %c0_i32 = arith.constant 0 : i32
    %c0_i32_0 = arith.constant 0 : i32
    %c0_i32_1 = arith.constant 0 : i32
    return %c0_i32, %c0_i32_0 : i32, i32
  }
  func.func @transform_15(%arg0: i32) -> (i32, i32) {
    %c0_i32 = arith.constant 0 : i32
    %c0_i32_0 = arith.constant 0 : i32
    %c0_i32_1 = arith.constant 0 : i32
    return %c0_i32, %c0_i32_0 : i32, i32
  }
  func.func @transform_16(%arg0: i32) -> (i32, i32) {
    %c0_i32 = arith.constant 0 : i32
    %c0_i32_0 = arith.constant 0 : i32
    %c0_i32_1 = arith.constant 0 : i32
    return %c0_i32, %c0_i32_0 : i32, i32
  }
  func.func @transform_17(%arg0: i32) -> (i32, i32) {
    %c0_i32 = arith.constant 0 : i32
    %c0_i32_0 = arith.constant 0 : i32
    %c0_i32_1 = arith.constant 0 : i32
    return %c0_i32, %c0_i32_0 : i32, i32
  }
  func.func @transform_18(%arg0: i32) -> (i32, i32) {
    %c0_i32 = arith.constant 0 : i32
    %c0_i32_0 = arith.constant 0 : i32
    %c0_i32_1 = arith.constant 0 : i32
    return %c0_i32, %c0_i32_0 : i32, i32
  }
  func.func @transform_19(%arg0: i32) -> (i32, i32) {
    %c0_i32 = arith.constant 0 : i32
    %c0_i32_0 = arith.constant 0 : i32
    %c0_i32_1 = arith.constant 0 : i32
    return %c0_i32, %c0_i32_0 : i32, i32
  }
  func.func @transform_20(%arg0: i32) -> (i32, i32) {
    %c0_i32 = arith.constant 0 : i32
    %c0_i32_0 = arith.constant 0 : i32
    %c0_i32_1 = arith.constant 0 : i32
    return %c0_i32, %c0_i32_0 : i32, i32
  }
  func.func @transform_21(%arg0: i32) -> (i32, i32) {
    %c0_i32 = arith.constant 0 : i32
    %c0_i32_0 = arith.constant 0 : i32
    %c0_i32_1 = arith.constant 0 : i32
    return %c0_i32, %c0_i32_0 : i32, i32
  }
  func.func @transform_22(%arg0: i32) -> (i32, i32) {
    %c0_i32 = arith.constant 0 : i32
    %c0_i32_0 = arith.constant 0 : i32
    %c0_i32_1 = arith.constant 0 : i32
    return %c0_i32, %c0_i32_0 : i32, i32
  }
  func.func @transform_23(%arg0: i32) -> (i32, i32, i32) {
    %c0_i32 = arith.constant 0 : i32
    %c0_i32_0 = arith.constant 0 : i32
    %c0_i32_1 = arith.constant 0 : i32
    return %arg0, %c0_i32, %c0_i32_0 : i32, i32, i32
  }
}

</mosaic_0001>

<bundles_post_ra>
// kernel: dropout_forward.3
= control target key start
LH: loop header
LB: loop body
LE: loop exit
PB: predicated region body
PF: predicated region fallthrough
CT: control target
= control target key end

     0   :  { %s11986_s0 = inlined_call_operand.vmem [shape: bf16[2,96,392], index: 0, kind: input, shape index: {}]   ;;  %s11987_s1 = inlined_call_operand.vmem [shape: f32[2,1,256], index: 1, kind: input, shape index: {}]   ;;  %s11988_s2 = inlined_call_operand.vmem [shape: f32[2,1,128], index: 2, kind: input, shape index: {}]   ;;  %s11989_s3 = inlined_call_operand.vmem [shape: bf16[192,96], index: 3, kind: input, shape index: {}]   ;;  %s11990_s4 = inlined_call_operand.vmem [shape: bf16[544,128], index: 4, kind: input, shape index: {}]   ;;  %s11991_s5 = inlined_call_operand.vmem [shape: f32[1,384], index: 5, kind: input, shape index: {}]   ;;  %s11992_s6 = inlined_call_operand.vmem [shape: bf16[72,47], index: 6, kind: input, shape index: {}]   ;;  %s11993_s7 = inlined_call_operand.vmem [shape: bf16[408,128], index: 7, kind: input, shape index: {}]   ;;  %s11994_s8 = inlined_call_operand.vmem [shape: f32[1,384], index: 8, kind: input, shape index: {}]   ;;  %s11995_s9 = inlined_call_operand.vmem [shape: bf16[48,23], index: 9, kind: input, shape index: {}]   ;;  %s11996_s10 = inlined_call_operand.vmem [shape: bf16[432,128], index: 10, kind: input, shape index: {}]   ;;  %s11997_s11 = inlined_call_operand.vmem [shape: f32[1,384], index: 11, kind: input, shape index: {}]   ;;  %s11998_s12 = inlined_call_operand.vmem [shape: bf16[24,11], index: 12, kind: input, shape index: {}]   ;;  %s11999_s13 = inlined_call_operand.vmem [shape: bf16[480,128], index: 13, kind: input, shape index: {}]   ;;  %s12000_s14 = inlined_call_operand.vmem [shape: f32[1,384], index: 14, kind: input, shape index: {}]   ;;  %s12001_s15 = inlined_call_operand.vmem [shape: bf16[576,128], index: 15, kind: input, shape index: {}]   ;;  %s12002_s16 = inlined_call_operand.vmem [shape: f32[1,384], index: 16, kind: input, shape index: {}]   ;;  %s12003_s17 = inlined_call_operand.vmem [shape: bf16[1152,256], index: 17, kind: input, shape index: {}]   ;;  %s12004_s18 = inlined_call_operand.vmem [shape: f32[1,256], index: 18, kind: input, shape index: {}]   ;;  %s12005_s19 = inlined_call_operand.vmem [shape: bf16[256,128], index: 19, kind: input, shape index: {}]   ;;  %s12006_s20 = inlined_call_operand.vmem [shape: f32[1,128], index: 20, kind: input, shape index: {}]   ;;  %s12007_s21 = inlined_call_operand.vmem [shape: bf16[128,5], index: 21, kind: input, shape index: {}]   ;;  %s12008_s22 = inlined_call_operand.vmem [shape: f32[1,5], index: 22, kind: input, shape index: {}]   ;;  %s12009_s23 = inlined_call_operand.hbm [shape: f32[2,1,5], index: 23, kind: output, shape index: {}]  }
   0x1   :  { %12044 = sst [smem:[#allocation21_spill]] %s11986_s0 }
   0x2   :  { %12045 = sst [smem:[#allocation22_spill]] %s11989_s3 }
   0x3   :  { %12046 = sst [smem:[#allocation23_spill]] %s11990_s4 }
   0x4   :  { %12047 = sst [smem:[#allocation24_spill]] %s11991_s5 }
   0x5   :  { %12048 = sst [smem:[#allocation25_spill]] %s11992_s6 }
   0x6   :  { %12049 = sst [smem:[#allocation26_spill]] %s11993_s7 }
   0x7   :  { %12050 = sst [smem:[#allocation27_spill]] %s11994_s8 }
   0x8   :  { %28 = vsyncpa [#allocation3], 0 }
   0x9   :  { %30 = vsyncpa [#allocation3 + $0x1], 0  ;;  %s9103_s4 = smov 0   ;;  %s9105_s30 = smov 0  }
   0xa   :  { %s9107_s24 = smov 0   ;;  %s9109_s25 = smov 0  }
   0xb LB: > { %12051 = sst [smem:[#allocation5_spill]] %s8966_s24  ;;  %s9124_s5 = sadd.s32 4294967295, %s8970_s25   ;;  %s8970_s25 = sphi %s9109_s25, %s12102_s25   ;;  %s8966_s24 = sphi %s9107_s24, %s12104_s24   ;;  %s8962_s30 = sphi %s9105_s30, %s12106_s30   ;;  %s8958_s4 = sphi %s9103_s4, %s12105_s4  }
   0xc   : > { %s7165_s1 = sadd.s32 4294967294, %s8970_s25   ;;  %s9128_s26 = sadd.s32 1, %s8970_s25  }
   0xd   : > { %12052 = sst [smem:[#allocation6_spill]] %s9128_s26  ;;  %s541_s2 = sadd.s32 1, %s8966_s24 }
   0xe   : > { %s538_s6 = ssub.s32 %s8970_s25, %s9128_s26  ;;  %p551_p0 = scmp.ne.s32.totalorder %s8966_s24, %s8962_s30 }
   0xf   : > { %p539_p1 = scmp.eq.s32.totalorder %s538_s6, 0  ;;  %p552_p2 = scmp.eq.s32.totalorder %s9124_s5, 1 }
  0x10   : > { %p557_p3 = scmp.ne.s32.totalorder %s8962_s30, %s8958_s4  ;;  %p558_p4 = scmp.eq.s32.totalorder %s7165_s1, 1 }
  0x11   : > { %s9139_s27 = scalar_select %p539_p1, %s8966_s24, %s541_s2  }
  0x12   : > { %p9141_p5 = por %p552_p2, %p551_p0  ;;  %p9145_p6 = por %p558_p4, %p557_p3 }
  0x13   : > { %12053 = sst [smem:[#allocation7_spill]] %s9139_s27  ;;  %p7168_p7 = scmp.ge.s32.totalorder %s8970_s25, 1 }
  0x14   : > { %p657_p8 = scmp.lt.s32.totalorder %s8970_s25, 3 }
  0x16   : > { %p658_p9 = pnand %p7168_p7, %p657_p8 }
  0x18   : > { %661 = sbr.rel (%p658_p9) target bundleno = 3983 (0xf8f), region = 112 }
  0x1f   : > { %p727_p10 = scmp.lt.s32.totalorder %s9124_s5, 1  ;;  %v12018_v0 = vmov 0   ;;  %s12056_s2 = sld [smem:[#allocation21_spill]]  ;;  %vm968_vm0 = vcmask 785408   ;;  %vm1445_vm1 = vcmask 64512   ;;  %vm8977_vm2 = vmmov 0  }
  0x20   : > { %1037 = vmatprep.mubr.bf16.mxu0 %v12018_v0  ;;  %s12057_s0 = sld [smem:[#allocation22_spill]]  ;;  %s12039_s1 = smov 8   ;;  %vm1489_vm3 = vcmask 195584   ;;  %vm1467_vm4 = vcmask 130048   ;;  %vm1736_vm5 = vcmask 261120  }
  0x21   : > { %s728_s29 = scalar_select %p727_p10, %s9124_s5, 1 }
  0x22   : > { %s12037_s24 = smov 16   ;;  %s12097_s26 = sld [smem:[#allocation25_spill]] }
  0x23   : > { %s8407_s3 = smul.u32 192, %s728_s29  ;;  %s12058_s29 = sld [smem:[#allocation23_spill]] }
  0x24   : > { %s12101_s8 = sld [smem:[#allocation27_spill]] }
  0x25   : > { %s9157_s6 = scalar_lea.vmem %s12056_s2, %s8407_s3  ;;  %s12096_s2 = sld [smem:[#allocation24_spill]] }
  0x26   : > { %v8457_v1 = vld [vmem:[%s9157_s6 + $0x4] ss:$16 sps:$4 sm:$0xff]   ;;  %v8459_v2 = vld [vmem:[%s9157_s6] ss:$16 sps:$4 sm:$0xff]   ;;  %v8478_v14 = vld [vmem:[%s9157_s6 + $0xc] ss:$16 sps:$4 sm:$0xff]  }
  0x27   : > { %1005 = vmatprep.subr.bf16.mxu0 %v8457_v1  ;;  %v8460_v3 = vld [vmem:[%s9157_s6 + $0x24] ss:$16 sps:$4 sm:$0xff]   ;;  %v8462_v4 = vld [vmem:[%s9157_s6 + $0x20] ss:$16 sps:$4 sm:$0xff]   ;;  %v8476_v15 = vld [vmem:[%s9157_s6 + $0x8] ss:$16 sps:$4 sm:$0xff]  }
  0x28   : > { %1006 = vmatpush1.bf16.msra.mxu0 %v8459_v2  ;;  %v8463_v5 = vld [vmem:[%s9157_s6 + $0x44] ss:$16 sps:$4 sm:$0xff]   ;;  %v8465_v6 = vld [vmem:[%s9157_s6 + $0x40] ss:$16 sps:$4 sm:$0xff]   ;;  %v8483_v16 = vld [vmem:[%s9157_s6 + $0x2c] ss:$16 sps:$4 sm:$0xff]  }
  0x29   : > { %1007 = vmatprep.subr.bf16.mxu0 %v8460_v3  ;;  %v8466_v7 = vld [vmem:[%s9157_s6 + $0x64] ss:$16 sps:$4 sm:$0xff]   ;;  %v8468_v8 = vld [vmem:[%s9157_s6 + $0x60] ss:$16 sps:$4 sm:$0xff]   ;;  %v8481_v17 = vld [vmem:[%s9157_s6 + $0x28] ss:$16 sps:$4 sm:$0xff]  }
  0x2a   : > { %v8469_v9 = vld [vmem:[%s9157_s6 + $0x84] ss:$16 sps:$4 sm:$0xff]   ;;  %v8471_v10 = vld [vmem:[%s9157_s6 + $0x80] ss:$16 sps:$4 sm:$0xff]   ;;  %v8488_v18 = vld [vmem:[%s9157_s6 + $0x4c] ss:$16 sps:$4 sm:$0xff]  }
  0x2b   : > { %v8472_v11 = vld [vmem:[%s9157_s6 + $0xa4] ss:$16 sps:$4 sm:$0xff]   ;;  %v8474_v12 = vld [vmem:[%s9157_s6 + $0xa0] ss:$16 sps:$4 sm:$0xff]   ;;  %v8479_v19 = vld [vmem:[%s12057_s0 + $0x8] sm:$0xff]  }
  0x2c   : > { %1008 = vmatpush1.bf16.msra.mxu0 %v8462_v4  ;;  %v8475_v13 = vld [vmem:[%s12057_s0] sm:$0xff]   ;;  %v8486_v20 = vld [vmem:[%s9157_s6 + $0x48] ss:$16 sps:$4 sm:$0xff]   ;;  %v8493_v21 = vld [vmem:[%s9157_s6 + $0x6c] ss:$16 sps:$4 sm:$0xff]  }
  0x2d   : > { %1009 = vmatprep.subr.bf16.mxu0 %v8463_v5  ;;  %v8491_v22 = vld [vmem:[%s9157_s6 + $0x68] ss:$16 sps:$4 sm:$0xff]   ;;  %v8498_v23 = vld [vmem:[%s9157_s6 + $0x8c] ss:$16 sps:$4 sm:$0xff]   ;;  %v8480_v24 = vld [vmem:[%s12057_s0 + $0x10] sm:$0xff]  }
  0x2e   : > { %v8496_v25 = vld [vmem:[%s9157_s6 + $0x88] ss:$16 sps:$4 sm:$0xff]   ;;  %v8503_v26 = vld [vmem:[%s9157_s6 + $0xac] ss:$16 sps:$4 sm:$0xff]   ;;  %v8485_v29 = vld [vmem:[%s12057_s0 + $0x20] sm:$0xff]  }
  0x2f   : > { %v8501_v27 = vld [vmem:[%s9157_s6 + $0xa8] ss:$16 sps:$4 sm:$0xff]   ;;  %v8490_v31 = vld [vmem:[%s12057_s0 + $0x30] sm:$0xff]   ;;  %v8495_v33 = vld [vmem:[%s12057_s0 + $0x40] sm:$0xff]   ;;  %s8976_s6 = smov 24  }
  0x30   : > { %1010 = vmatpush1.bf16.msra.mxu0 %v8465_v6  ;;  %v8484_v28 = vld [vmem:[%s12057_s0 + $0x18] sm:$0xff]   ;;  %v8489_v30 = vld [vmem:[%s12057_s0 + $0x28] sm:$0xff]   ;;  %v8500_v35 = vld [vmem:[%s12057_s0 + $0x50] sm:$0xff]  }
  0x31   : > { %1011 = vmatprep.subr.bf16.mxu0 %v8466_v7  ;;  %v8494_v32 = vld [vmem:[%s12057_s0 + $0x38] sm:$0xff]   ;;  %v8499_v34 = vld [vmem:[%s12057_s0 + $0x48] sm:$0xff]   ;;  %v9269_v37 = vld [vmem:[%s12058_s29 + $0x40] sm:$0xff]  }
  0x32   : > { %v8504_v36 = vld [vmem:[%s12057_s0 + $0x58] sm:$0xff]   ;;  %12059 = vst [vmem:[#allocation8_spill] sm:$0xff] %v9269_v37  ;;  %v9274_v38 = vld [vmem:[%s12058_s29] sm:$0xff]   ;;  %v9281_v39 = vld [vmem:[%s12058_s29 + $0x48] sm:$0xff]   ;;  %s12098_s0 = sld [smem:[#allocation26_spill]] }
  0x33   : > { %v9286_v40 = vld [vmem:[%s12058_s29 + $0x8] sm:$0xff]   ;;  %v9293_v41 = vld [vmem:[%s12058_s29 + $0x50] sm:$0xff]   ;;  %v9305_v43 = vld [vmem:[%s12058_s29 + $0x58] sm:$0xff]  }
  0x34   : > { %1012 = vmatpush1.bf16.msra.mxu0 %v8468_v8  ;;  %v9298_v42 = vld [vmem:[%s12058_s29 + $0x10] sm:$0xff]   ;;  %v9310_v44 = vld [vmem:[%s12058_s29 + $0x18] sm:$0xff]   ;;  %v9319_v46 = vld [vmem:[%s12058_s29 + $0x60] sm:$0xff]  }
  0x35   : > { %1013 = vmatprep.subr.bf16.mxu0 %v8469_v9  ;;  %v9324_v48 = vld [vmem:[%s12058_s29 + $0x20] sm:$0xff]   ;;  %v9337_v53 = vld [vmem:[%s12058_s29 + $0x68] sm:$0xff]   ;;  %v9351_v56 = vld [vmem:[%s12058_s29 + $0x70] sm:$0xff]  }
  0x36   : > { %v9342_v54 = vld [vmem:[%s12058_s29 + $0x28] sm:$0xff]   ;;  %v9356_v58 = vld [vmem:[%s12058_s29 + $0x30] sm:$0xff]   ;;  %v9369_v63 = vld [vmem:[%s12058_s29 + $0x78] sm:$0xff]  }
  0x37   : > { %v9374_v1 = vld [vmem:[%s12058_s29 + $0x38] sm:$0xff]  }
  0x38   : > { %1014 = vmatpush1.bf16.msra.mxu0 %v8471_v10 }
  0x39   : > { %1015 = vmatprep.subr.bf16.mxu0 %v8472_v11 }
  0x3c   : > { %1016 = vmatpush1.bf16.msra.mxu0 %v8474_v12 }
  0x3d   : > { %1158 = vmatprep.subr.bf16.mxu0 %v8478_v14  ;;  %v9390_v14 = vld [vmem:[%s12058_s29 + $0xc0] sm:$0xff]  }
  0x3e   : > { %12062 = vst [vmem:[#allocation11_spill] sm:$0xff] %v9390_v14  ;;  %7642 = vmatprep.subr.bf16.mxu1 %v9390_v14 }
  0x3f   : > { %7206 = vmatmul.mubr.msk.bf16.vlgmr.msra.gmra.mrb[0].mxu0 %vm968_vm0, %v8475_v13 }
  0x40   : > { %1159 = vmatpush1.bf16.msra.mxu0 %v8476_v15  ;;  %1047 = vmatprep.mubr.bf16.mxu0 %v12018_v0 }
  0x41   : > { %1160 = vmatprep.subr.bf16.mxu0 %v8483_v16  ;;  %v9395_v16 = vld [vmem:[%s12058_s29 + $0x80] sm:$0xff]  }
  0x42   : > { %7643 = vmatpush3.bf16.msra.mxu1 %v9395_v16 }
  0x44   : > { %1161 = vmatpush1.bf16.msra.mxu0 %v8481_v17 }
  0x45   : > { %1162 = vmatprep.subr.bf16.mxu0 %v8488_v18 }
  0x47   : > { %7207 = vmatmul.mubr.msk.bf16.gmra.mrb[4].mxu0 %vm968_vm0, %v8479_v19 }
  0x48   : > { %1057 = vmatprep.mubr.bf16.mxu0 %v12018_v0  ;;  %1163 = vmatpush1.bf16.msra.mxu0 %v8486_v20 }
  0x49   : > { %1164 = vmatprep.subr.bf16.mxu0 %v8493_v21  ;;  %v9404_v21 = vld [vmem:[%s12058_s29 + $0xc8] sm:$0xff]  }
  0x4a   : > { %7644 = vmatprep.subr.bf16.mxu1 %v9404_v21 }
  0x4c   : > { %1165 = vmatpush1.bf16.msra.mxu0 %v8491_v22 }
  0x4d   : > { %1166 = vmatprep.subr.bf16.mxu0 %v8498_v23  ;;  %v9410_v23 = vld [vmem:[%s12058_s29 + $0x88] sm:$0xff]  }
  0x4e   : > { %7645 = vmatpush3.bf16.msra.mxu1 %v9410_v23 }
  0x4f   : > { %7208 = vmatmul.mubr.msk.bf16.gmra.mrb[8].mxu0 %vm968_vm0, %v8480_v24 }
  0x50   : > { %1067 = vmatprep.mubr.bf16.mxu0 %v12018_v0  ;;  %1167 = vmatpush1.bf16.msra.mxu0 %v8496_v25 }
  0x51   : > { %1168 = vmatprep.subr.bf16.mxu0 %v8503_v26  ;;  %v9423_v26 = vld [vmem:[%s12058_s29 + $0x90] sm:$0xff]  }
  0x54   : > { %1169 = vmatpush1.bf16.msra.mxu0 %v8501_v27 }
  0x55   : > { %7608 = vmatprep.subr.bf16.mxu0 %v9269_v37 }
  0x57   : > { %7209 = vmatmul.mubr.msk.bf16.gmra.mrb[12].mxu0 %vm968_vm0, %v8484_v28 }
  0x58   : > { %1077 = vmatprep.mubr.bf16.mxu0 %v12018_v0 }
  0x5f   : > { %7210 = vmatmul.mubr.msk.bf16.gmra.mrb[16].mxu0 %vm968_vm0, %v8485_v29 }
  0x60   : > { %1087 = vmatprep.mubr.bf16.mxu0 %v12018_v0 }
  0x67   : > { %7211 = vmatmul.mubr.msk.bf16.gmra.mrb[20].mxu0 %vm968_vm0, %v8489_v30 }
  0x68   : > { %1097 = vmatprep.mubr.bf16.mxu0 %v12018_v0 }
  0x6f   : > { %7212 = vmatmul.mubr.msk.bf16.gmra.mrb[24].mxu0 %vm968_vm0, %v8490_v31 }
  0x70   : > { %1107 = vmatprep.mubr.bf16.mxu0 %v12018_v0 }
  0x77   : > { %7213 = vmatmul.mubr.msk.bf16.gmra.mrb[28].mxu0 %vm968_vm0, %v8494_v32 }
  0x78   : > { %1117 = vmatprep.mubr.bf16.mxu0 %v12018_v0 }
  0x7f   : > { %7214 = vmatmul.mubr.msk.bf16.gmra.mrb[32].mxu0 %vm968_vm0, %v8495_v33 }
  0x80   : > { %1127 = vmatprep.mubr.bf16.mxu0 %v12018_v0 }
  0x87   : > { %7215 = vmatmul.mubr.msk.bf16.gmra.mrb[36].mxu0 %vm968_vm0, %v8499_v34 }
  0x88   : > { %1137 = vmatprep.mubr.bf16.mxu0 %v12018_v0 }
  0x8f   : > { %7216 = vmatmul.mubr.msk.bf16.gmra.mrb[40].mxu0 %vm968_vm0, %v8500_v35 }
  0x90   : > { %1147 = vmatprep.mubr.bf16.mxu0 %v12018_v0 }
  0x97   : > { %7217 = vmatmul.mubr.msk.bf16.gmra.mrb[44].mxu0 %vm968_vm0, %v8504_v36 }
  0x98   : > { %1190 = vmatprep.mubr.bf16.mxu0 %v12018_v0 }
  0x9f   : > { %7218 = vmatmul.mubr.msk.bf16.vlgmr.msra.gmra.mrb[48].mxu0 %vm968_vm0, %v8475_v13 }
  0xa0   : > { %1200 = vmatprep.mubr.bf16.mxu0 %v12018_v0  ;;  %7609 = vmatpush3.bf16.msra.mxu0 %v9274_v38 }
  0xa1   : > { %7610 = vmatprep.subr.bf16.mxu0 %v9281_v39 }
  0xa4   : > { %7611 = vmatpush3.bf16.msra.mxu0 %v9286_v40 }
  0xa5   : > { %7612 = vmatprep.subr.bf16.mxu0 %v9293_v41 }
  0xa7   : > { %7219 = vmatmul.mubr.msk.bf16.gmra.mrb[52].mxu0 %vm968_vm0, %v8479_v19 }
  0xa8   : > { %1210 = vmatprep.mubr.bf16.mxu0 %v12018_v0  ;;  %7613 = vmatpush3.bf16.msra.mxu0 %v9298_v42 }
  0xa9   : > { %7614 = vmatprep.subr.bf16.mxu0 %v9305_v43 }
  0xac   : > { %7615 = vmatpush3.bf16.msra.mxu0 %v9310_v44 }
  0xad   : > { %7616 = vmatprep.subr.bf16.mxu0 %v9319_v46 }
  0xaf   : > { %7220 = vmatmul.mubr.msk.bf16.gmra.mrb[56].mxu0 %vm968_vm0, %v8480_v24  ;;  %v9418_v24 = vld [vmem:[%s12058_s29 + $0xd0] sm:$0xff]  }
  0xb0   : > { %1220 = vmatprep.mubr.bf16.mxu0 %v12018_v0  ;;  %7617 = vmatpush3.bf16.msra.mxu0 %v9324_v48 }
  0xb1   : > { %7618 = vmatprep.subr.bf16.mxu0 %v9337_v53  ;;  %7646 = vmatprep.subr.bf16.mxu1 %v9418_v24 }
  0xb2   : > { %7647 = vmatpush3.bf16.msra.mxu1 %v9423_v26 }
  0xb4   : > { %7619 = vmatpush3.bf16.msra.mxu0 %v9342_v54 }
  0xb5   : > { %7620 = vmatprep.subr.bf16.mxu0 %v9351_v56 }
  0xb7   : > { %7221 = vmatmul.mubr.msk.bf16.gmra.mrb[60].mxu0 %vm968_vm0, %v8484_v28 }
  0xb8   : > { %1230 = vmatprep.mubr.bf16.mxu0 %v12018_v0  ;;  %7621 = vmatpush3.bf16.msra.mxu0 %v9356_v58 }
  0xb9   : > { %7622 = vmatprep.subr.bf16.mxu0 %v9369_v63 }
  0xbc   : > { %7623 = vmatpush3.bf16.msra.mxu0 %v9374_v1 }
  0xbf   : > { %7222 = vmatmul.mubr.msk.bf16.gmra.mrb[64].mxu0 %vm968_vm0, %v8485_v29 }
  0xc0   : > { %1240 = vmatprep.mubr.bf16.mxu0 %v12018_v0 }
  0xc7   : > { %7223 = vmatmul.mubr.msk.bf16.gmra.mrb[68].mxu0 %vm968_vm0, %v8489_v30 }
  0xc8   : > { %1250 = vmatprep.mubr.bf16.mxu0 %v12018_v0 }
  0xcf   : > { %7224 = vmatmul.mubr.msk.bf16.gmra.mrb[72].mxu0 %vm968_vm0, %v8490_v31  ;;  %v9431_v31 = vld [vmem:[%s12058_s29 + $0xd8] sm:$0xff]  }
  0xd0   : > { %1260 = vmatprep.mubr.bf16.mxu0 %v12018_v0  ;;  %7648 = vmatprep.subr.bf16.mxu1 %v9431_v31 }
  0xd7   : > { %7225 = vmatmul.mubr.msk.bf16.gmra.mrb[76].mxu0 %vm968_vm0, %v8494_v32 }
  0xd8   : > { %1270 = vmatprep.mubr.bf16.mxu0 %v12018_v0 }
  0xdf   : > { %7226 = vmatmul.mubr.msk.bf16.gmra.mrb[80].mxu0 %vm968_vm0, %v8495_v33  ;;  %v9436_v33 = vld [vmem:[%s12058_s29 + $0x98] sm:$0xff]  }
  0xe0   : > { %1280 = vmatprep.mubr.bf16.mxu0 %v12018_v0  ;;  %7649 = vmatpush3.bf16.msra.mxu1 %v9436_v33 }
  0xe7   : > { %7227 = vmatmul.mubr.msk.bf16.gmra.mrb[84].mxu0 %vm968_vm0, %v8499_v34  ;;  %v9444_v34 = vld [vmem:[%s12058_s29 + $0xe0] sm:$0xff]  }
  0xe8   : > { %1290 = vmatprep.mubr.bf16.mxu0 %v12018_v0  ;;  %7650 = vmatprep.subr.bf16.mxu1 %v9444_v34 }
  0xef   : > { %7228 = vmatmul.mubr.msk.bf16.gmra.mrb[88].mxu0 %vm968_vm0, %v8500_v35 }
  0xf0   : > { %1300 = vmatprep.mubr.bf16.mxu0 %v12018_v0 }
  0xf7   : > { %7229 = vmatmul.mubr.msk.bf16.gmra.mrb[92].mxu0 %vm968_vm0, %v8504_v36  ;;  %v9449_v36 = vld [vmem:[%s12058_s29 + $0xa0] sm:$0xff]  }
  0xf8   : > { %7651 = vmatpush3.bf16.msra.mxu1 %v9449_v36 }
 0x112   : > { %v9314_v45 = vpop.f32.mrb[0].mxu0 }
 0x113   : > { %v1041_v47 = vpop.f32.mrb[1].mxu0 }
 0x114   : > { %v9326_v49 = vpop.f32.mrb[2].mxu0 }
 0x115   : > { %v1045_v51 = vpop.f32.mrb[3].mxu0 }
 0x116   : > { %v9332_v52 = vpack.c.bf16 %v1045_v51, %v1041_v47 }
 0x11a   : > { %v9346_v55 = vpop.f32.mrb[4].mxu0 }
 0x11b   : > { %v1051_v57 = vpop.f32.mrb[5].mxu0 }
 0x11c   : > { %v9358_v59 = vpop.f32.mrb[6].mxu0 }
 0x11d   : > { %v1055_v61 = vpop.f32.mrb[7].mxu0 }
 0x11e   : > { %v9364_v62 = vpack.c.bf16 %v1055_v61, %v1051_v57 }
 0x120   : > { %12060 = vst [vmem:[#allocation9_spill] sm:$0xff] %v9364_v62 }
 0x122   : > { %v9378_v2 = vpop.f32.mrb[8].mxu0 }
 0x123   : > { %v1061_v3 = vpop.f32.mrb[9].mxu0 }
 0x124   : > { %v9380_v4 = vpop.f32.mrb[10].mxu0 }
 0x125   : > { %v1065_v6 = vpop.f32.mrb[11].mxu0 }
 0x126   : > { %v9384_v7 = vpack.c.bf16 %v1065_v6, %v1061_v3  ;;  %v9456_v3 = vld [vmem:[%s12058_s29 + $0xe8] sm:$0xff]  }
 0x127   : > { %7652 = vmatprep.subr.bf16.mxu1 %v9456_v3 }
 0x128   : > { %12061 = vst [vmem:[#allocation10_spill] sm:$0xff] %v9384_v7 }
 0x12a   : > { %v1069_v8 = vpop.f32.mrb[12].mxu0 }
 0x12b   : > { %v1071_v9 = vpop.f32.mrb[13].mxu0 }
 0x12c   : > { %v1073_v10 = vpop.f32.mrb[14].mxu0 }
 0x12d   : > { %v1323_v11 = vpack.c.bf16 %v1073_v10, %v1069_v8  ;;  %v1075_v12 = vpop.f32.mrb[15].mxu0  ;;  %v9461_v8 = vld [vmem:[%s12058_s29 + $0xa8] sm:$0xff]  }
 0x12e   : > { %v1324_v13 = vpack.c.bf16 %v1075_v12, %v1071_v9  ;;  %7653 = vmatpush3.bf16.msra.mxu1 %v9461_v8  ;;  %v9469_v9 = vld [vmem:[%s12058_s29 + $0xf0] sm:$0xff]  }
 0x12f   : > { %1433 = vrot.lane.b32.xlu0 %v1323_v11, %s12039_s1  ;;  %v9474_v11 = vld [vmem:[%s12058_s29 + $0xb0] sm:$0xff]   ;;  %7654 = vmatprep.subr.bf16.mxu1 %v9469_v9 }
 0x132   : > { %v1079_v15 = vpop.f32.mrb[16].mxu0  ;;  %7655 = vmatpush3.bf16.msra.mxu1 %v9474_v11 }
 0x133   : > { %v9397_v17 = vpop.f32.mrb[17].mxu0 }
 0x134   : > { %v1083_v18 = vpop.f32.mrb[18].mxu0 }
 0x135   : > { %v1327_v19 = vpack.c.bf16 %v1083_v18, %v1079_v15  ;;  %v1085_v20 = vpop.f32.mrb[19].mxu0  ;;  %v9482_v18 = vld [vmem:[%s12058_s29 + $0xf8] sm:$0xff]  }
 0x136   : > { %v1328_v22 = vpack.c.bf16 %v1085_v20, %v9397_v17  ;;  %v9487_v20 = vld [vmem:[%s12058_s29 + $0xb8] sm:$0xff]   ;;  %7656 = vmatprep.subr.bf16.mxu1 %v9482_v18 }
 0x137   : > { %1437 = vrot.lane.b32.xlu0 %v1327_v19, %s12039_s1  ;;  %12063 = vst [vmem:[#allocation12_spill] sm:$0xff] %v9487_v20  ;;  %7657 = vmatpush3.bf16.msra.mxu1 %v9487_v20 }
 0x138   : > { %7681 = vmatprep.subr.bf16.mxu1 %v9269_v37 }
 0x13a   : > { %v1089_v25 = vpop.f32.mrb[20].mxu0 }
 0x13b   : > { %1435 = vrot.lane.b32.xlu0 %v1324_v13, %s12039_s1  ;;  %v1091_v27 = vpop.f32.mrb[21].mxu0 }
 0x13c   : > { %v1093_v28 = vpop.f32.mrb[22].mxu0 }
 0x13d   : > { %v1331_v29 = vpack.c.bf16 %v1093_v28, %v1089_v25  ;;  %v1095_v30 = vpop.f32.mrb[23].mxu0  ;;  %v12020_v25 = vmov 0.0  }
 0x13e   : > { %v1332_v32 = vpack.c.bf16 %v1095_v30, %v1091_v27  ;;  %8237 = vmatprep.subr.bf16.mxu0 %v12020_v25 }
 0x13f   : > { %1441 = vrot.lane.b32.xlu0 %v1331_v29, %s12039_s1 }
 0x142   : > { %v1099_v35 = vpop.f32.mrb[24].mxu0 }
 0x143   : > { %v1101_v47 = vpop.f32.mrb[25].mxu0 }
 0x144   : > { %v1103_v51 = vpop.f32.mrb[26].mxu0 }
 0x145   : > { %v1335_v57 = vpack.c.bf16 %v1103_v51, %v1099_v35  ;;  %v1105_v61 = vpop.f32.mrb[27].mxu0 }
 0x146   : > { %v1336_v6 = vpack.c.bf16 %v1105_v61, %v1101_v47 }
 0x147   : > { %1455 = vrot.lane.b32.xlu1 %v1335_v57, %s12037_s24 }
 0x14a   : > { %v1109_v10 = vpop.f32.mrb[28].mxu0 }
 0x14b   : > { %1457 = vrot.lane.b32.xlu1 %v1336_v6, %s12037_s24  ;;  %v1111_v12 = vpop.f32.mrb[29].mxu0 }
 0x14c   : > { %v1113_v13 = vpop.f32.mrb[30].mxu0 }
 0x14d   : > { %v1339_v15 = vpack.c.bf16 %v1113_v13, %v1109_v10  ;;  %v1115_v17 = vpop.f32.mrb[31].mxu0 }
 0x14e   : > { %v1340_v19 = vpack.c.bf16 %v1115_v17, %v1111_v12 }
 0x14f   : > { %1459 = vrot.lane.b32.xlu0 %v1339_v15, %s12037_s24 }
 0x152   : > { %v1119_v27 = vpop.f32.mrb[32].mxu0 }
 0x153   : > { %1439 = vrot.lane.b32.xlu0 %v1328_v22, %s12039_s1  ;;  %v1121_v28 = vpop.f32.mrb[33].mxu0 }
 0x154   : > { %v1123_v29 = vpop.f32.mrb[34].mxu0 }
 0x155   : > { %v1343_v30 = vpack.c.bf16 %v1123_v29, %v1119_v27  ;;  %v1125_v35 = vpop.f32.mrb[35].mxu0 }
 0x156   : > { %v1344_v47 = vpack.c.bf16 %v1125_v35, %v1121_v28 }
 0x157   : > { %1463 = vrot.lane.b32.xlu0 %v1343_v30, %s12037_s24 }
 0x15a   : > { %v1129_v51 = vpop.f32.mrb[36].mxu0 }
 0x15b   : > { %1443 = vrot.lane.b32.xlu0 %v1332_v32, %s12039_s1  ;;  %v1131_v57 = vpop.f32.mrb[37].mxu0 }
 0x15c   : > { %v1133_v61 = vpop.f32.mrb[38].mxu0 }
 0x15d   : > { %v1347_v6 = vpack.c.bf16 %v1133_v61, %v1129_v51  ;;  %v1135_v10 = vpop.f32.mrb[39].mxu0 }
 0x15e   : > { %v1348_v12 = vpack.c.bf16 %v1135_v10, %v1131_v57 }
 0x15f   : > { %1477 = vrot.lane.b32.xlu1 %v1347_v6, %s8976_s6 }
 0x162   : > { %v1139_v13 = vpop.f32.mrb[40].mxu0 }
 0x163   : > { %1479 = vrot.lane.b32.xlu1 %v1348_v12, %s8976_s6  ;;  %v1141_v22 = vpop.f32.mrb[41].mxu0 }
 0x164   : > { %v1143_v15 = vpop.f32.mrb[42].mxu0 }
 0x165   : > { %v1351_v17 = vpack.c.bf16 %v1143_v15, %v1139_v13  ;;  %v1145_v27 = vpop.f32.mrb[43].mxu0 }
 0x166   : > { %v1352_v28 = vpack.c.bf16 %v1145_v27, %v1141_v22 }
 0x167   : > { %1461 = vrot.lane.b32.xlu1 %v1340_v19, %s12037_s24 }
 0x168   : > { %1483 = vrot.lane.b32.xlu0 %v1352_v28, %s8976_s6 }
 0x16a   : > { %v1149_v32 = vpop.f32.mrb[44].mxu0 }
 0x16b   : > { %1481 = vrot.lane.b32.xlu1 %v1351_v17, %s8976_s6  ;;  %v1151_v29 = vpop.f32.mrb[45].mxu0 }
 0x16c   : > { %v1153_v30 = vpop.f32.mrb[46].mxu0 }
 0x16d   : > { %v1355_v35 = vpack.c.bf16 %v1153_v30, %v1149_v32  ;;  %v1155_v51 = vpop.f32.mrb[47].mxu0 }
 0x16e   : > { %v1356_v57 = vpack.c.bf16 %v1155_v51, %v1151_v29 }
 0x16f   : > { %1465 = vrot.lane.b32.xlu1 %v1344_v47, %s12037_s24 }
 0x172   : > { %v1192_v61 = vpop.f32.mrb[48].mxu0 }
 0x173   : > { %1485 = vrot.lane.b32.xlu1 %v1355_v35, %s8976_s6  ;;  %v9504_v6 = vpop.f32.mrb[49].mxu0 }
 0x174   : > { %12064 = vst [vmem:[#allocation13_spill] sm:$0xff] %v9504_v6  ;;  %v1196_v10 = vpop.f32.mrb[50].mxu0  ;;  %v12073_v6 = vmov 0.0  }
 0x175   : > { %v9506_v12 = vpack.c.bf16 %v1196_v10, %v1192_v61  ;;  %v9508_v19 = vpop.f32.mrb[51].mxu0 }
 0x176   : > { %12065 = vst [vmem:[#allocation14_spill] sm:$0xff] %v9508_v19 }
 0x177   : > { %1487 = vrot.lane.b32.xlu1 %v1356_v57, %s8976_s6 }
 0x17a   : > { %v1202_v22 = vpop.f32.mrb[52].mxu0 }
 0x17b   : > { %v9513_v15 = vpop.f32.mrb[53].mxu0 }
 0x17c   : > { %12066 = vst [vmem:[#allocation15_spill] sm:$0xff] %v9513_v15  ;;  %v1206_v17 = vpop.f32.mrb[54].mxu0  ;;  %v9566_v15 = vld [vmem:[%s12058_s29 + $0x108] sm:$0xff]  }
 0x17d   : > { %v9515_v47 = vpack.c.bf16 %v1206_v17, %v1202_v22  ;;  %v9517_v27 = vpop.f32.mrb[55].mxu0  ;;  %12072 = vst [vmem:[#allocation20_spill] sm:$0xff] %v9566_v15 }
 0x17e   : > { %12067 = vst [vmem:[#allocation16_spill] sm:$0xff] %v9517_v27 }
 0x182   : > { %v1212_v32 = vpop.f32.mrb[56].mxu0 }
 0x183   : > { %v9521_v29 = vpop.f32.mrb[57].mxu0 }
 0x184   : > { %12068 = vst [vmem:[#allocation17_spill] sm:$0xff] %v9521_v29  ;;  %v1216_v30 = vpop.f32.mrb[58].mxu0 }
 0x185   : > { %v9523_v35 = vpack.c.bf16 %v1216_v30, %v1212_v32  ;;  %v9525_v51 = vpop.f32.mrb[59].mxu0 }
 0x186   : > { %12070 = vst [vmem:[#allocation19_spill] sm:$0xff] %v9525_v51 }
 0x187   : > { %12069 = vst [vmem:[#allocation18_spill] sm:$0xff] %v9523_v35 }
 0x18a   : > { %v1222_v61 = vpop.f32.mrb[60].mxu0 }
 0x18b   : > { %v9529_v10 = vpop.f32.mrb[61].mxu0 }
 0x18c   : > { %v1226_v22 = vpop.f32.mrb[62].mxu0 }
 0x18d   : > { %v1325_v17 = vpack.c.bf16 %v1226_v22, %v1222_v61  ;;  %v9531_v0 = vpop.f32.mrb[63].mxu0 }
 0x18f   : > { %1920 = vrot.lane.b32.xlu1 %v1325_v17, %s12039_s1 }
 0x192   : > { %v1232_v13 = vpop.f32.mrb[64].mxu0 }
 0x193   : > { %v9536_v32 = vpop.f32.mrb[65].mxu0 }
 0x194   : > { %v1236_v30 = vpop.f32.mrb[66].mxu0 }
 0x195   : > { %v1329_v5 = vpack.c.bf16 %v1236_v30, %v1232_v13  ;;  %v9538_v60 = vpop.f32.mrb[67].mxu0  ;;  %v9554_v13 = vld [vmem:[%s12058_s29 + $0x100] sm:$0xff]   ;;  %s12099_s29 = smov 8  }
 0x197   : > { %1922 = vrot.lane.b32.xlu1 %v1329_v5, %s12039_s1 }
 0x19a   : > { %v1242_v61 = vpop.f32.mrb[68].mxu0 }
 0x19b   : > { %v9543_v22 = vpop.f32.mrb[69].mxu0 }
 0x19c   : > { %v1246_v25 = vpop.f32.mrb[70].mxu0 }
 0x19d   : > { %v1333_v50 = vpack.c.bf16 %v1246_v25, %v1242_v61  ;;  %v9545_v28 = vpop.f32.mrb[71].mxu0  ;;  %v12071_v61 = vpack.c.bf16 %v9326_v49, %v9314_v45 }
 0x1a1   : > { %v9549_v29 = vpop.permute.xlu0 %1433 }
 0x1a2   : > { %v1252_v30 = vpop.f32.mrb[72].mxu0  ;;  %v1496_v5 = vsel %vm1445_vm1, %v9332_v52, %v9549_v29 }
 0x1a3   : > { %v1254_v57 = vpop.f32.mrb[73].mxu0  ;;  %1778 = vmatprep.mubr.bf16.mxu0 %v1496_v5 }
 0x1a4   : > { %v1256_v25 = vpop.f32.mrb[74].mxu0  ;;  %1779 = vmatmul.mubr.bf16.vlgmr.msra.gmra.mrb[96].mxu0 %v12071_v61 }
 0x1a5   : > { %v1337_v17 = vpack.c.bf16 %v1256_v25, %v1252_v30  ;;  %v1258_v51 = vpop.f32.mrb[75].mxu0  ;;  %8238 = vmatpush3.bf16.msra.mxu0 %v9554_v13 }
 0x1a6   : > { %v1338_v27 = vpack.c.bf16 %v1258_v51, %v1254_v57  ;;  %8239 = vmatprep.subr.bf16.mxu0 %v12073_v6  ;;  %v12074_v51 = vpack.c.bf16 %v9358_v59, %v9346_v55  ;;  %v12075_v59 = vpack.c.bf16 %v9380_v4, %v9378_v2 }
 0x1a7   : > { %1932 = vrot.lane.b32.xlu0 %v1337_v17, %s12037_s24 }
 0x1a9   : > { %v9570_v5 = vpop.permute.xlu0 %1437  ;;  %8240 = vmatpush3.bf16.msra.mxu0 %v9566_v15 }
 0x1aa   : > { %v1262_v45 = vpop.f32.mrb[76].mxu0  ;;  %v1500_v49 = vsel %vm1445_vm1, %v9364_v62, %v9570_v5  ;;  %7715 = vmatprep.subr.bf16.mxu0 %v9390_v14 }
 0x1ab   : > { %v9577_v30 = vpop.f32.mrb[77].mxu0  ;;  %1786 = vmatprep.mubr.bf16.mxu0 %v1500_v49 }
 0x1ac   : > { %v1266_v25 = vpop.f32.mrb[78].mxu0  ;;  %1787 = vmatmul.mubr.bf16.gmra.mrb[100].mxu0 %v12074_v51 }
 0x1ad   : > { %v1341_v57 = vpack.c.bf16 %v1266_v25, %v1262_v45  ;;  %v9582_v17 = vpop.permute.xlu0 %1435  ;;  %v9584_v61 = vpop.f32.mrb[79].mxu0 }
 0x1ae   : > { %v1342_v19 = vpack.c.bf16 %v9584_v61, %v9577_v30 }
 0x1af   : > { %1934 = vrot.lane.b32.xlu0 %v1341_v57, %s12037_s24 }
 0x1b1   : > { %v9589_v35 = vpop.permute.xlu0 %1441 }
 0x1b2   : > { %v1272_v62 = vpop.f32.mrb[80].mxu0  ;;  %v1504_v49 = vsel %vm1445_vm1, %v9384_v7, %v9589_v35 }
 0x1b3   : > { %v1274_v14 = vpop.f32.mrb[81].mxu0  ;;  %1794 = vmatprep.mubr.bf16.mxu0 %v1504_v49 }
 0x1b4   : > { %v1276_v55 = vpop.f32.mrb[82].mxu0  ;;  %1795 = vmatmul.mubr.bf16.gmra.mrb[104].mxu0 %v12075_v59 }
 0x1b5   : > { %v1345_v45 = vpack.c.bf16 %v1276_v55, %v1272_v62  ;;  %v1278_v25 = vpop.f32.mrb[83].mxu0  ;;  %8241 = vmatprep.mubr.msk.bf16.mxu0 %vm8977_vm2, %v12073_v6 }
 0x1b6   : > { %v1346_v30 = vpack.c.bf16 %v1278_v25, %v1274_v14 }
 0x1b7   : > { %1936 = vrot.lane.b32.xlu1 %v1345_v45, %s12037_s24 }
 0x1b9   : > { %v1456_v59 = vpop.permute.xlu1 %1455 }
 0x1ba   : > { %v1282_v51 = vpop.f32.mrb[84].mxu0 }
 0x1bb   : > { %v1284_v57 = vpop.f32.mrb[85].mxu0 }
 0x1bc   : > { %v1286_v61 = vpop.f32.mrb[86].mxu0 }
 0x1bd   : > { %v1349_v7 = vpack.c.bf16 %v1286_v61, %v1282_v51  ;;  %v1288_v15 = vpop.f32.mrb[87].mxu0  ;;  %v9604_v51 = vpop.permute.xlu1 %1457 }
 0x1be   : > { %v1350_v49 = vpack.c.bf16 %v1288_v15, %v1284_v57 }
 0x1bf   : > { %1944 = vrot.lane.b32.xlu0 %v1349_v7, %s8976_s6 }
 0x1c1   : > { %v1460_v14 = vpop.permute.xlu0 %1459 }
 0x1c2   : > { %v1292_v37 = vpop.f32.mrb[88].mxu0 }
 0x1c3   : > { %1924 = vrot.lane.b32.xlu0 %v1333_v50, %s12039_s1  ;;  %v1294_v62 = vpop.f32.mrb[89].mxu0 }
 0x1c4   : > { %v1296_v2 = vpop.f32.mrb[90].mxu0 }
 0x1c5   : > { %v1353_v4 = vpack.c.bf16 %v1296_v2, %v1292_v37  ;;  %v1298_v55 = vpop.f32.mrb[91].mxu0  ;;  %v9606_v7 = vpop.permute.xlu0 %1439 }
 0x1c6   : > { %v1354_v20 = vpack.c.bf16 %v1298_v55, %v1294_v62  ;;  %v1468_v62 = vsel %vm1467_vm4, %v1456_v59, %v9604_v51 }
 0x1c7   : > { %1946 = vrot.lane.b32.xlu1 %v1353_v4, %s8976_s6 }
 0x1c9   : > { %v1464_v4 = vpop.permute.xlu0 %1463 }
 0x1ca   : > { %v1302_v45 = vpop.f32.mrb[92].mxu0 }
 0x1cb   : > { %2184 = vrot.lane.b32.xlu1 %v1338_v27, %s12037_s24  ;;  %v1304_v25 = vpop.f32.mrb[93].mxu0  ;;  %v1446_v27 = vsel %vm1445_vm1, %v9549_v29, %v9582_v17 }
 0x1cc   : > { %v1306_v15 = vpop.f32.mrb[94].mxu0  ;;  %v1509_v55 = vsel %vm1467_vm4, %v1446_v27, %v1456_v59  ;;  %v1959_v27 = vsel %vm1445_vm1, %v9515_v47, %v9606_v7 }
 0x1cd   : > { %v1357_v57 = vpack.c.bf16 %v1306_v15, %v1302_v45  ;;  %v1308_v50 = vpop.f32.mrb[95].mxu0  ;;  %v12077_v45 = vpack.c.bf16 %v9531_v0, %v9529_v10  ;;  %v9636_v0 = vpop.permute.xlu0 %1443 }
 0x1ce   : > { %v1358_v61 = vpack.c.bf16 %v1308_v50, %v1304_v25 }
 0x1cf   : > { %2196 = vrot.lane.b32.xlu1 %v1350_v49, %s8976_s6  ;;  %1948 = vrot.lane.b32.xlu0 %v1357_v57, %s8976_s6  ;;  %v12076_v49 = vpack.c.bf16 %v9538_v60, %v9536_v32 }
 0x1d1   : > { %v1478_v37 = vpop.permute.xlu1 %1477 }
 0x1d2   : > { %v1522_v2 = vsel %vm1489_vm3, %v1468_v62, %v1478_v37 }
 0x1d3   : > { %1835 = vmatprep.mubr.bf16.mxu1 %v1522_v2  ;;  %2174 = vrot.lane.b32.xlu1 %v12076_v49, %s12039_s1  ;;  %v12079_v2 = vld [vmem:[#allocation12_spill] sm:$0xff] }
 0x1d4   : > { %2172 = vrot.lane.b32.xlu0 %v12077_v45, %s12039_s1  ;;  %1836 = vmatmul.mubr.bf16.vlgmr.msra.gmra.mrb[0].mxu1 %v1509_v55  ;;  %v12081_v49 = vld [vmem:[#allocation20_spill] sm:$0xff]  ;;  %v12082_v55 = vld [vmem:[#allocation11_spill] sm:$0xff]  ;;  %v12083_v45 = vld [vmem:[#allocation9_spill] sm:$0xff] }
 0x1d5   : > { %7682 = vmatpush3.bf16.msra.mxu1 %v9274_v38  ;;  %v9626_v29 = vpop.permute.xlu1 %1479 }
 0x1d6   : > { %v1490_v25 = vsel %vm1489_vm3, %v1478_v37, %v9626_v29  ;;  %7683 = vmatprep.subr.bf16.mxu1 %v9281_v39 }
 0x1d7   : > { %8242 = vmatmul.mubr.msk.bf16.vlgmr.msra.gmra.mrb[108].mxu0 %vm1736_vm5, %v1490_v25  ;;  %2188 = vrot.lane.b32.xlu1 %v1346_v30, %s12037_s24 }
 0x1d8   : > { %2186 = vrot.lane.b32.xlu0 %v1342_v19, %s12037_s24  ;;  %8245 = vmatprep.mubr.msk.bf16.mxu0 %vm8977_vm2, %v12073_v6  ;;  %v1447_v19 = vsel %vm1445_vm1, %v9570_v5, %v9606_v7  ;;  %v12078_v5 = vpack.c.bf16 %v9545_v28, %v9543_v22 }
 0x1d9   : > { %7684 = vmatpush3.bf16.msra.mxu1 %v9286_v40  ;;  %v9639_v60 = vpop.permute.xlu1 %1461  ;;  %7716 = vmatpush3.bf16.msra.mxu0 %v9395_v16 }
 0x1da   : > { %7685 = vmatprep.subr.bf16.mxu1 %v9293_v41  ;;  %7717 = vmatprep.subr.bf16.mxu0 %v9404_v21  ;;  %v1469_v10 = vsel %vm1467_vm4, %v1460_v14, %v9639_v60  ;;  %v9651_v32 = vpop.permute.xlu0 %1483 }
 0x1db   : > { %2200 = vrot.lane.b32.xlu1 %v1358_v61, %s8976_s6 }
 0x1dc   : > { %2198 = vrot.lane.b32.xlu0 %v1354_v20, %s8976_s6  ;;  %v1513_v20 = vsel %vm1467_vm4, %v1447_v19, %v1460_v14  ;;  %v1448_v14 = vsel %vm1445_vm1, %v9589_v35, %v9636_v0  ;;  %v1955_v35 = vsel %vm1445_vm1, %v9506_v12, %v9582_v17  ;;  %v12085_v19 = vld [vmem:[#allocation10_spill] sm:$0xff] }
 0x1dd   : > { %7686 = vmatpush3.bf16.msra.mxu1 %v9298_v42  ;;  %v1482_v30 = vpop.permute.xlu1 %1481  ;;  %7718 = vmatpush3.bf16.msra.mxu0 %v9410_v23  ;;  %v1517_v61 = vsel %vm1467_vm4, %v1448_v14, %v1464_v4 }
 0x1de   : > { %v1491_v59 = vsel %vm1489_vm3, %v1482_v30, %v9651_v32  ;;  %v1526_v15 = vsel %vm1489_vm3, %v1469_v10, %v1482_v30  ;;  %7687 = vmatprep.subr.bf16.mxu1 %v9305_v43  ;;  %7719 = vmatprep.subr.bf16.mxu0 %v9418_v24 }
 0x1df   : > { %1843 = vmatprep.mubr.bf16.mxu1 %v1526_v15  ;;  %8246 = vmatmul.mubr.msk.bf16.gmra.mrb[112].mxu0 %vm1736_vm5, %v1491_v59 }
 0x1e0   : > { %2176 = vrot.lane.b32.xlu0 %v12078_v5, %s12039_s1  ;;  %1844 = vmatmul.mubr.bf16.gmra.mrb[4].mxu1 %v1513_v20  ;;  %s725_s1 = sand.u32 1, %s8962_s30  }
 0x1e1   : > { %7688 = vmatpush3.bf16.msra.mxu1 %v9310_v44  ;;  %v9667_v57 = vpop.permute.xlu1 %1465  ;;  %8249 = vmatprep.mubr.msk.bf16.mxu0 %vm8977_vm2, %v12073_v6 }
 0x1e2   : > { %7689 = vmatprep.subr.bf16.mxu1 %v9319_v46  ;;  %7720 = vmatpush3.bf16.msra.mxu0 %v9423_v26  ;;  %v1470_v28 = vsel %vm1467_vm4, %v1464_v4, %v9667_v57  ;;  %v12080_v4 = vld [vmem:[#allocation8_spill] sm:$0xff] }
 0x1e3   : > { %7721 = vmatprep.subr.bf16.mxu0 %v9431_v31 }
 0x1e5   : > { %7690 = vmatpush3.bf16.msra.mxu1 %v9324_v48  ;;  %v1486_v22 = vpop.permute.xlu1 %1485 }
 0x1e6   : > { %v1530_v50 = vsel %vm1489_vm3, %v1470_v28, %v1486_v22  ;;  %7691 = vmatprep.subr.bf16.mxu1 %v9337_v53  ;;  %7722 = vmatpush3.bf16.msra.mxu0 %v9436_v33 }
 0x1e7   : > { %1851 = vmatprep.mubr.bf16.mxu1 %v1530_v50  ;;  %7723 = vmatprep.subr.bf16.mxu0 %v9444_v34 }
 0x1e8   : > { %1852 = vmatmul.mubr.bf16.gmra.mrb[8].mxu1 %v1517_v61 }
 0x1e9   : > { %7692 = vmatpush3.bf16.msra.mxu1 %v9342_v54  ;;  %v9689_v37 = vpop.permute.xlu1 %1487  ;;  %2030 = vmatprep.mubr.bf16.mxu1 %v1955_v35 }
 0x1ea   : > { %v1492_v62 = vsel %vm1489_vm3, %v1486_v22, %v9689_v37  ;;  %7693 = vmatprep.subr.bf16.mxu1 %v9351_v56  ;;  %7724 = vmatpush3.bf16.msra.mxu0 %v9449_v36 }
 0x1eb   : > { %8250 = vmatmul.mubr.msk.bf16.gmra.mrb[116].mxu0 %vm1736_vm5, %v1492_v62  ;;  %7725 = vmatprep.subr.bf16.mxu0 %v9456_v3 }
 0x1ed   : > { %7694 = vmatpush3.bf16.msra.mxu1 %v9356_v58 }
 0x1ee   : > { %7695 = vmatprep.subr.bf16.mxu1 %v9369_v63  ;;  %7726 = vmatpush3.bf16.msra.mxu0 %v9461_v8 }
 0x1ef   : > { %7727 = vmatprep.subr.bf16.mxu0 %v9469_v9 }
 0x1f1   : > { %7696 = vmatpush3.bf16.msra.mxu1 %v9374_v1 }
 0x1f2   : > { %7728 = vmatpush3.bf16.msra.mxu0 %v9474_v11  ;;  %8253 = vmatprep.subr.bf16.mxu1 %v12073_v6 }
 0x1f3   : > { %7729 = vmatprep.subr.bf16.mxu0 %v9482_v18 }
 0x1f4   : > { %2031 = vmatmul.mubr.bf16.vlgmr.msra.gmra.mrb[12].mxu1 %v9332_v52  ;;  %v12084_v52 = vld [vmem:[#allocation18_spill] sm:$0xff] }
 0x1f5   : > { %2038 = vmatprep.mubr.bf16.mxu1 %v1959_v27  ;;  %8254 = vmatpush3.bf16.msra.mxu1 %v9554_v13  ;;  %v1963_v25 = vsel %vm1445_vm1, %v12084_v52, %v9636_v0 }
 0x1f6   : > { %7730 = vmatpush3.bf16.msra.mxu0 %v12079_v2  ;;  %8255 = vmatprep.subr.bf16.mxu1 %v12073_v6 }
 0x1f7   : > { %7754 = vmatprep.subr.bf16.mxu0 %v12080_v4 }
 0x1f9   : > { %8256 = vmatpush3.bf16.msra.mxu1 %v12081_v49 }
 0x1fa   : > { %7788 = vmatprep.subr.bf16.mxu1 %v12082_v55 }
 0x1fc   : > { %2039 = vmatmul.mubr.bf16.gmra.mrb[16].mxu1 %v12083_v45  ;;  %v12095_v45 = vmov 0  }
 0x1fd   : > { %2046 = vmatprep.mubr.bf16.mxu1 %v1963_v25 }
 0x201   : > { %v9722_v10 = vpop.permute.xlu1 %1920 }
 0x202   : > { %v1926_v30 = vsel %vm1445_vm1, %v9582_v17, %v9722_v10 }
 0x203   : > { %v1967_v5 = vsel %vm1467_vm4, %v1926_v30, %v9604_v51 }
 0x204   : > { %2047 = vmatmul.mubr.bf16.gmra.mrb[20].mxu1 %v12085_v19 }
 0x205   : > { %8257 = vmatprep.mubr.msk.bf16.mxu1 %vm8977_vm2, %v12073_v6 }
 0x209   : > { %v9736_v14 = vpop.permute.xlu1 %1922 }
 0x20a   : > { %v1927_v17 = vsel %vm1445_vm1, %v9606_v7, %v9736_v14 }
 0x219   : > { %v9727_v59 = vpop.permute.xlu0 %1932 }
 0x21a   : > { %v1938_v15 = vsel %vm1467_vm4, %v9604_v51, %v9727_v59 }
 0x21b   : > { %v1979_v20 = vsel %vm1489_vm3, %v1938_v15, %v9626_v29 }
 0x21c   : > { %2087 = vmatprep.mubr.bf16.mxu0 %v1979_v20 }
 0x21d   : > { %2088 = vmatmul.mubr.bf16.vlgmr.msra.gmra.mrb[120].mxu0 %v1967_v5 }
 0x21e   : > { %7755 = vmatpush3.bf16.msra.mxu0 %v9274_v38  ;;  %v1971_v38 = vsel %vm1467_vm4, %v1927_v17, %v9639_v60 }
 0x21f   : > { %7756 = vmatprep.subr.bf16.mxu0 %v9281_v39 }
 0x221   : > { %v9743_v28 = vpop.permute.xlu0 %1934 }
 0x222   : > { %v1939_v22 = vsel %vm1467_vm4, %v9639_v60, %v9743_v28  ;;  %7757 = vmatpush3.bf16.msra.mxu0 %v9286_v40 }
 0x223   : > { %v1983_v51 = vsel %vm1489_vm3, %v1939_v22, %v9651_v32  ;;  %7758 = vmatprep.subr.bf16.mxu0 %v9293_v41 }
 0x224   : > { %2095 = vmatprep.mubr.bf16.mxu0 %v1983_v51 }
 0x225   : > { %2096 = vmatmul.mubr.bf16.gmra.mrb[124].mxu0 %v1971_v38 }
 0x226   : > { %7759 = vmatpush3.bf16.msra.mxu0 %v9298_v42 }
 0x227   : > { %7760 = vmatprep.subr.bf16.mxu0 %v9305_v43 }
 0x229   : > { %v9756_v39 = vpop.permute.xlu1 %1936 }
 0x22a   : > { %v1940_v40 = vsel %vm1467_vm4, %v9667_v57, %v9756_v39  ;;  %7761 = vmatpush3.bf16.msra.mxu0 %v9310_v44 }
 0x22b   : > { %v1987_v41 = vsel %vm1489_vm3, %v1940_v40, %v9689_v37  ;;  %7762 = vmatprep.subr.bf16.mxu0 %v9319_v46 }
 0x22c   : > { %2103 = vmatprep.mubr.bf16.mxu0 %v1987_v41 }
 0x22e   : > { %7763 = vmatpush3.bf16.msra.mxu0 %v9324_v48 }
 0x22f   : > { %7764 = vmatprep.subr.bf16.mxu0 %v9337_v53  ;;  %v12086_v53 = vld [vmem:[#allocation14_spill] sm:$0xff] }
 0x231   : > { %v9767_v42 = vpop.permute.xlu0 %1944 }
 0x232   : > { %v1950_v43 = vsel %vm1489_vm3, %v9626_v29, %v9767_v42  ;;  %7765 = vmatpush3.bf16.msra.mxu0 %v9342_v54  ;;  %v12087_v54 = vld [vmem:[#allocation13_spill] sm:$0xff] }
 0x233   : > { %8258 = vmatmul.mubr.msk.bf16.vlgmr.msra.gmra.mrb[24].mxu1 %vm1736_vm5, %v1950_v43  ;;  %7766 = vmatprep.subr.bf16.mxu0 %v9351_v56  ;;  %v12088_v56 = vpack.c.bf16 %v12086_v53, %v12087_v54  ;;  %v2423_v43 = vlaneseq  ;;  %v9879_v54 = vld [vmem:[%s12096_s2] sm:$0x7]  ;;  %s8981_s2 = smov 64  }
 0x234   : > { %7789 = vmatpush3.bf16.msra.mxu1 %v9395_v16  ;;  %8261 = vmatprep.mubr.msk.bf16.mxu1 %vm8977_vm2, %v12073_v6 }
 0x235   : > { %v9778_v44 = vpop.permute.xlu0 %1924  ;;  %7790 = vmatprep.subr.bf16.mxu1 %v9404_v21  ;;  %v2207_v16 = vsel %vm1445_vm1, %v12088_v56, %v9722_v10 }
 0x236   : > { %v1928_v46 = vsel %vm1445_vm1, %v9636_v0, %v9778_v44  ;;  %7767 = vmatpush3.bf16.msra.mxu0 %v9356_v58 }
 0x237   : > { %v1975_v48 = vsel %vm1467_vm4, %v1928_v46, %v9667_v57  ;;  %7768 = vmatprep.subr.bf16.mxu0 %v9369_v63 }
 0x238   : > { %7791 = vmatpush3.bf16.msra.mxu1 %v9410_v23  ;;  %2104 = vmatmul.mubr.bf16.gmra.mrb[128].mxu0 %v1975_v48 }
 0x239   : > { %2282 = vmatprep.mubr.bf16.mxu0 %v2207_v16  ;;  %v1947_v21 = vpop.permute.xlu1 %1946  ;;  %7792 = vmatprep.subr.bf16.mxu1 %v9418_v24  ;;  %v12090_v24 = vld [vmem:[#allocation15_spill] sm:$0xff] }
 0x23a   : > { %v1951_v58 = vsel %vm1489_vm3, %v9651_v32, %v1947_v21  ;;  %7769 = vmatpush3.bf16.msra.mxu0 %v9374_v1  ;;  %v12089_v1 = vld [vmem:[#allocation16_spill] sm:$0xff] }
 0x23b   : > { %8262 = vmatmul.mubr.msk.bf16.gmra.mrb[28].mxu1 %vm1736_vm5, %v1951_v58  ;;  %8269 = vmatprep.subr.bf16.mxu0 %v12073_v6  ;;  %v12091_v7 = vpack.c.bf16 %v12089_v1, %v12090_v24 }
 0x23c   : > { %7793 = vmatpush3.bf16.msra.mxu1 %v9423_v26  ;;  %8265 = vmatprep.mubr.msk.bf16.mxu1 %vm8977_vm2, %v12073_v6 }
 0x23d   : > { %v2185_v63 = vpop.permute.xlu1 %2184  ;;  %7794 = vmatprep.subr.bf16.mxu1 %v9431_v31  ;;  %v2211_v29 = vsel %vm1445_vm1, %v12091_v7, %v9736_v14 }
 0x23e   : > { %v2190_v23 = vsel %vm1467_vm4, %v9727_v59, %v2185_v63 }
 0x240   : > { %7795 = vmatpush3.bf16.msra.mxu1 %v9436_v33  ;;  %2283 = vmatmul.mubr.bf16.vlgmr.msra.gmra.mrb[132].mxu0 %v9506_v12  ;;  %v2231_v33 = vsel %vm1489_vm3, %v2190_v23, %v9767_v42  ;;  %v12092_v12 = vld [vmem:[#allocation19_spill] sm:$0xff] }
 0x241   : > { %2290 = vmatprep.mubr.bf16.mxu0 %v2211_v29  ;;  %v1949_v26 = vpop.permute.xlu0 %1948  ;;  %7796 = vmatprep.subr.bf16.mxu1 %v9444_v34  ;;  %v2197_v32 = vpop.permute.xlu1 %2196 }
 0x242   : > { %v1952_v31 = vsel %vm1489_vm3, %v9689_v37, %v1949_v26  ;;  %8270 = vmatpush3.bf16.msra.mxu0 %v9554_v13  ;;  %v12093_v13 = vld [vmem:[#allocation17_spill] sm:$0xff]  ;;  %v2202_v50 = vsel %vm1489_vm3, %v9767_v42, %v2197_v32 }
 0x243   : > { %8266 = vmatmul.mubr.msk.bf16.gmra.mrb[32].mxu1 %vm1736_vm5, %v1952_v31  ;;  %8271 = vmatprep.subr.bf16.mxu0 %v12073_v6  ;;  %v12094_v0 = vpack.c.bf16 %v12092_v12, %v12093_v13 }
 0x244   : > { %7797 = vmatpush3.bf16.msra.mxu1 %v9449_v36  ;;  %2339 = vmatprep.mubr.bf16.mxu1 %v2231_v33 }
 0x245   : > { %7798 = vmatprep.subr.bf16.mxu1 %v9456_v3  ;;  %v2215_v60 = vsel %vm1445_vm1, %v12094_v0, %v9778_v44  ;;  %v2175_v3 = vpop.permute.xlu1 %2174 }
 0x246   : > { %8272 = vmatpush3.bf16.msra.mxu0 %v12081_v49  ;;  %v2173_v34 = vpop.permute.xlu0 %2172  ;;  %v2179_v61 = vsel %vm1445_vm1, %v9736_v14, %v2175_v3 }
 0x247   : > { %8285 = vmatprep.subr.bf16.mxu0 %v12073_v6  ;;  %v2223_v37 = vsel %vm1467_vm4, %v2179_v61, %v9743_v28 }
 0x248   : > { %7799 = vmatpush3.bf16.msra.mxu1 %v9461_v8  ;;  %2291 = vmatmul.mubr.bf16.gmra.mrb[136].mxu0 %v9515_v47  ;;  %v2178_v8 = vsel %vm1445_vm1, %v9722_v10, %v2173_v34 }
 0x249   : > { %2298 = vmatprep.mubr.bf16.mxu0 %v2215_v60  ;;  %7800 = vmatprep.subr.bf16.mxu1 %v9469_v9  ;;  %v2219_v9 = vsel %vm1467_vm4, %v2178_v8, %v9727_v59 }
 0x24a   : > { %v2187_v36 = vpop.permute.xlu0 %2186 }
 0x24b   : > { %v2191_v47 = vsel %vm1467_vm4, %v9743_v28, %v2187_v36 }
 0x24c   : > { %7801 = vmatpush3.bf16.msra.mxu1 %v9474_v11  ;;  %v2235_v11 = vsel %vm1489_vm3, %v2191_v47, %v1947_v21 }
 0x24d   : > { %7802 = vmatprep.subr.bf16.mxu1 %v9482_v18  ;;  %v2189_v18 = vpop.permute.xlu1 %2188 }
 0x24e   : > { %v2199_v57 = vpop.permute.xlu0 %2198  ;;  %v2192_v35 = vsel %vm1467_vm4, %v9756_v39, %v2189_v18 }
 0x24f   : > { %v2239_v62 = vsel %vm1489_vm3, %v2192_v35, %v1949_v26 }
 0x250   : > { %7803 = vmatpush3.bf16.msra.mxu1 %v12079_v2  ;;  %2299 = vmatmul.mubr.bf16.gmra.mrb[140].mxu0 %v12084_v52  ;;  %v2203_v2 = vsel %vm1489_vm3, %v1947_v21, %v2199_v57 }
 0x251   : > { %8273 = vmatprep.mubr.msk.bf16.mxu0 %vm8977_vm2, %v12073_v6  ;;  %v2201_v55 = vpop.permute.xlu1 %2200 }
 0x252   : > { %v2177_v27 = vpop.permute.xlu0 %2176  ;;  %v2204_v52 = vsel %vm1489_vm3, %v1949_v26, %v2201_v55 }
 0x253   : > { %2340 = vmatmul.mubr.bf16.vlgmr.msra.gmra.mrb[36].mxu1 %v2219_v9  ;;  %v2180_v4 = vsel %vm1445_vm1, %v9778_v44, %v2177_v27  ;;  %v9871_v44 = vshrl.u32 %v2423_v43, 7 }
 0x254   : > { %2347 = vmatprep.mubr.bf16.mxu1 %v2235_v11  ;;  %v2227_v49 = vsel %vm1467_vm4, %v2180_v4, %v9756_v39 }
 0x255   : > { %v9874_v48 = vsub.s32 0, %v9871_v44 }
 0x257   : > { %v2426_v1 = vrot.slane %v9879_v54, %v9874_v48 }
 0x258   : > { %8274 = vmatmul.mubr.msk.bf16.vlgmr.msra.gmra.mrb[144].mxu0 %vm1736_vm5, %v2202_v50 }
 0x259   : > { %8277 = vmatprep.mubr.msk.bf16.mxu0 %vm8977_vm2, %v12073_v6 }
 0x25b   : > { %2348 = vmatmul.mubr.bf16.gmra.mrb[40].mxu1 %v2223_v37 }
 0x25c   : > { %2355 = vmatprep.mubr.bf16.mxu1 %v2239_v62 }
 0x260   : > { %8278 = vmatmul.mubr.msk.bf16.gmra.mrb[148].mxu0 %vm1736_vm5, %v2203_v2 }
 0x261   : > { %8281 = vmatprep.mubr.msk.bf16.mxu0 %vm8977_vm2, %v12073_v6 }
 0x263   : > { %2356 = vmatmul.mubr.bf16.gmra.mrb[44].mxu1 %v2227_v49 }
 0x264   : > { %2615 = vmatprep.mubr.bf16.mxu1 %v12095_v45 }
 0x268   : > { %8282 = vmatmul.mubr.msk.bf16.gmra.mrb[152].mxu0 %vm1736_vm5, %v2204_v52 }
 0x269   : > { %8291 = vmatprep.mubr.msk.bf16.mxu0 %vm8977_vm2, %v12073_v6 }
 0x277   : > { %v7624_v25 = vpop.f32.mrb[96].mxu0 }
 0x278   : > { %v7625_v19 = vpop.f32.mrb[97].mxu0 }
 0x279   : > { %v7626_v10 = vadd.f32 %v7625_v19, %v7624_v25  ;;  %v7627_v30 = vpop.f32.mrb[98].mxu0 }
 0x27a   : > { %v7628_v59 = vpop.f32.mrb[99].mxu0 }
 0x27b   : > { %v7629_v15 = vadd.f32 %v7628_v59, %v7627_v30 }
 0x27f   : > { %v7630_v20 = vpop.f32.mrb[100].mxu0 }
 0x280   : > { %v7631_v5 = vpop.f32.mrb[101].mxu0 }
 0x281   : > { %v7632_v14 = vadd.f32 %v7631_v5, %v7630_v20  ;;  %v7633_v17 = vpop.f32.mrb[102].mxu0 }
 0x282   : > { %v7634_v28 = vpop.f32.mrb[103].mxu0 }
 0x283   : > { %v7635_v22 = vadd.f32 %v7634_v28, %v7633_v17 }
 0x287   : > { %v7636_v51 = vpop.f32.mrb[104].mxu0 }
 0x288   : > { %v7637_v38 = vpop.f32.mrb[105].mxu0 }
 0x289   : > { %v7638_v39 = vadd.f32 %v7637_v38, %v7636_v51  ;;  %v7639_v40 = vpop.f32.mrb[106].mxu0 }
 0x28a   : > { %v7640_v41 = vpop.f32.mrb[107].mxu0 }
 0x28b   : > { %v7641_v42 = vadd.f32 %v7640_v41, %v7639_v40 }
 0x2a7   : > { %v7658_v46 = vpop.f32.mrb[0].mxu1 }
 0x2a8   : > { %v7659_v53 = vpop.f32.mrb[1].mxu1 }
 0x2a9   : > { %v7660_v56 = vadd.f32 %v7659_v53, %v7658_v46  ;;  %v7661_v16 = vpop.f32.mrb[2].mxu1 }
 0x2aa   : > { %v7662_v21 = vpop.f32.mrb[3].mxu1  ;;  %v1894_v58 = vpop.f32.mrb[108].mxu0 }
 0x2ab   : > { %v7663_v63 = vadd.f32 %v7662_v21, %v7661_v16  ;;  %v1838_v23 = vadd.f32 %v7660_v56, %v7626_v10  ;;  %v8243_v24 = vpop.f32.mrb[109].mxu0 }
 0x2ac   : > { %v1897_v7 = vpop.f32.mrb[110].mxu0 }
 0x2ad   : > { %v1895_v29 = vadd.f32 %v1894_v58, %v1838_v23  ;;  %v1841_v26 = vadd.f32 %v7663_v63, %v7629_v15  ;;  %v8244_v31 = vpop.f32.mrb[111].mxu0 }
 0x2af   : > { %v2438_v33 = vadd.f32 %v2426_v1, %v1895_v29  ;;  %v1898_v34 = vadd.f32 %v1897_v7, %v1841_v26 }
 0x2b1   : > { %v2474_v12 = vmul.f32 0.01, %v2438_v33  ;;  %v2441_v13 = vadd.f32 %v2426_v1, %v1898_v34  ;;  %vm2456_vm6 = vcmp.ge.f32.partialorder %v2438_v33, 0.0 }
 0x2b2   : > { %v1902_v0 = vpop.f32.mrb[112].mxu0 }
 0x2b3   : > { %vm2459_vm7 = vcmp.ge.f32.partialorder %v2441_v13, 0.0  ;;  %v2477_v60 = vmul.f32 0.01, %v2441_v13  ;;  %v7664_v32 = vpop.f32.mrb[4].mxu1  ;;  %v8247_v36 = vpop.f32.mrb[113].mxu0  ;;  %v9883_v47 = vsel %vm2456_vm6, %v2438_v33, %v2474_v12  ;;  %vm2567_vm6 = vcmask 1046528  }
 0x2b4   : > { %v7665_v3 = vpop.f32.mrb[5].mxu1  ;;  %v1905_v8 = vpop.f32.mrb[114].mxu0 }
 0x2b5   : > { %v9885_v9 = vsel %vm2459_vm7, %v2441_v13, %v2477_v60  ;;  %v7666_v11 = vadd.f32 %v7665_v3, %v7664_v32  ;;  %v7667_v18 = vpop.f32.mrb[6].mxu1  ;;  %v8248_v57 = vpop.f32.mrb[115].mxu0 }
 0x2b6   : > { %v7668_v50 = vpop.f32.mrb[7].mxu1  ;;  %v2510_v61 = vpack.c.bf16 %v9885_v9, %v9883_v47 }
 0x2b7   : > { %v1846_v35 = vadd.f32 %v7666_v11, %v7632_v14  ;;  %v7669_v37 = vadd.f32 %v7668_v50, %v7667_v18 }
 0x2b9   : > { %v1903_v62 = vadd.f32 %v1902_v0, %v1846_v35  ;;  %v1849_v27 = vadd.f32 %v7669_v37, %v7635_v22 }
 0x2bb   : > { %v2444_v2 = vadd.f32 %v2426_v1, %v1903_v62  ;;  %v1906_v4 = vadd.f32 %v1905_v8, %v1849_v27  ;;  %v7670_v49 = vpop.f32.mrb[8].mxu1 }
 0x2bc   : > { %v7671_v55 = vpop.f32.mrb[9].mxu1 }
 0x2bd   : > { %v2480_v52 = vmul.f32 0.01, %v2444_v2  ;;  %v2447_v25 = vadd.f32 %v2426_v1, %v1906_v4  ;;  %v7672_v19 = vadd.f32 %v7671_v55, %v7670_v49  ;;  %v7673_v10 = vpop.f32.mrb[10].mxu1  ;;  %vm2462_vm8 = vcmp.ge.f32.partialorder %v2444_v2, 0.0 }
 0x2be   : > { %v7674_v30 = vpop.f32.mrb[11].mxu1  ;;  %v1910_v59 = vpop.f32.mrb[116].mxu0 }
 0x2bf   : > { %v2483_v15 = vmul.f32 0.01, %v2447_v25  ;;  %v7675_v20 = vadd.f32 %v7674_v30, %v7673_v10  ;;  %v1854_v5 = vadd.f32 %v7672_v19, %v7638_v39  ;;  %v8251_v17 = vpop.f32.mrb[117].mxu0  ;;  %vm2465_vm9 = vcmp.ge.f32.partialorder %v2447_v25, 0.0 }
 0x2c0   : > { %v1913_v14 = vpop.f32.mrb[118].mxu0  ;;  %v9889_v38 = vsel %vm2462_vm8, %v2444_v2, %v2480_v52  ;;  %v9902_v10 = vsub.s32 1, %v9871_v44  ;;  %vm2568_vm8 = vcmask 1047552  }
 0x2c1   : > { %v1911_v28 = vadd.f32 %v1910_v59, %v1854_v5  ;;  %v1857_v51 = vadd.f32 %v7675_v20, %v7641_v42  ;;  %v8252_v22 = vpop.f32.mrb[119].mxu0  ;;  %v9891_v40 = vsel %vm2465_vm9, %v2447_v25, %v2483_v15 }
 0x2c2   : > { %v2513_v41 = vpack.c.bf16 %v9891_v40, %v9889_v38  ;;  %v2430_v30 = vrot.slane %v9879_v54, %v9902_v10 }
 0x2c3   : > { %v2450_v43 = vadd.f32 %v2426_v1, %v1911_v28  ;;  %v1914_v46 = vadd.f32 %v1913_v14, %v1857_v51 }
 0x2c5   : > { %v2486_v53 = vmul.f32 0.01, %v2450_v43  ;;  %v2453_v56 = vadd.f32 %v2426_v1, %v1914_v46  ;;  %vm2468_vm10 = vcmp.ge.f32.partialorder %v2450_v43, 0.0 }
 0x2c7   : > { %vm2471_vm11 = vcmp.ge.f32.partialorder %v2453_v56, 0.0  ;;  %v2489_v39 = vmul.f32 0.01, %v2453_v56  ;;  %v7697_v16 = vpop.f32.mrb[12].mxu1  ;;  %v9895_v58 = vsel %vm2468_vm10, %v2450_v43, %v2486_v53  ;;  %vm2551_vm10 = vcmask 384000  }
 0x2c8   : > { %v7698_v21 = vpop.f32.mrb[13].mxu1 }
 0x2c9   : > { %v9897_v42 = vsel %vm2471_vm11, %v2453_v56, %v2489_v39  ;;  %v7699_v63 = vadd.f32 %v7698_v21, %v7697_v16  ;;  %v7700_v23 = vpop.f32.mrb[14].mxu1 }
 0x2ca   : > { %v2516_v24 = vpack.c.bf16 %v9897_v42, %v9895_v58  ;;  %v7701_v7 = vpop.f32.mrb[15].mxu1 }
 0x2cb   : > { %v7702_v29 = vadd.f32 %v7701_v7, %v7700_v23 }
 0x2cf   : > { %v7703_v26 = vpop.f32.mrb[16].mxu1 }
 0x2d0   : > { %v7704_v31 = vpop.f32.mrb[17].mxu1 }
 0x2d1   : > { %v7705_v33 = vadd.f32 %v7704_v31, %v7703_v26  ;;  %v7706_v1 = vpop.f32.mrb[18].mxu1 }
 0x2d2   : > { %v7707_v34 = vpop.f32.mrb[19].mxu1 }
 0x2d3   : > { %v7708_v12 = vadd.f32 %v7707_v34, %v7706_v1 }
 0x2d7   : > { %v7709_v13 = vpop.f32.mrb[20].mxu1 }
 0x2d8   : > { %v7710_v0 = vpop.f32.mrb[21].mxu1 }
 0x2d9   : > { %v7711_v60 = vadd.f32 %v7710_v0, %v7709_v13  ;;  %v7712_v32 = vpop.f32.mrb[22].mxu1 }
 0x2da   : > { %v7713_v36 = vpop.f32.mrb[23].mxu1 }
 0x2db   : > { %v7714_v3 = vadd.f32 %v7713_v36, %v7712_v32 }
 0x2f0   : > { %v7731_v8 = vpop.f32.mrb[120].mxu0 }
 0x2f1   : > { %v7732_v11 = vpop.f32.mrb[121].mxu0 }
 0x2f2   : > { %v7733_v18 = vadd.f32 %v7732_v11, %v7731_v8  ;;  %v7734_v57 = vpop.f32.mrb[122].mxu0 }
 0x2f3   : > { %v7735_v50 = vpop.f32.mrb[123].mxu0 }
 0x2f4   : > { %v7736_v35 = vadd.f32 %v7735_v50, %v7734_v57  ;;  %v2090_v37 = vadd.f32 %v7733_v18, %v7699_v63 }
 0x2f6   : > { %v2093_v62 = vadd.f32 %v7736_v35, %v7702_v29 }
 0x2f8   : > { %v7737_v27 = vpop.f32.mrb[124].mxu0 }
 0x2f9   : > { %v7738_v2 = vpop.f32.mrb[125].mxu0 }
 0x2fa   : > { %v7739_v4 = vadd.f32 %v7738_v2, %v7737_v27  ;;  %v7740_v49 = vpop.f32.mrb[126].mxu0 }
 0x2fb   : > { %v7741_v55 = vpop.f32.mrb[127].mxu0 }
 0x2fc   : > { %v7742_v52 = vadd.f32 %v7741_v55, %v7740_v49  ;;  %v2098_v25 = vadd.f32 %v7739_v4, %v7705_v33 }
 0x2fe   : > { %v2101_v19 = vadd.f32 %v7742_v52, %v7708_v12 }
 0x306   : > { %v2146_v59 = vpop.f32.mrb[24].mxu1 }
 0x307   : > { %v2147_v15 = vadd.f32 %v2146_v59, %v2090_v37  ;;  %v8259_v20 = vpop.f32.mrb[25].mxu1 }
 0x308   : > { %v2149_v5 = vpop.f32.mrb[26].mxu1 }
 0x309   : > { %v2439_v17 = vadd.f32 %v2430_v30, %v2147_v15  ;;  %v2150_v14 = vadd.f32 %v2149_v5, %v2093_v62  ;;  %v8260_v28 = vpop.f32.mrb[27].mxu1  ;;  %v8978_v5 = vmov 65535  }
 0x30b   : > { %vm2457_vm12 = vcmp.ge.f32.partialorder %v2439_v17, 0.0  ;;  %v2475_v51 = vmul.f32 0.01, %v2439_v17  ;;  %v2442_v22 = vadd.f32 %v2430_v30, %v2150_v14  ;;  %v7743_v43 = vpop.f32.mrb[128].mxu0 }
 0x30c   : > { %v7744_v46 = vpop.f32.mrb[129].mxu0 }
 0x30d   : > { %vm2460_vm13 = vcmp.ge.f32.partialorder %v2442_v22, 0.0  ;;  %v2478_v53 = vmul.f32 0.01, %v2442_v22  ;;  %v7745_v56 = vadd.f32 %v7744_v46, %v7743_v43  ;;  %v7746_v39 = vpop.f32.mrb[130].mxu0  ;;  %v2493_v63 = vsel %vm2457_vm12, %v2439_v17, %v2475_v51 }
 0x30e   : > { %v7747_v16 = vpop.f32.mrb[131].mxu0  ;;  %v2154_v21 = vpop.f32.mrb[28].mxu1  ;;  %v2569_v17 = vsel %vm2567_vm6, 4294967295, %v8978_v5 }
 0x30f   : > { %v7748_v23 = vadd.f32 %v7747_v16, %v7746_v39  ;;  %v2155_v7 = vadd.f32 %v2154_v21, %v2098_v25  ;;  %v8263_v29 = vpop.f32.mrb[29].mxu1  ;;  %v2496_v26 = vsel %vm2460_vm13, %v2442_v22, %v2478_v53  ;;  %v2106_v31 = vadd.f32 %v7745_v56, %v7711_v60  ;;  %v9923_v53 = vld [vmem:[%s12097_s26] sm:$0xff]  }
 0x310   : > { %v2157_v33 = vpop.f32.mrb[30].mxu1  ;;  %v2511_v1 = vpack.c.bf16 %v2496_v26, %v2493_v63  ;;  %v9913_v43 = vsel %vm2568_vm8, %v2569_v17, 0  ;;  %v9928_v63 = vsub.s32 2, %v9871_v44 }
 0x311   : > { %v2445_v34 = vadd.f32 %v2430_v30, %v2155_v7  ;;  %v2158_v12 = vadd.f32 %v2157_v33, %v2101_v19  ;;  %v8264_v13 = vpop.f32.mrb[31].mxu1  ;;  %v2109_v0 = vadd.f32 %v7748_v23, %v7714_v3 }
 0x312   : > { %2583 = vmatprep.subr.bf16.mxu1 %v2511_v1 }
 0x313   : > { %v2481_v32 = vmul.f32 0.01, %v2445_v34  ;;  %v2448_v36 = vadd.f32 %v2430_v30, %v2158_v12  ;;  %v7770_v8 = vpop.f32.mrb[132].mxu0  ;;  %2584 = vmatpush1.bf16.msra.mxu1 %v2510_v61  ;;  %vm2463_vm14 = vcmp.ge.f32.partialorder %v2445_v34, 0.0  ;;  %v9942_v12 = vld [vmem:[%s12097_s26 + $0x8] sm:$0xff]  }
 0x314   : > { %v7771_v11 = vpop.f32.mrb[133].mxu0 }
 0x315   : > { %vm2466_vm15 = vcmp.ge.f32.partialorder %v2448_v36, 0.0  ;;  %v2484_v18 = vmul.f32 0.01, %v2448_v36  ;;  %v7772_v57 = vadd.f32 %v7771_v11, %v7770_v8  ;;  %v7773_v60 = vpop.f32.mrb[134].mxu0  ;;  %v2499_v3 = vsel %vm2463_vm14, %v2445_v34, %v2481_v32 }
 0x316   : > { %v2162_v50 = vpop.f32.mrb[32].mxu1  ;;  %v7774_v35 = vpop.f32.mrb[135].mxu0 }
 0x317   : > { %v2163_v37 = vadd.f32 %v2162_v50, %v2106_v31  ;;  %v7775_v62 = vadd.f32 %v7774_v35, %v7773_v60  ;;  %v8267_v27 = vpop.f32.mrb[33].mxu1  ;;  %v2502_v2 = vsel %vm2466_vm15, %v2448_v36, %v2484_v18  ;;  %v9937_v31 = vrot.slane %v9879_v54, %v9928_v63 }
 0x318   : > { %v2165_v4 = vpop.f32.mrb[34].mxu1  ;;  %v2514_v49 = vpack.c.bf16 %v2502_v2, %v2499_v3 }
 0x319   : > { %v2451_v55 = vadd.f32 %v2430_v30, %v2163_v37  ;;  %v2166_v52 = vadd.f32 %v2165_v4, %v2109_v0  ;;  %v8268_v25 = vpop.f32.mrb[35].mxu1 }
 0x31a   : > { %2585 = vmatprep.subr.bf16.mxu1 %v2514_v49 }
 0x31b   : > { %v2487_v47 = vmul.f32 0.01, %v2451_v55  ;;  %v2454_v9 = vadd.f32 %v2430_v30, %v2166_v52  ;;  %v7776_v61 = vpop.f32.mrb[136].mxu0  ;;  %2586 = vmatpush1.bf16.msra.mxu1 %v2513_v41  ;;  %vm2469_vm7 = vcmp.ge.f32.partialorder %v2451_v55, 0.0  ;;  %v2572_v41 = vand.u32 %v9913_v43, %v2516_v24 }
 0x31c   : > { %v7777_v19 = vpop.f32.mrb[137].mxu0 }
 0x31d   : > { %vm2472_vm9 = vcmp.ge.f32.partialorder %v2454_v9, 0.0  ;;  %v2490_v59 = vmul.f32 0.01, %v2454_v9  ;;  %v7778_v15 = vadd.f32 %v7777_v19, %v7776_v61  ;;  %v7779_v20 = vpop.f32.mrb[138].mxu0  ;;  %v2505_v51 = vsel %vm2469_vm7, %v2451_v55, %v2487_v47  ;;  %v8541_v55 = vld [vmem:[%s12097_s26 + $0x10] sm:$0xff]  }
 0x31e   : > { %v7780_v14 = vpop.f32.mrb[139].mxu0  ;;  %vm2820_vm7 = vcmask 1043456  }
 0x31f   : > { %v7781_v28 = vadd.f32 %v7780_v14, %v7779_v20  ;;  %v2508_v22 = vsel %vm2472_vm9, %v2454_v9, %v2490_v59 }
 0x320   : > { %v2517_v30 = vpack.c.bf16 %v2508_v22, %v2505_v51 }
 0x322   : > { %v2575_v38 = vand.u32 %v9913_v43, %v2517_v30 }
 0x323   : > { %v7782_v40 = vpop.f32.mrb[140].mxu0 }
 0x324   : > { %v7783_v46 = vpop.f32.mrb[141].mxu0  ;;  %2587 = vmatprep.subr.bf16.mxu1 %v2575_v38 }
 0x325   : > { %v9925_v56 = vadd.f32 %v7783_v46, %v7782_v40  ;;  %v7785_v39 = vpop.f32.mrb[142].mxu0  ;;  %2588 = vmatpush1.bf16.msra.mxu1 %v2572_v41 }
 0x326   : > { %v7804_v16 = vpop.f32.mrb[36].mxu1  ;;  %v7786_v21 = vpop.f32.mrb[143].mxu0 }
 0x327   : > { %v9930_v58 = vadd.f32 %v7786_v21, %v7785_v39  ;;  %v7805_v42 = vpop.f32.mrb[37].mxu1 }
 0x328   : > { %v7806_v24 = vadd.f32 %v7805_v42, %v7804_v16  ;;  %v7807_v23 = vpop.f32.mrb[38].mxu1  ;;  %7278 = vmatmul.mubr.msk.bf16.vlgmr.msra.gmra.mrb[48].mxu1 %vm2551_vm10, %v9923_v53  ;;  %v8542_v42 = vld [vmem:[%s12097_s26 + $0x18] sm:$0xff]  }
 0x329   : > { %v7808_v7 = vpop.f32.mrb[39].mxu1  ;;  %2625 = vmatprep.mubr.bf16.mxu1 %v12095_v45 }
 0x32a   : > { %v7809_v29 = vadd.f32 %v7808_v7, %v7807_v23  ;;  %v2342_v26 = vadd.f32 %v7806_v24, %v7772_v57 }
 0x32b   : > { %v2398_v33 = vpop.f32.mrb[144].mxu0 }
 0x32c   : > { %v2399_v44 = vadd.f32 %v2398_v33, %v2342_v26  ;;  %v8275_v1 = vpop.f32.mrb[145].mxu0  ;;  %v2345_v34 = vadd.f32 %v7809_v29, %v7775_v62 }
 0x32d   : > { %v2401_v13 = vpop.f32.mrb[146].mxu0 }
 0x32e   : > { %v2440_v0 = vadd.f32 %v9937_v31, %v2399_v44  ;;  %v7810_v32 = vpop.f32.mrb[40].mxu1  ;;  %v2402_v36 = vadd.f32 %v2401_v13, %v2345_v34  ;;  %v8276_v8 = vpop.f32.mrb[147].mxu0  ;;  %v8543_v34 = vld [vmem:[%s12097_s26 + $0x20] ss:$0 sps:$4 sm:$0xff]   ;;  %s12100_s26 = smov 16  }
 0x32f   : > { %v7811_v11 = vpop.f32.mrb[41].mxu1  ;;  %v10026_v8 = vld [vmem:[%s12098_s0 + $0x50] sm:$0xff]  }
 0x330   : > { %v2476_v18 = vmul.f32 0.01, %v2440_v0  ;;  %v2443_v54 = vadd.f32 %v9937_v31, %v2402_v36  ;;  %v7812_v57 = vadd.f32 %v7811_v11, %v7810_v32  ;;  %v7813_v60 = vpop.f32.mrb[42].mxu1  ;;  %7279 = vmatmul.mubr.msk.bf16.gmra.mrb[52].mxu1 %vm2551_vm10, %v9942_v12  ;;  %vm2458_vm11 = vcmp.ge.f32.partialorder %v2440_v0, 0.0  ;;  %v10013_v32 = vld [vmem:[%s12098_s0 + $0x88] sm:$0xff]   ;;  %v10032_v11 = vld [vmem:[%s12098_s0 + $0x90] sm:$0xff]  }
 0x331   : > { %v7814_v50 = vpop.f32.mrb[43].mxu1  ;;  %2635 = vmatprep.mubr.bf16.mxu1 %v12095_v45  ;;  %v10020_v36 = vld [vmem:[%s12098_s0 + $0x8] sm:$0xff]  }
 0x332   : > { %vm2461_vm12 = vcmp.ge.f32.partialorder %v2443_v54, 0.0  ;;  %v2479_v35 = vmul.f32 0.01, %v2443_v54  ;;  %v7815_v37 = vadd.f32 %v7814_v50, %v7813_v60  ;;  %v2350_v62 = vadd.f32 %v7812_v57, %v7778_v15  ;;  %v10051_v57 = vld [vmem:[%s12098_s0 + $0x98] sm:$0xff]   ;;  %v10064_v50 = vld [vmem:[%s12098_s0 + $0x60] sm:$0xff]  }
 0x333   : > { %v2406_v27 = vpop.f32.mrb[148].mxu0  ;;  %v2494_v3 = vsel %vm2458_vm11, %v2440_v0, %v2476_v18  ;;  %v10039_v18 = vld [vmem:[%s12098_s0 + $0x10] sm:$0xff]   ;;  %v10058_v60 = vld [vmem:[%s12098_s0 + $0x18] sm:$0xff]   ;;  %vm3490_vm11 = vcmask 1042432  }
 0x334   : > { %v2497_v2 = vsel %vm2461_vm12, %v2443_v54, %v2479_v35  ;;  %v8279_v4 = vpop.f32.mrb[149].mxu0  ;;  %v2353_v49 = vadd.f32 %v7815_v37, %v7781_v28  ;;  %v2407_v52 = vadd.f32 %v2406_v27, %v2350_v62  ;;  %v10045_v54 = vld [vmem:[%s12098_s0 + $0x58] sm:$0xff]   ;;  %v10070_v35 = vld [vmem:[%s12098_s0 + $0xa0] sm:$0xff]   ;;  %v10083_v62 = vld [vmem:[%s12098_s0 + $0x68] sm:$0xff]  }
 0x335   : > { %v2409_v25 = vpop.f32.mrb[150].mxu0  ;;  %v2512_v47 = vpack.c.bf16 %v2497_v2, %v2494_v3  ;;  %v10077_v37 = vld [vmem:[%s12098_s0 + $0x20] sm:$0xff]   ;;  %v10089_v27 = vld [vmem:[%s12098_s0 + $0xa8] sm:$0xff]   ;;  %v10102_v2 = vld [vmem:[%s12098_s0 + $0x70] sm:$0xff]  }
 0x336   : > { %v7816_v9 = vpop.f32.mrb[44].mxu1  ;;  %v2410_v61 = vadd.f32 %v2409_v25, %v2353_v49  ;;  %v8280_v19 = vpop.f32.mrb[151].mxu0  ;;  %v2446_v59 = vadd.f32 %v9937_v31, %v2407_v52  ;;  %v10096_v3 = vld [vmem:[%s12098_s0 + $0x28] sm:$0xff]   ;;  %v10108_v4 = vld [vmem:[%s12098_s0 + $0xb0] sm:$0xff]   ;;  %v10127_v52 = vld [vmem:[%s12098_s0 + $0xb8] sm:$0xff]  }
 0x337   : > { %v7817_v20 = vpop.f32.mrb[45].mxu1  ;;  %8286 = vmatpush3.bf16.msra.mxu0 %v2512_v47  ;;  %v10115_v49 = vld [vmem:[%s12098_s0 + $0x30] sm:$0xff]   ;;  %v10134_v25 = vld [vmem:[%s12098_s0 + $0x38] sm:$0xff]  }
 0x338   : > { %v2449_v15 = vadd.f32 %v9937_v31, %v2410_v61  ;;  %v7818_v17 = vadd.f32 %v7817_v20, %v7816_v9  ;;  %v7819_v14 = vpop.f32.mrb[46].mxu1  ;;  %7280 = vmatmul.mubr.msk.bf16.gmra.mrb[56].mxu1 %vm2551_vm10, %v8541_v55  ;;  %8287 = vmatprep.subr.bf16.mxu0 %v12073_v6  ;;  %vm2464_vm13 = vcmp.ge.f32.partialorder %v2446_v59, 0.0  ;;  %v2482_v28 = vmul.f32 0.01, %v2446_v59 }
 0x339   : > { %v7820_v51 = vpop.f32.mrb[47].mxu1  ;;  %2645 = vmatprep.mubr.bf16.mxu1 %v12095_v45 }
 0x33a   : > { %vm2467_vm14 = vcmp.ge.f32.partialorder %v2449_v15, 0.0  ;;  %v2485_v22 = vmul.f32 0.01, %v2449_v15  ;;  %v7821_v30 = vadd.f32 %v7820_v51, %v7819_v14  ;;  %v2358_v38 = vadd.f32 %v7818_v17, %v9925_v56 }
 0x33b   : > { %v2414_v40 = vpop.f32.mrb[152].mxu0  ;;  %v2500_v41 = vsel %vm2464_vm13, %v2446_v59, %v2482_v28  ;;  %v10152_v28 = vld [vmem:[%s12098_s0 + $0xc0] sm:$0xff]   ;;  %vm3480_vm13 = vcmask 187392  }
 0x33c   : > { %v2503_v46 = vsel %vm2467_vm14, %v2449_v15, %v2485_v22  ;;  %v2415_v39 = vadd.f32 %v2414_v40, %v2358_v38  ;;  %v8283_v16 = vpop.f32.mrb[153].mxu0  ;;  %v2361_v21 = vadd.f32 %v7821_v30, %v9930_v58  ;;  %v8569_v38 = vld [vmem:[%s12098_s0 + $0xc8] ss:$0 sps:$4 sm:$0xff]  }
 0x33d   : > { %v2417_v24 = vpop.f32.mrb[154].mxu0  ;;  %v2515_v23 = vpack.c.bf16 %v2503_v46, %v2500_v41  ;;  %v10164_v41 = vsel %vm2820_vm7, %v8569_v38, 0 }
 0x33e   : > { %v2452_v7 = vadd.f32 %v9937_v31, %v2415_v39  ;;  %v2418_v29 = vadd.f32 %v2417_v24, %v2361_v21  ;;  %v8284_v26 = vpop.f32.mrb[155].mxu0 }
 0x33f   : > { %8288 = vmatpush3.bf16.msra.mxu0 %v2515_v23 }
 0x340   : > { %v2488_v33 = vmul.f32 0.01, %v2452_v7  ;;  %v2455_v56 = vadd.f32 %v9937_v31, %v2418_v29  ;;  %7281 = vmatmul.mubr.msk.bf16.gmra.mrb[60].mxu1 %vm2551_vm10, %v8542_v42  ;;  %8289 = vmatprep.subr.bf16.mxu0 %v12073_v6  ;;  %vm2470_vm15 = vcmp.ge.f32.partialorder %v2452_v7, 0.0  ;;  %v10001_v31 = vld [vmem:[%s12098_s0] sm:$0xff]  }
 0x341   : > { %2655 = vmatprep.mubr.bf16.mxu1 %v12095_v45 }
 0x342   : > { %vm2473_vm6 = vcmp.ge.f32.partialorder %v2455_v56, 0.0  ;;  %v2491_v58 = vmul.f32 0.01, %v2455_v56  ;;  %v2506_v44 = vsel %vm2470_vm15, %v2452_v7, %v2488_v33 }
 0x344   : > { %v2509_v1 = vsel %vm2473_vm6, %v2455_v56, %v2491_v58 }
 0x345   : > { %v2518_v13 = vpack.c.bf16 %v2509_v1, %v2506_v44 }
 0x347   : > { %v2578_v0 = vand.u32 %v9913_v43, %v2518_v13  ;;  %v9991_v43 = vld [vmem:[%s12098_s0 + $0x80] sm:$0xff]  }
 0x348   : > { %7282 = vmatmul.mubr.msk.bf16.gmra.mrb[64].mxu1 %vm2551_vm10, %v8543_v34 }
 0x349   : > { %8290 = vmatpush3.bf16.msra.mxu0 %v2578_v0 }
 0x34a   : > { %3078 = vmatprep.subr.bf16.mxu0 %v12095_v45 }
 0x34c   : > { %8292 = vmatmul.mubr.msk.bf16.vlgmr.msra.gmra.mrb[156].mxu0 %vm2551_vm10, %v9923_v53  ;;  %v9996_v53 = vld [vmem:[%s12098_s0 + $0x40] sm:$0xff]  }
 0x34d   : > { %8295 = vmatprep.mubr.msk.bf16.mxu0 %vm8977_vm2, %v12073_v6  ;;  %3079 = vmatpush1.bf16.msra.mxu0 %v9991_v43 }
 0x34e   : > { %7835 = vmatprep.subr.bf16.mxu1 %v9996_v53  ;;  %3080 = vmatprep.subr.bf16.mxu0 %v12095_v45 }
 0x34f   : > { %7836 = vmatpush3.bf16.msra.mxu1 %v10001_v31 }
 0x351   : > { %3081 = vmatpush1.bf16.msra.mxu0 %v10013_v32 }
 0x352   : > { %3082 = vmatprep.subr.bf16.mxu0 %v12095_v45 }
 0x354   : > { %8296 = vmatmul.mubr.msk.bf16.gmra.mrb[160].mxu0 %vm2551_vm10, %v9942_v12  ;;  %v10006_v12 = vld [vmem:[%s12098_s0 + $0x48] sm:$0xff]  }
 0x355   : > { %8299 = vmatprep.mubr.msk.bf16.mxu0 %vm8977_vm2, %v12073_v6  ;;  %7837 = vmatprep.subr.bf16.mxu1 %v10006_v12 }
 0x356   : > { %7838 = vmatpush3.bf16.msra.mxu1 %v10020_v36  ;;  %3083 = vmatpush1.bf16.msra.mxu0 %v10032_v11 }
 0x357   : > { %7839 = vmatprep.subr.bf16.mxu1 %v10026_v8  ;;  %3084 = vmatprep.subr.bf16.mxu0 %v12095_v45 }
 0x35a   : > { %7840 = vmatpush3.bf16.msra.mxu1 %v10039_v18  ;;  %3085 = vmatpush1.bf16.msra.mxu0 %v10051_v57 }
 0x35b   : > { %7841 = vmatprep.subr.bf16.mxu1 %v10045_v54  ;;  %3086 = vmatprep.subr.bf16.mxu0 %v12095_v45 }
 0x35c   : > { %8300 = vmatmul.mubr.msk.bf16.gmra.mrb[164].mxu0 %vm2551_vm10, %v8541_v55  ;;  %v10121_v55 = vld [vmem:[%s12098_s0 + $0x78] sm:$0xff]   ;;  %s8982_s0 = smov [#allocation2]  }
 0x35d   : > { %8303 = vmatprep.mubr.msk.bf16.mxu0 %vm8977_vm2, %v12073_v6  ;;  %s8912_s24 = sshll.u32 %s8982_s0, 4  ;;  %s8913_s24 = int_to_ptr.vmem [resolvable:$false] %s8912_s24 }
 0x35e   : > { %7842 = vmatpush3.bf16.msra.mxu1 %v10058_v60  ;;  %3087 = vmatpush1.bf16.msra.mxu0 %v10070_v35  ;;  %s8914_s6 = scalar_lea.vmem %s8913_s24, 32 }
 0x35f   : > { %7843 = vmatprep.subr.bf16.mxu1 %v10064_v50  ;;  %3088 = vmatprep.subr.bf16.mxu0 %v12095_v45 }
 0x362   : > { %7844 = vmatpush3.bf16.msra.mxu1 %v10077_v37  ;;  %3089 = vmatpush1.bf16.msra.mxu0 %v10089_v27 }
 0x363   : > { %7845 = vmatprep.subr.bf16.mxu1 %v10083_v62  ;;  %3090 = vmatprep.subr.bf16.mxu0 %v12095_v45 }
 0x364   : > { %8304 = vmatmul.mubr.msk.bf16.gmra.mrb[168].mxu0 %vm2551_vm10, %v8542_v42 }
 0x365   : > { %8307 = vmatprep.mubr.msk.bf16.mxu0 %vm8977_vm2, %v12073_v6 }
 0x366   : > { %7846 = vmatpush3.bf16.msra.mxu1 %v10096_v3  ;;  %3091 = vmatpush1.bf16.msra.mxu0 %v10108_v4 }
 0x367   : > { %7847 = vmatprep.subr.bf16.mxu1 %v10102_v2  ;;  %3092 = vmatprep.subr.bf16.mxu0 %v12095_v45 }
 0x36a   : > { %7848 = vmatpush3.bf16.msra.mxu1 %v10115_v49  ;;  %3093 = vmatpush1.bf16.msra.mxu0 %v10127_v52 }
 0x36b   : > { %7849 = vmatprep.subr.bf16.mxu1 %v10121_v55  ;;  %3094 = vmatprep.subr.bf16.mxu0 %v12095_v45 }
 0x36c   : > { %8308 = vmatmul.mubr.msk.bf16.gmra.mrb[172].mxu0 %vm2551_vm10, %v8543_v34 }
 0x36e   : > { %7850 = vmatpush3.bf16.msra.mxu1 %v10134_v25  ;;  %3095 = vmatpush1.bf16.msra.mxu0 %v10152_v28 }
 0x36f   : > { %7863 = vmatprep.subr.bf16.mxu1 %v9996_v53  ;;  %3096 = vmatprep.subr.bf16.mxu0 %v12095_v45 }
 0x372   : > { %3097 = vmatpush1.bf16.msra.mxu0 %v10164_v41 }
 0x373   : > { %3215 = vmatprep.subr.bf16.mxu0 %v12095_v45 }
 0x3fb   : > { %v10141_v47 = vpop.f32.mrb[48].mxu1 }
 0x3fc   : > { %v2619_v9 = vpop.f32.mrb[49].mxu1 }
 0x3fd   : > { %v10143_v61 = vpop.f32.mrb[50].mxu1 }
 0x3fe   : > { %v2745_v19 = vpack.c.bf16 %v10143_v61, %v10141_v47  ;;  %v2623_v59 = vpop.f32.mrb[51].mxu1 }
 0x3ff   : > { %v10147_v20 = vpack.c.bf16 %v2623_v59, %v2619_v9 }
 0x403   : > { %v2627_v15 = vpop.f32.mrb[52].mxu1 }
 0x404   : > { %v2629_v17 = vpop.f32.mrb[53].mxu1 }
 0x405   : > { %v2631_v14 = vpop.f32.mrb[54].mxu1 }
 0x406   : > { %v10154_v51 = vpack.c.bf16 %v2631_v14, %v2627_v15  ;;  %v2633_v22 = vpop.f32.mrb[55].mxu1 }
 0x407   : > { %v10156_v30 = vpack.c.bf16 %v2633_v22, %v2629_v17 }
 0x408   : > { %v2821_v24 = vrot.slane %v10154_v51, 4 }
 0x409   : > { %v2824_v7 = vrot.slane %v10156_v30, 4 }
 0x40b   : > { %v2637_v40 = vpop.f32.mrb[56].mxu1 }
 0x40c   : > { %v2639_v46 = vpop.f32.mrb[57].mxu1 }
 0x40d   : > { %v2641_v39 = vpop.f32.mrb[58].mxu1 }
 0x40e   : > { %v2753_v16 = vpack.c.bf16 %v2641_v39, %v2637_v40  ;;  %v2643_v21 = vpop.f32.mrb[59].mxu1 }
 0x40f   : > { %v2754_v42 = vpack.c.bf16 %v2643_v21, %v2639_v46 }
 0x410   : > { %v2822_v23 = vrot.slane %v2753_v16, 4 }
 0x411   : > { %v2825_v29 = vrot.slane %v2754_v42, 4 }
 0x412   : > { %v2823_v26 = vsel %vm2820_vm7, %v2821_v24, %v2822_v23 }
 0x413   : > { %2827 = vrot.lane.b32.xlu0 %v2823_v26, %s12099_s29  ;;  %v2647_v33 = vpop.f32.mrb[60].mxu1  ;;  %v2826_v56 = vsel %vm2820_vm7, %v2824_v7, %v2825_v29 }
 0x414   : > { %v2649_v58 = vpop.f32.mrb[61].mxu1  ;;  %2829 = vrot.lane.b32.xlu1 %v2826_v56, %s12099_s29 }
 0x415   : > { %v2651_v44 = vpop.f32.mrb[62].mxu1 }
 0x416   : > { %v2757_v1 = vpack.c.bf16 %v2651_v44, %v2647_v33  ;;  %v2653_v34 = vpop.f32.mrb[63].mxu1 }
 0x417   : > { %v2758_v13 = vpack.c.bf16 %v2653_v34, %v2649_v58 }
 0x418   : > { %2841 = vrot.lane.b32.xlu0 %v2757_v1, %s12100_s26 }
 0x419   : > { %2843 = vrot.lane.b32.xlu1 %v2758_v13, %s12100_s26 }
 0x41b   : > { %v2657_v0 = vpop.f32.mrb[64].mxu1 }
 0x41c   : > { %2831 = vrot.lane.b32.xlu0 %v2822_v23, %s12099_s29  ;;  %v2761_v9 = vpack.c.bf16 %v2657_v0, %v2657_v0  ;;  %v2659_v59 = vpop.f32.mrb[65].mxu1 }
 0x41d   : > { %2833 = vrot.lane.b32.xlu1 %v2825_v29, %s12099_s29  ;;  %v2762_v15 = vpack.c.bf16 %v2659_v59, %v2659_v59  ;;  %v2661_v17 = vpop.f32.mrb[66].mxu1 }
 0x41e   : > { %v2662_v14 = vpop.f32.mrb[67].mxu1 }
 0x41f   : > { %v2698_v22 = vpop.f32.mrb[156].mxu0 }
 0x420   : > { %2845 = vrot.lane.b32.xlu0 %v2761_v9, %s12100_s26  ;;  %v8293_v38 = vpop.f32.mrb[157].mxu0 }
 0x421   : > { %2847 = vrot.lane.b32.xlu1 %v2762_v15, %s12100_s26  ;;  %v2702_v40 = vpop.f32.mrb[158].mxu0  ;;  %v8979_v15 = vmov 0.0|0.0  }
 0x422   : > { %v10180_v46 = vpack.c.bf16 %v2702_v40, %v2698_v22  ;;  %v8294_v39 = vpop.f32.mrb[159].mxu0  ;;  %v10189_v17 = vrot.slane %v8979_v15, 4 }
 0x427   : > { %v2708_v16 = vpop.f32.mrb[160].mxu0 }
 0x428   : > { %v8297_v21 = vpop.f32.mrb[161].mxu0 }
 0x429   : > { %v2712_v42 = vpop.f32.mrb[162].mxu0 }
 0x42a   : > { %v10182_v24 = vpack.c.bf16 %v2712_v42, %v2708_v16  ;;  %v8298_v23 = vpop.f32.mrb[163].mxu0 }
 0x42c   : > { %v3128_v58 = vrot.slane %v10182_v24, 4 }
 0x42f   : > { %v2718_v7 = vpop.f32.mrb[164].mxu0 }
 0x430   : > { %v8301_v29 = vpop.f32.mrb[165].mxu0 }
 0x431   : > { %v2722_v26 = vpop.f32.mrb[166].mxu0 }
 0x432   : > { %v2755_v33 = vpack.c.bf16 %v2722_v26, %v2718_v7  ;;  %v8302_v56 = vpop.f32.mrb[167].mxu0 }
 0x434   : > { %v3129_v44 = vrot.slane %v2755_v33, 4 }
 0x436   : > { %v3130_v1 = vsel %vm2820_vm7, %v3128_v58, %v3129_v44 }
 0x437   : > { %3131 = vrot.lane.b32.xlu0 %v3130_v1, %s12099_s29  ;;  %v2728_v34 = vpop.f32.mrb[168].mxu0 }
 0x438   : > { %v8305_v13 = vpop.f32.mrb[169].mxu0 }
 0x439   : > { %v2732_v0 = vpop.f32.mrb[170].mxu0 }
 0x43a   : > { %v2759_v9 = vpack.c.bf16 %v2732_v0, %v2728_v34  ;;  %v8306_v59 = vpop.f32.mrb[171].mxu0 }
 0x43b   : > { %3133 = vrot.lane.b32.xlu0 %v3129_v44, %s12099_s29 }
 0x43c   : > { %3139 = vrot.lane.b32.xlu1 %v2759_v9, %s12100_s26 }
 0x43f   : > { %3268 = vrot.lane.b32.xlu0 %v10189_v17, %s12099_s29  ;;  %v2738_v14 = vpop.f32.mrb[172].mxu0 }
 0x440   : > { %v2763_v22 = vpack.c.bf16 %v2738_v14, %v2738_v14  ;;  %v8309_v38 = vpop.f32.mrb[173].mxu0 }
 0x441   : > { %v2742_v40 = vpop.f32.mrb[174].mxu0 }
 0x442   : > { %3141 = vrot.lane.b32.xlu1 %v2763_v22, %s12100_s26  ;;  %v8310_v39 = vpop.f32.mrb[175].mxu0 }
 0x443   : > { %3270 = vrot.lane.b32.xlu0 %v10189_v17, %s12099_s29  ;;  %s8980_s29 = smov 32  }
 0x446   : > { %3276 = vrot.lane.b32.xlu1 %v8979_v15, %s12100_s26 }
 0x44a   : > { %3278 = vrot.lane.b32.xlu1 %v8979_v15, %s12100_s26 }
 0x485   : > { %v2828_v16 = vpop.permute.xlu0 %2827 }
 0x486   : > { %v10201_v21 = vpop.permute.xlu1 %2829  ;;  %v2853_v42 = vsel %vm1445_vm1, %v10147_v20, %v2828_v16 }
 0x487   : > { %3062 = vmatprep.mubr.bf16.mxu1 %v2853_v42  ;;  %v2835_v29 = vsel %vm1445_vm1, %v2828_v16, %v10201_v21  ;;  %v3147_v58 = vsel %vm1445_vm1, %v10180_v46, %v10201_v21 }
 0x488   : > { %3063 = vmatmul.mubr.bf16.vlgmr.msra.gmra.mrb[68].mxu1 %v2745_v19 }
 0x489   : > { %7864 = vmatpush3.bf16.msra.mxu1 %v10001_v31 }
 0x48a   : > { %v2842_v23 = vpop.permute.xlu0 %2841  ;;  %7865 = vmatprep.subr.bf16.mxu1 %v10006_v12 }
 0x48b   : > { %v10210_v7 = vpop.permute.xlu1 %2843  ;;  %v2861_v33 = vsel %vm1467_vm4, %v2835_v29, %v2842_v23 }
 0x48c   : > { %v2849_v26 = vsel %vm1467_vm4, %v2842_v23, %v10210_v7 }
 0x48d   : > { %7866 = vmatpush3.bf16.msra.mxu1 %v10020_v36  ;;  %7314 = vmatprep.mubr.msk.bf16.mxu0 %vm1489_vm3, %v2849_v26 }
 0x48e   : > { %v2832_v47 = vpop.permute.xlu0 %2831  ;;  %3111 = vmatmul.mubr.bf16.vlgmr.msra.gmra.mrb[176].mxu0 %v2861_v33  ;;  %7867 = vmatprep.subr.bf16.mxu1 %v10026_v8 }
 0x48f   : > { %3216 = vmatpush1.bf16.msra.mxu0 %v9991_v43  ;;  %v10221_v61 = vpop.permute.xlu1 %2833  ;;  %v2857_v19 = vsel %vm1445_vm1, %v10156_v30, %v2832_v47 }
 0x490   : > { %3070 = vmatprep.mubr.bf16.mxu1 %v2857_v19  ;;  %3217 = vmatprep.subr.bf16.mxu0 %v12095_v45  ;;  %v2836_v1 = vsel %vm1445_vm1, %v2832_v47, %v10221_v61  ;;  %v3151_v13 = vsel %vm1445_vm1, %v10182_v24, %v10221_v61 }
 0x491   : > { %7868 = vmatpush3.bf16.msra.mxu1 %v10039_v18 }
 0x492   : > { %3071 = vmatmul.mubr.bf16.gmra.mrb[72].mxu1 %v10154_v51  ;;  %v2846_v56 = vpop.permute.xlu0 %2845  ;;  %7869 = vmatprep.subr.bf16.mxu1 %v10045_v54 }
 0x493   : > { %3199 = vmatprep.mubr.bf16.mxu1 %v3147_v58  ;;  %3218 = vmatpush1.bf16.msra.mxu0 %v10013_v32  ;;  %v10233_v44 = vpop.permute.xlu1 %2847  ;;  %v2865_v51 = vsel %vm1467_vm4, %v2836_v1, %v2846_v56 }
 0x494   : > { %v2850_v34 = vsel %vm1467_vm4, %v2846_v56, %v10233_v44  ;;  %3219 = vmatprep.subr.bf16.mxu0 %v12095_v45 }
 0x495   : > { %7870 = vmatpush3.bf16.msra.mxu1 %v10058_v60  ;;  %7315 = vmatprep.mubr.msk.bf16.mxu0 %vm1489_vm3, %v2850_v34 }
 0x496   : > { %3119 = vmatmul.mubr.bf16.gmra.mrb[180].mxu0 %v2865_v51  ;;  %7871 = vmatprep.subr.bf16.mxu1 %v10064_v50 }
 0x497   : > { %3220 = vmatpush1.bf16.msra.mxu0 %v10032_v11 }
 0x498   : > { %3221 = vmatprep.subr.bf16.mxu0 %v12095_v45 }
 0x499   : > { %7872 = vmatpush3.bf16.msra.mxu1 %v10077_v37 }
 0x49a   : > { %7873 = vmatprep.subr.bf16.mxu1 %v10083_v62 }
 0x49b   : > { %3222 = vmatpush1.bf16.msra.mxu0 %v10051_v57 }
 0x49c   : > { %3223 = vmatprep.subr.bf16.mxu0 %v12095_v45 }
 0x49d   : > { %7874 = vmatpush3.bf16.msra.mxu1 %v10096_v3 }
 0x49e   : > { %7875 = vmatprep.subr.bf16.mxu1 %v10102_v2 }
 0x49f   : > { %3224 = vmatpush1.bf16.msra.mxu0 %v10070_v35 }
 0x4a0   : > { %3225 = vmatprep.subr.bf16.mxu0 %v12095_v45 }
 0x4a1   : > { %7876 = vmatpush3.bf16.msra.mxu1 %v10115_v49 }
 0x4a2   : > { %7877 = vmatprep.subr.bf16.mxu1 %v10121_v55 }
 0x4a3   : > { %3226 = vmatpush1.bf16.msra.mxu0 %v10089_v27 }
 0x4a4   : > { %3227 = vmatprep.subr.bf16.mxu0 %v12095_v45 }
 0x4a5   : > { %7878 = vmatpush3.bf16.msra.mxu1 %v10134_v25 }
 0x4a6   : > { %7891 = vmatprep.subr.bf16.mxu1 %v9996_v53 }
 0x4a7   : > { %3228 = vmatpush1.bf16.msra.mxu0 %v10108_v4 }
 0x4a8   : > { %3200 = vmatmul.mubr.bf16.vlgmr.msra.gmra.mrb[76].mxu1 %v10147_v20  ;;  %3229 = vmatprep.subr.bf16.mxu0 %v12095_v45 }
 0x4a9   : > { %3207 = vmatprep.mubr.bf16.mxu1 %v3151_v13  ;;  %7892 = vmatpush3.bf16.msra.mxu1 %v10001_v31  ;;  %v10270_v53 = vpop.permute.xlu0 %3131 }
 0x4aa   : > { %7893 = vmatprep.subr.bf16.mxu1 %v10006_v12  ;;  %v3284_v12 = vsel %vm1445_vm1, 0.0|0.0, %v10270_v53 }
 0x4ab   : > { %3230 = vmatpush1.bf16.msra.mxu0 %v10127_v52 }
 0x4ac   : > { %3231 = vmatprep.subr.bf16.mxu0 %v12095_v45 }
 0x4ad   : > { %7894 = vmatpush3.bf16.msra.mxu1 %v10020_v36  ;;  %v3135_v36 = vsel %vm1445_vm1, %v10201_v21, %v10270_v53  ;;  %v3134_v0 = vpop.permute.xlu0 %3133 }
 0x4ae   : > { %v10273_v20 = vpop.permute.xlu1 %3139  ;;  %7895 = vmatprep.subr.bf16.mxu1 %v10026_v8 }
 0x4af   : > { %3232 = vmatpush1.bf16.msra.mxu0 %v10152_v28  ;;  %v3143_v31 = vsel %vm1467_vm4, %v10210_v7, %v10273_v20 }
 0x4b0   : > { %3208 = vmatmul.mubr.bf16.gmra.mrb[80].mxu1 %v10156_v30  ;;  %7316 = vmatprep.mubr.msk.bf16.mxu0 %vm1489_vm3, %v3143_v31  ;;  %v3155_v30 = vsel %vm1467_vm4, %v3135_v36, %v10210_v7 }
 0x4b1   : > { %7896 = vmatpush3.bf16.msra.mxu1 %v10039_v18  ;;  %3336 = vmatprep.mubr.bf16.mxu1 %v3284_v12 }
 0x4b2   : > { %3233 = vmatprep.subr.bf16.mxu0 %v12095_v45  ;;  %7897 = vmatprep.subr.bf16.mxu1 %v10045_v54  ;;  %v3136_v54 = vsel %vm1445_vm1, %v10221_v61, %v3134_v0 }
 0x4b3   : > { %3234 = vmatpush1.bf16.msra.mxu0 %v10164_v41 }
 0x4b4   : > { %v3142_v8 = vpop.permute.xlu1 %3141  ;;  %3352 = vmatprep.subr.bf16.mxu0 %v12095_v45 }
 0x4b5   : > { %7898 = vmatpush3.bf16.msra.mxu1 %v10058_v60  ;;  %v3144_v18 = vsel %vm1467_vm4, %v10233_v44, %v3142_v8 }
 0x4b6   : > { %3248 = vmatmul.mubr.bf16.vlgmr.msra.gmra.mrb[184].mxu0 %v3155_v30  ;;  %7899 = vmatprep.subr.bf16.mxu1 %v10064_v50  ;;  %v3159_v50 = vsel %vm1467_vm4, %v3136_v54, %v10233_v44 }
 0x4b7   : > { %7317 = vmatprep.mubr.msk.bf16.mxu0 %vm1489_vm3, %v3144_v18  ;;  %3353 = vmatpush1.bf16.msra.mxu0 %v9991_v43 }
 0x4b8   : > { %3354 = vmatprep.subr.bf16.mxu0 %v12095_v45  ;;  %v3277_v60 = vpop.permute.xlu1 %3276 }
 0x4b9   : > { %7900 = vmatpush3.bf16.msra.mxu1 %v10077_v37  ;;  %v3280_v43 = vsel %vm1467_vm4, %v10273_v20, %v3277_v60 }
 0x4ba   : > { %7901 = vmatprep.subr.bf16.mxu1 %v10083_v62 }
 0x4bb   : > { %3355 = vmatpush1.bf16.msra.mxu0 %v10013_v32  ;;  %v3288_v32 = vsel %vm1445_vm1, 0.0|0.0, %v3134_v0 }
 0x4bc   : > { %3356 = vmatprep.subr.bf16.mxu0 %v12095_v45 }
 0x4bd   : > { %7902 = vmatpush3.bf16.msra.mxu1 %v10096_v3 }
 0x4be   : > { %3256 = vmatmul.mubr.bf16.gmra.mrb[188].mxu0 %v3159_v50  ;;  %7903 = vmatprep.subr.bf16.mxu1 %v10102_v2 }
 0x4bf   : > { %3357 = vmatpush1.bf16.msra.mxu0 %v10032_v11  ;;  %7318 = vmatprep.mubr.msk.bf16.mxu0 %vm1489_vm3, %v3280_v43  ;;  %v3269_v11 = vpop.permute.xlu0 %3268 }
 0x4c0   : > { %3358 = vmatprep.subr.bf16.mxu0 %v12095_v45 }
 0x4c1   : > { %7904 = vmatpush3.bf16.msra.mxu1 %v10115_v49 }
 0x4c2   : > { %7905 = vmatprep.subr.bf16.mxu1 %v10121_v55 }
 0x4c3   : > { %3359 = vmatpush1.bf16.msra.mxu0 %v10051_v57  ;;  %v3272_v57 = vsel %vm1445_vm1, %v10270_v53, %v3269_v11 }
 0x4c4   : > { %3360 = vmatprep.subr.bf16.mxu0 %v12095_v45  ;;  %v3292_v37 = vsel %vm1467_vm4, %v3272_v57, %v10273_v20 }
 0x4c5   : > { %7906 = vmatpush3.bf16.msra.mxu1 %v10134_v25  ;;  %v10350_v25 = vld [vmem:[%s12101_s8] sm:$0x7]  ;;  %s726_s8 = scalar_lea.vmem [#allocation2], %s725_s1 }
 0x4c6   : > { %8311 = vmatprep.subr.bf16.mxu1 %v12073_v6 }
 0x4c7   : > { %3361 = vmatpush1.bf16.msra.mxu0 %v10070_v35  ;;  %v3279_v35 = vpop.permute.xlu1 %3278 }
 0x4c8   : > { %3337 = vmatmul.mubr.bf16.vlgmr.msra.gmra.mrb[84].mxu1 %v10180_v46  ;;  %3362 = vmatprep.subr.bf16.mxu0 %v12095_v45  ;;  %v3281_v62 = vsel %vm1467_vm4, %v3142_v8, %v3279_v35  ;;  %v3405_v46 = vrot.slane %v10350_v25, %v9874_v48 }
 0x4c9   : > { %3344 = vmatprep.mubr.bf16.mxu1 %v3288_v32 }
 0x4cb   : > { %3363 = vmatpush1.bf16.msra.mxu0 %v10089_v27  ;;  %v3271_v27 = vpop.permute.xlu0 %3270 }
 0x4cc   : > { %3364 = vmatprep.subr.bf16.mxu0 %v12095_v45  ;;  %v3273_v3 = vsel %vm1445_vm1, %v3134_v0, %v3271_v27  ;;  %v3409_v0 = vrot.slane %v10350_v25, %v9902_v10 }
 0x4cd   : > { %v3296_v2 = vsel %vm1467_vm4, %v3273_v3, %v3142_v8 }
 0x4cf   : > { %3365 = vmatpush1.bf16.msra.mxu0 %v10108_v4 }
 0x4d0   : > { %3345 = vmatmul.mubr.bf16.gmra.mrb[88].mxu1 %v10182_v24  ;;  %3366 = vmatprep.subr.bf16.mxu0 %v12095_v45 }
 0x4d1   : > { %8315 = vmatprep.mubr.msk.bf16.mxu1 %vm8977_vm2, %v12073_v6 }
 0x4d3   : > { %3367 = vmatpush1.bf16.msra.mxu0 %v10127_v52 }
 0x4d4   : > { %3368 = vmatprep.subr.bf16.mxu0 %v12095_v45 }
 0x4d7   : > { %3369 = vmatpush1.bf16.msra.mxu0 %v10152_v28 }
 0x4d8   : > { %3370 = vmatprep.subr.bf16.mxu0 %v12095_v45 }
 0x4db   : > { %3371 = vmatpush1.bf16.msra.mxu0 %v10164_v41 }
 0x4de   : > { %3385 = vmatmul.mubr.bf16.vlgmr.msra.gmra.mrb[192].mxu0 %v3292_v37 }
 0x4df   : > { %7319 = vmatprep.mubr.msk.bf16.mxu0 %vm1489_vm3, %v3281_v62 }
 0x4e6   : > { %3393 = vmatmul.mubr.bf16.gmra.mrb[196].mxu0 %v3296_v2 }
 0x4e7   : > { %3536 = vmatprep.mubr.bf16.mxu0 %v12095_v45 }
 0x55b   : > { %v7851_v4 = vpop.f32.mrb[68].mxu1 }
 0x55c   : > { %v7852_v49 = vpop.f32.mrb[69].mxu1 }
 0x55d   : > { %v7853_v55 = vadd.f32 %v7852_v49, %v7851_v4  ;;  %v7854_v52 = vpop.f32.mrb[70].mxu1 }
 0x55e   : > { %v7855_v28 = vpop.f32.mrb[71].mxu1 }
 0x55f   : > { %v7856_v41 = vadd.f32 %v7855_v28, %v7854_v52 }
 0x561   : > { %v3112_v24 = vpop.f32.mrb[176].mxu0 }
 0x562   : > { %v3113_v9 = vadd.f32 %v7853_v55, %v3112_v24  ;;  %v3114_v59 = vpop.f32.mrb[177].mxu0 }
 0x563   : > { %v3115_v14 = vpop.f32.mrb[178].mxu0 }
 0x564   : > { %v3417_v22 = vadd.f32 %v3405_v46, %v3113_v9  ;;  %v3116_v38 = vadd.f32 %v7856_v41, %v3115_v14  ;;  %v3117_v40 = vpop.f32.mrb[179].mxu0  ;;  %v3491_v14 = vsel %vm3490_vm11, 4294967295, %v8978_v5  ;;  %vm4232_vm11 = vcmask 1045504  }
 0x565   : > { %v7857_v39 = vpop.f32.mrb[72].mxu1 }
 0x566   : > { %v3435_v16 = vmul.f32 0.01, %v3417_v22  ;;  %v3420_v21 = vadd.f32 %v3405_v46, %v3116_v38  ;;  %v7858_v42 = vpop.f32.mrb[73].mxu1  ;;  %vm3426_vm1 = vcmp.ge.f32.partialorder %v3417_v22, 0.0 }
 0x567   : > { %v7859_v23 = vadd.f32 %v7858_v42, %v7857_v39  ;;  %v7860_v7 = vpop.f32.mrb[74].mxu1  ;;  %v3492_v39 = vsel %vm2820_vm7, %v3491_v14, 0  ;;  %v10453_v14 = vld [vmem:[%s11996_s10 + $0x18] sm:$0xff]   ;;  %vm3881_vm7 = vcmask 392192  }
 0x568   : > { %vm3429_vm3 = vcmp.ge.f32.partialorder %v3420_v21, 0.0  ;;  %v3438_v29 = vmul.f32 0.01, %v3420_v21  ;;  %v7861_v26 = vpop.f32.mrb[75].mxu1  ;;  %v3444_v47 = vsel %vm3426_vm1, %v3417_v22, %v3435_v16  ;;  %vm4224_vm1 = vcmask 89088  }
 0x569   : > { %v3120_v33 = vpop.f32.mrb[180].mxu0  ;;  %v8570_v26 = vld [vmem:[%s11995_s9] sm:$0xff]  }
 0x56a   : > { %v3447_v61 = vsel %vm3429_vm3, %v3420_v21, %v3438_v29  ;;  %v3121_v19 = vadd.f32 %v7859_v23, %v3120_v33  ;;  %v3122_v56 = vpop.f32.mrb[181].mxu0 }
 0x56b   : > { %v3123_v58 = vpop.f32.mrb[182].mxu0  ;;  %v3453_v44 = vpack.c.bf16 %v3447_v61, %v3444_v47 }
 0x56c   : > { %v3124_v1 = vpop.f32.mrb[183].mxu0  ;;  %v3423_v35 = vadd.f32 %v3405_v46, %v3121_v19 }
 0x56e   : > { %v3441_v3 = vmul.f32 0.01, %v3423_v35  ;;  %vm3432_vm10 = vcmp.ge.f32.partialorder %v3423_v35, 0.0 }
 0x570   : > { %v3450_v59 = vsel %vm3432_vm10, %v3423_v35, %v3441_v3 }
 0x571   : > { %v3456_v22 = vpack.c.bf16 %v3450_v59, %v3450_v59  ;;  %v10440_v59 = vld [vmem:[%s11996_s10 + $0x58] sm:$0xff]  }
 0x573   : > { %v3494_v23 = vand.u32 %v3492_v39, %v3456_v22  ;;  %v10459_v22 = vld [vmem:[%s11996_s10 + $0x60] sm:$0xff]  }
 0x57b   : > { %v7879_v34 = vpop.f32.mrb[76].mxu1 }
 0x57c   : > { %v7880_v51 = vpop.f32.mrb[77].mxu1 }
 0x57d   : > { %v7881_v13 = vadd.f32 %v7880_v51, %v7879_v34  ;;  %v7882_v53 = vpop.f32.mrb[78].mxu1  ;;  %v8572_v34 = vld [vmem:[%s11995_s9 + $0x10] sm:$0xff]   ;;  %v3413_v51 = vrot.slane %v10350_v25, %v9928_v63 }
 0x57e   : > { %v7883_v20 = vpop.f32.mrb[79].mxu1 }
 0x57f   : > { %v7884_v31 = vadd.f32 %v7883_v20, %v7882_v53 }
 0x583   : > { %v7885_v12 = vpop.f32.mrb[80].mxu1 }
 0x584   : > { %v7886_v36 = vpop.f32.mrb[81].mxu1 }
 0x585   : > { %v7887_v8 = vadd.f32 %v7886_v36, %v7885_v12  ;;  %v7888_v30 = vpop.f32.mrb[82].mxu1 }
 0x586   : > { %v7889_v18 = vpop.f32.mrb[83].mxu1 }
 0x589   : > { %v3249_v54 = vpop.f32.mrb[184].mxu0 }
 0x58a   : > { %v3250_v60 = vadd.f32 %v7881_v13, %v3249_v54  ;;  %v3251_v50 = vpop.f32.mrb[185].mxu0 }
 0x58b   : > { %v3252_v43 = vpop.f32.mrb[186].mxu0 }
 0x58c   : > { %v3418_v32 = vadd.f32 %v3409_v0, %v3250_v60  ;;  %v3253_v11 = vadd.f32 %v7884_v31, %v3252_v43  ;;  %v3254_v57 = vpop.f32.mrb[187].mxu0 }
 0x58e   : > { %v3436_v37 = vmul.f32 0.01, %v3418_v32  ;;  %v3421_v62 = vadd.f32 %v3409_v0, %v3253_v11  ;;  %vm3427_vm8 = vcmp.ge.f32.partialorder %v3418_v32, 0.0 }
 0x590   : > { %vm3430_vm9 = vcmp.ge.f32.partialorder %v3421_v62, 0.0  ;;  %v3439_v27 = vmul.f32 0.01, %v3421_v62  ;;  %v3445_v55 = vsel %vm3427_vm8, %v3418_v32, %v3436_v37  ;;  %vm4231_vm8 = vcmask 1044480  }
 0x591   : > { %v3257_v2 = vpop.f32.mrb[188].mxu0 }
 0x592   : > { %v3258_v4 = vadd.f32 %v7887_v8, %v3257_v2  ;;  %v3259_v49 = vpop.f32.mrb[189].mxu0  ;;  %v3448_v52 = vsel %vm3430_vm9, %v3421_v62, %v3439_v27  ;;  %v10386_v2 = vld [vmem:[%s11996_s10 + $0x80] sm:$0xff]  }
 0x593   : > { %v3260_v28 = vpop.f32.mrb[190].mxu0  ;;  %v3454_v41 = vpack.c.bf16 %v3448_v52, %v3445_v55  ;;  %v10396_v49 = vld [vmem:[%s11996_s10] sm:$0xff]   ;;  %v10401_v55 = vld [vmem:[%s11996_s10 + $0x48] sm:$0xff]  }
 0x594   : > { %v3424_v24 = vadd.f32 %v3409_v0, %v3258_v4  ;;  %v3261_v9 = vpop.f32.mrb[191].mxu0  ;;  %v10391_v4 = vld [vmem:[%s11996_s10 + $0x40] sm:$0xff]   ;;  %v10408_v52 = vld [vmem:[%s11996_s10 + $0x88] sm:$0xff]  }
 0x595   : > { %3504 = vmatprep.subr.bf16.mxu0 %v3454_v41  ;;  %v10415_v28 = vld [vmem:[%s11996_s10 + $0x8] sm:$0xff]   ;;  %v10421_v41 = vld [vmem:[%s11996_s10 + $0x50] sm:$0xff]  }
 0x596   : > { %vm3433_vm12 = vcmp.ge.f32.partialorder %v3424_v24, 0.0  ;;  %v3442_v46 = vmul.f32 0.01, %v3424_v24  ;;  %3505 = vmatpush1.bf16.msra.mxu0 %v3453_v44  ;;  %v8571_v44 = vld [vmem:[%s11995_s9 + $0x8] sm:$0xff]   ;;  %v10434_v9 = vld [vmem:[%s11996_s10 + $0x10] sm:$0xff]  }
 0x598   : > { %v3451_v38 = vsel %vm3433_vm12, %v3424_v24, %v3442_v46  ;;  %v10427_v24 = vld [vmem:[%s11996_s10 + $0x90] sm:$0xff]   ;;  %v10446_v46 = vld [vmem:[%s11996_s10 + $0x98] sm:$0xff]  }
 0x599   : > { %v3457_v40 = vpack.c.bf16 %v3451_v38, %v3451_v38  ;;  %v10465_v38 = vld [vmem:[%s11996_s10 + $0xa0] sm:$0xff]  }
 0x59b   : > { %v7907_v16 = vpop.f32.mrb[84].mxu1  ;;  %v3497_v21 = vand.u32 %v3492_v39, %v3457_v40  ;;  %v10472_v40 = vld [vmem:[%s11996_s10 + $0x20] sm:$0xff]  }
 0x59c   : > { %v7908_v42 = vpop.f32.mrb[85].mxu1 }
 0x59d   : > { %v7909_v7 = vadd.f32 %v7908_v42, %v7907_v16  ;;  %v7910_v29 = vpop.f32.mrb[86].mxu1  ;;  %3506 = vmatprep.subr.bf16.mxu0 %v3497_v21  ;;  %v10484_v16 = vld [vmem:[%s11996_s10 + $0xa8] sm:$0xff]   ;;  %v10497_v42 = vld [vmem:[%s11996_s10 + $0x70] sm:$0xff]  }
 0x59e   : > { %v7911_v33 = vpop.f32.mrb[87].mxu1  ;;  %3507 = vmatpush1.bf16.msra.mxu0 %v3494_v23  ;;  %v10491_v21 = vld [vmem:[%s11996_s10 + $0x28] sm:$0xff]   ;;  %v10503_v23 = vld [vmem:[%s11996_s10 + $0xb0] sm:$0xff]  }
 0x59f   : > { %v7912_v47 = vadd.f32 %v7911_v33, %v7910_v29  ;;  %7924 = vmatprep.subr.bf16.mxu0 %v10391_v4  ;;  %v10516_v29 = vld [vmem:[%s11996_s10 + $0x78] sm:$0xff]  }
 0x5a0   : > { %v10529_v33 = vld [vmem:[%s11996_s10 + $0x38] sm:$0xff]  }
 0x5a1   : > { %7323 = vmatmul.mubr.msk.bf16.vlgmr.msra.gmra.mrb[200].mxu0 %vm3480_vm13, %v8570_v26 }
 0x5a2   : > { %3546 = vmatprep.mubr.bf16.mxu0 %v12095_v45  ;;  %7925 = vmatpush3.bf16.msra.mxu0 %v10396_v49 }
 0x5a3   : > { %v7913_v61 = vpop.f32.mrb[88].mxu1  ;;  %7926 = vmatprep.subr.bf16.mxu0 %v10401_v55 }
 0x5a4   : > { %v7914_v19 = vpop.f32.mrb[89].mxu1 }
 0x5a5   : > { %v7915_v56 = vadd.f32 %v7914_v19, %v7913_v61  ;;  %v7916_v58 = vpop.f32.mrb[90].mxu1 }
 0x5a6   : > { %v7917_v1 = vpop.f32.mrb[91].mxu1  ;;  %7927 = vmatpush3.bf16.msra.mxu0 %v10415_v28  ;;  %v10546_v58 = vld [vmem:[%s11996_s10 + $0xc8] sm:$0xff]  }
 0x5a7   : > { %7928 = vmatprep.subr.bf16.mxu0 %v10421_v41 }
 0x5a9   : > { %7324 = vmatmul.mubr.msk.bf16.gmra.mrb[204].mxu0 %vm3480_vm13, %v8571_v44 }
 0x5aa   : > { %3556 = vmatprep.mubr.bf16.mxu0 %v12095_v45  ;;  %7929 = vmatpush3.bf16.msra.mxu0 %v10434_v9 }
 0x5ab   : > { %7930 = vmatprep.subr.bf16.mxu0 %v10440_v59 }
 0x5ae   : > { %7931 = vmatpush3.bf16.msra.mxu0 %v10453_v14 }
 0x5af   : > { %7932 = vmatprep.subr.bf16.mxu0 %v10459_v22 }
 0x5b1   : > { %v3386_v13 = vpop.f32.mrb[192].mxu0  ;;  %7325 = vmatmul.mubr.msk.bf16.gmra.mrb[208].mxu0 %vm3480_vm13, %v8572_v34 }
 0x5b2   : > { %v3387_v53 = vadd.f32 %v7909_v7, %v3386_v13  ;;  %v3388_v20 = vpop.f32.mrb[193].mxu0  ;;  %7933 = vmatpush3.bf16.msra.mxu0 %v10472_v40  ;;  %v10510_v7 = vld [vmem:[%s11996_s10 + $0x30] sm:$0xff]  }
 0x5b3   : > { %v3389_v31 = vpop.f32.mrb[194].mxu0 }
 0x5b4   : > { %v3419_v12 = vadd.f32 %v3413_v51, %v3387_v53  ;;  %v3390_v36 = vadd.f32 %v7912_v47, %v3389_v31  ;;  %v3391_v8 = vpop.f32.mrb[195].mxu0  ;;  %v10539_v47 = vld [vmem:[%s11996_s10 + $0xc0] sm:$0xff]  }
 0x5b6   : > { %v3437_v30 = vmul.f32 0.01, %v3419_v12  ;;  %v3422_v18 = vadd.f32 %v3413_v51, %v3390_v36  ;;  %vm3428_vm14 = vcmp.ge.f32.partialorder %v3419_v12, 0.0 }
 0x5b8   : > { %vm3431_vm15 = vcmp.ge.f32.partialorder %v3422_v18, 0.0  ;;  %v3440_v0 = vmul.f32 0.01, %v3422_v18  ;;  %v3446_v60 = vsel %vm3428_vm14, %v3419_v12, %v3437_v30  ;;  %vm4431_vm14 = vcmask 523264  }
 0x5b9   : > { %v3394_v54 = vpop.f32.mrb[196].mxu0 }
 0x5ba   : > { %v3449_v50 = vsel %vm3431_vm15, %v3422_v18, %v3440_v0  ;;  %v3395_v43 = vadd.f32 %v7915_v56, %v3394_v54  ;;  %v3396_v32 = vpop.f32.mrb[197].mxu0 }
 0x5bb   : > { %v3397_v25 = vpop.f32.mrb[198].mxu0  ;;  %v3455_v11 = vpack.c.bf16 %v3449_v50, %v3446_v60 }
 0x5bc   : > { %v3425_v57 = vadd.f32 %v3413_v51, %v3395_v43  ;;  %v3398_v35 = vpop.f32.mrb[199].mxu0  ;;  %v10555_v51 = vld [vmem:[%s11996_s10 + $0xd0] sm:$0xff]  }
 0x5bd   : > { %8312 = vmatpush3.bf16.msra.mxu1 %v3455_v11 }
 0x5be   : > { %vm3434_vm6 = vcmp.ge.f32.partialorder %v3425_v57, 0.0  ;;  %v3443_v37 = vmul.f32 0.01, %v3425_v57  ;;  %8313 = vmatprep.subr.bf16.mxu1 %v12073_v6 }
 0x5c0   : > { %v3452_v62 = vsel %vm3434_vm6, %v3425_v57, %v3443_v37 }
 0x5c1   : > { %v3458_v27 = vpack.c.bf16 %v3452_v62, %v3452_v62 }
 0x5c3   : > { %v3500_v3 = vand.u32 %v3492_v39, %v3458_v27  ;;  %v10478_v39 = vld [vmem:[%s11996_s10 + $0x68] sm:$0xff]  }
 0x5c4   : > { %7934 = vmatprep.subr.bf16.mxu0 %v10478_v39 }
 0x5c5   : > { %8314 = vmatpush3.bf16.msra.mxu1 %v3500_v3  ;;  %7935 = vmatpush3.bf16.msra.mxu0 %v10491_v21 }
 0x5c6   : > { %3926 = vmatprep.subr.bf16.mxu1 %v12095_v45  ;;  %7936 = vmatprep.subr.bf16.mxu0 %v10497_v42 }
 0x5c8   : > { %8316 = vmatmul.mubr.msk.bf16.vlgmr.msra.gmra.mrb[92].mxu1 %vm3480_vm13, %v8570_v26  ;;  %v10522_v26 = vld [vmem:[%s11996_s10 + $0xb8] sm:$0xff]  }
 0x5c9   : > { %8319 = vmatprep.mubr.msk.bf16.mxu1 %vm8977_vm2, %v12073_v6  ;;  %3927 = vmatpush1.bf16.msra.mxu1 %v10386_v2 }
 0x5ca   : > { %3928 = vmatprep.subr.bf16.mxu1 %v12095_v45  ;;  %7937 = vmatpush3.bf16.msra.mxu0 %v10510_v7 }
 0x5cb   : > { %7938 = vmatprep.subr.bf16.mxu0 %v10516_v29 }
 0x5cd   : > { %3929 = vmatpush1.bf16.msra.mxu1 %v10408_v52 }
 0x5ce   : > { %3930 = vmatprep.subr.bf16.mxu1 %v12095_v45  ;;  %7939 = vmatpush3.bf16.msra.mxu0 %v10529_v33 }
 0x5cf   : > { %7946 = vmatprep.subr.bf16.mxu0 %v10391_v4 }
 0x5d0   : > { %8320 = vmatmul.mubr.msk.bf16.gmra.mrb[96].mxu1 %vm3480_vm13, %v8571_v44 }
 0x5d1   : > { %8323 = vmatprep.mubr.msk.bf16.mxu1 %vm8977_vm2, %v12073_v6  ;;  %3931 = vmatpush1.bf16.msra.mxu1 %v10427_v24 }
 0x5d2   : > { %3932 = vmatprep.subr.bf16.mxu1 %v12095_v45 }
 0x5d5   : > { %3933 = vmatpush1.bf16.msra.mxu1 %v10446_v46 }
 0x5d6   : > { %3934 = vmatprep.subr.bf16.mxu1 %v12095_v45 }
 0x5d8   : > { %8324 = vmatmul.mubr.msk.bf16.gmra.mrb[100].mxu1 %vm3480_vm13, %v8572_v34 }
 0x5d9   : > { %3935 = vmatpush1.bf16.msra.mxu1 %v10465_v38 }
 0x5da   : > { %3936 = vmatprep.subr.bf16.mxu1 %v12095_v45 }
 0x5dd   : > { %3937 = vmatpush1.bf16.msra.mxu1 %v10484_v16 }
 0x5de   : > { %3938 = vmatprep.subr.bf16.mxu1 %v12095_v45 }
 0x5e1   : > { %3939 = vmatpush1.bf16.msra.mxu1 %v10503_v23 }
 0x5e2   : > { %3940 = vmatprep.subr.bf16.mxu1 %v12095_v45 }
 0x5e5   : > { %3941 = vmatpush1.bf16.msra.mxu1 %v10522_v26 }
 0x5e6   : > { %3942 = vmatprep.subr.bf16.mxu1 %v12095_v45 }
 0x5e9   : > { %3943 = vmatpush1.bf16.msra.mxu1 %v10539_v47 }
 0x5ea   : > { %3944 = vmatprep.subr.bf16.mxu1 %v12095_v45 }
 0x5ed   : > { %3945 = vmatpush1.bf16.msra.mxu1 %v10546_v58 }
 0x5ee   : > { %3946 = vmatprep.subr.bf16.mxu1 %v12095_v45 }
 0x5f1   : > { %3947 = vmatpush1.bf16.msra.mxu1 %v10555_v51 }
 0x5f2   : > { %4027 = vmatprep.subr.bf16.mxu1 %v12095_v45 }
 0x674   : > { %v3538_v61 = vpop.f32.mrb[200].mxu0 }
 0x675   : > { %v3540_v19 = vpop.f32.mrb[201].mxu0 }
 0x676   : > { %v3542_v56 = vpop.f32.mrb[202].mxu0 }
 0x677   : > { %v3630_v44 = vpack.c.bf16 %v3542_v56, %v3538_v61  ;;  %v3544_v1 = vpop.f32.mrb[203].mxu0 }
 0x678   : > { %v10548_v34 = vpack.c.bf16 %v3544_v1, %v3540_v19 }
 0x67c   : > { %v3548_v13 = vpop.f32.mrb[204].mxu0 }
 0x67d   : > { %v3550_v53 = vpop.f32.mrb[205].mxu0 }
 0x67e   : > { %v3552_v20 = vpop.f32.mrb[206].mxu0 }
 0x67f   : > { %v3634_v31 = vpack.c.bf16 %v3552_v20, %v3548_v13  ;;  %v3554_v12 = vpop.f32.mrb[207].mxu0 }
 0x680   : > { %v3635_v36 = vpack.c.bf16 %v3554_v12, %v3550_v53 }
 0x681   : > { %3698 = vrot.lane.b32.xlu0 %v3634_v31, %s12100_s26 }
 0x682   : > { %3700 = vrot.lane.b32.xlu1 %v3635_v36, %s12100_s26 }
 0x684   : > { %v3558_v8 = vpop.f32.mrb[208].mxu0 }
 0x685   : > { %v3560_v30 = vpop.f32.mrb[209].mxu0 }
 0x686   : > { %v3562_v18 = vpop.f32.mrb[210].mxu0 }
 0x687   : > { %v3638_v0 = vpack.c.bf16 %v3562_v18, %v3558_v8  ;;  %v3564_v54 = vpop.f32.mrb[211].mxu0 }
 0x688   : > { %v3639_v60 = vpack.c.bf16 %v3564_v54, %v3560_v30 }
 0x689   : > { %3705 = vrot.lane.b32.xlu0 %v3638_v0, %s8980_s29 }
 0x68a   : > { %3707 = vrot.lane.b32.xlu1 %v3639_v60, %s8980_s29 }
 0x69b   : > { %v3601_v50 = vpop.f32.mrb[92].mxu1 }
 0x69c   : > { %v8317_v43 = vpop.f32.mrb[93].mxu1 }
 0x69d   : > { %v3605_v32 = vpop.f32.mrb[94].mxu1 }
 0x69e   : > { %v10563_v25 = vpack.c.bf16 %v3605_v32, %v3601_v50  ;;  %v8318_v11 = vpop.f32.mrb[95].mxu1 }
 0x6a3   : > { %v3611_v57 = vpop.f32.mrb[96].mxu1 }
 0x6a4   : > { %v8321_v35 = vpop.f32.mrb[97].mxu1 }
 0x6a5   : > { %v3615_v37 = vpop.f32.mrb[98].mxu1 }
 0x6a6   : > { %v3636_v62 = vpack.c.bf16 %v3615_v37, %v3611_v57  ;;  %v8322_v27 = vpop.f32.mrb[99].mxu1 }
 0x6a8   : > { %3968 = vrot.lane.b32.xlu0 %v3636_v62, %s12100_s26 }
 0x6ab   : > { %v3621_v3 = vpop.f32.mrb[100].mxu1 }
 0x6ac   : > { %4069 = vrot.lane.b32.xlu0 %v8979_v15, %s12100_s26  ;;  %v8325_v61 = vpop.f32.mrb[101].mxu1  ;;  %s7089_s26 = sshll.u32 %s726_s8, 4  ;;  %s11946_s26 = int_to_ptr.vmem [resolvable:$true] %s7089_s26 }
 0x6ad   : > { %v3625_v19 = vpop.f32.mrb[102].mxu1  ;;  %s8908_s27 = scalar_lea.vmem %s11946_s26, 16  ;;  %p8915_p0 = scmp.lt.s32.totalorder %s11946_s26, %s8913_s24 }
 0x6ae   : > { %v3640_v56 = vpack.c.bf16 %v3625_v19, %v3621_v3  ;;  %v8326_v1 = vpop.f32.mrb[103].mxu1  ;;  %p8909_p11 = scmp.ne.s32.totalorder %s11946_s26, %s8908_s27  ;;  %p8916_p1 = scmp.lt.s32.totalorder %s8914_s6, %s8908_s27 }
 0x6b0   : > { %3972 = vrot.lane.b32.xlu1 %v3640_v56, %s8980_s29  ;;  %p8910_p12 = pnand %p8909_p11, %p9141_p5  ;;  %p8917_p2 = por %p8916_p1, %p8915_p0 }
 0x6b2   : > { %p8911_p13 = pneg %p8910_p12 }
 0x6b4   : > { %4073 = vrot.lane.b32.xlu1 %v8979_v15, %s8980_s29  ;;  %p8918_p3 = pnand %p8917_p2, %p8911_p13 }
 0x6f3   : > { %v3699_v13 = vpop.permute.xlu0 %3698 }
 0x6f4   : > { %v10571_v53 = vpop.permute.xlu1 %3700  ;;  %v3713_v20 = vsel %vm1467_vm4, %v10548_v34, %v3699_v13 }
 0x6f5   : > { %3917 = vmatprep.mubr.bf16.mxu0 %v3713_v20  ;;  %v3977_v31 = vsel %vm1467_vm4, %v10563_v25, %v10571_v53  ;;  %v3702_v8 = vsel %vm1467_vm4, %v3699_v13, %v10571_v53 }
 0x6f6   : > { %3918 = vmatmul.mubr.bf16.vlgmr.msra.gmra.mrb[212].mxu0 %v3630_v44 }
 0x6f7   : > { %7947 = vmatpush3.bf16.msra.mxu0 %v10396_v49  ;;  %4018 = vmatprep.mubr.bf16.mxu0 %v3977_v31  ;;  %v4233_v31 = vsel %vm4231_vm8, 4294967295, %v8978_v5  ;;  %v8601_v5 = vld [vmem:[%s11998_s12 + $0x8] ss:$0 sps:$4 sm:$0xff]  }
 0x6f8   : > { %7948 = vmatprep.subr.bf16.mxu0 %v10401_v55 }
 0x6fb   : > { %7949 = vmatpush3.bf16.msra.mxu0 %v10415_v28  ;;  %v3706_v12 = vpop.permute.xlu0 %3705 }
 0x6fc   : > { %v3708_v36 = vpop.permute.xlu1 %3707  ;;  %7950 = vmatprep.subr.bf16.mxu0 %v10421_v41  ;;  %v3717_v18 = vsel %vm1736_vm5, %v3702_v8, %v3706_v12 }
 0x6fd   : > { %v3710_v30 = vsel %vm1736_vm5, %v3706_v12, %v3708_v36 }
 0x6fe   : > { %7356 = vmatprep.mubr.msk.bf16.mxu1 %vm3881_vm7, %v3710_v30  ;;  %v4234_v30 = vsel %vm4232_vm11, %v4233_v31, 0  ;;  %v10877_v31 = vld [vmem:[%s11999_s13 + $0xe0] sm:$0xff]  }
 0x6ff   : > { %7951 = vmatpush3.bf16.msra.mxu0 %v10434_v9  ;;  %3959 = vmatmul.mubr.bf16.vlgmr.msra.gmra.mrb[104].mxu1 %v3717_v18 }
 0x700   : > { %4028 = vmatpush1.bf16.msra.mxu1 %v10386_v2  ;;  %7952 = vmatprep.subr.bf16.mxu0 %v10440_v59 }
 0x701   : > { %4029 = vmatprep.subr.bf16.mxu1 %v12095_v45 }
 0x703   : > { %7953 = vmatpush3.bf16.msra.mxu0 %v10453_v14 }
 0x704   : > { %4030 = vmatpush1.bf16.msra.mxu1 %v10408_v52  ;;  %7954 = vmatprep.subr.bf16.mxu0 %v10459_v22 }
 0x705   : > { %4031 = vmatprep.subr.bf16.mxu1 %v12095_v45 }
 0x707   : > { %7955 = vmatpush3.bf16.msra.mxu0 %v10472_v40 }
 0x708   : > { %4032 = vmatpush1.bf16.msra.mxu1 %v10427_v24  ;;  %7956 = vmatprep.subr.bf16.mxu0 %v10478_v39 }
 0x709   : > { %4033 = vmatprep.subr.bf16.mxu1 %v12095_v45 }
 0x70b   : > { %7957 = vmatpush3.bf16.msra.mxu0 %v10491_v21 }
 0x70c   : > { %4034 = vmatpush1.bf16.msra.mxu1 %v10446_v46  ;;  %7958 = vmatprep.subr.bf16.mxu0 %v10497_v42 }
 0x70d   : > { %4035 = vmatprep.subr.bf16.mxu1 %v12095_v45 }
 0x70f   : > { %7959 = vmatpush3.bf16.msra.mxu0 %v10510_v7 }
 0x710   : > { %4036 = vmatpush1.bf16.msra.mxu1 %v10465_v38  ;;  %7960 = vmatprep.subr.bf16.mxu0 %v10516_v29 }
 0x711   : > { %4037 = vmatprep.subr.bf16.mxu1 %v12095_v45 }
 0x713   : > { %7961 = vmatpush3.bf16.msra.mxu0 %v10529_v33 }
 0x714   : > { %4038 = vmatpush1.bf16.msra.mxu1 %v10484_v16  ;;  %7968 = vmatprep.subr.bf16.mxu0 %v10391_v4 }
 0x715   : > { %4039 = vmatprep.subr.bf16.mxu1 %v12095_v45 }
 0x716   : > { %4019 = vmatmul.mubr.bf16.vlgmr.msra.gmra.mrb[216].mxu0 %v10548_v34 }
 0x717   : > { %7969 = vmatpush3.bf16.msra.mxu0 %v10396_v49 }
 0x718   : > { %4040 = vmatpush1.bf16.msra.mxu1 %v10503_v23  ;;  %7970 = vmatprep.subr.bf16.mxu0 %v10401_v55 }
 0x719   : > { %4041 = vmatprep.subr.bf16.mxu1 %v12095_v45 }
 0x71a   : > { %v3969_v44 = vpop.permute.xlu0 %3968 }
 0x71b   : > { %7971 = vmatpush3.bf16.msra.mxu0 %v10415_v28  ;;  %v4078_v0 = vsel %vm1467_vm4, 0.0|0.0, %v3969_v44  ;;  %v3970_v55 = vsel %vm1467_vm4, %v10571_v53, %v3969_v44 }
 0x71c   : > { %4042 = vmatpush1.bf16.msra.mxu1 %v10522_v26  ;;  %7972 = vmatprep.subr.bf16.mxu0 %v10421_v41  ;;  %v3981_v41 = vsel %vm1736_vm5, %v3970_v55, %v3708_v36 }
 0x71d   : > { %4043 = vmatprep.subr.bf16.mxu1 %v12095_v45  ;;  %4119 = vmatprep.mubr.bf16.mxu0 %v4078_v0 }
 0x71f   : > { %7973 = vmatpush3.bf16.msra.mxu0 %v10434_v9 }
 0x720   : > { %4044 = vmatpush1.bf16.msra.mxu1 %v10539_v47  ;;  %7974 = vmatprep.subr.bf16.mxu0 %v10440_v59  ;;  %v10673_v59 = vld [vmem:[%s11998_s12] sm:$0xff]  }
 0x721   : > { %4045 = vmatprep.subr.bf16.mxu1 %v12095_v45 }
 0x722   : > { %v3973_v4 = vpop.permute.xlu1 %3972 }
 0x723   : > { %7975 = vmatpush3.bf16.msra.mxu0 %v10453_v14  ;;  %v3974_v49 = vsel %vm1736_vm5, %v3708_v36, %v3973_v4 }
 0x724   : > { %4046 = vmatpush1.bf16.msra.mxu1 %v10546_v58  ;;  %7357 = vmatprep.mubr.msk.bf16.mxu1 %vm3881_vm7, %v3974_v49 }
 0x725   : > { %7976 = vmatprep.subr.bf16.mxu0 %v10459_v22  ;;  %4047 = vmatprep.subr.bf16.mxu1 %v12095_v45 }
 0x726   : > { %v4074_v28 = vpop.permute.xlu1 %4073 }
 0x727   : > { %7977 = vmatpush3.bf16.msra.mxu0 %v10472_v40  ;;  %v4075_v9 = vsel %vm1736_vm5, %v3973_v4, %v4074_v28 }
 0x728   : > { %4048 = vmatpush1.bf16.msra.mxu1 %v10555_v51  ;;  %7978 = vmatprep.subr.bf16.mxu0 %v10478_v39 }
 0x729   : > { %4128 = vmatprep.subr.bf16.mxu1 %v12095_v45 }
 0x72b   : > { %4060 = vmatmul.mubr.bf16.vlgmr.msra.gmra.mrb[108].mxu1 %v3981_v41  ;;  %7979 = vmatpush3.bf16.msra.mxu0 %v10491_v21 }
 0x72c   : > { %4129 = vmatpush1.bf16.msra.mxu1 %v10386_v2  ;;  %7358 = vmatprep.mubr.msk.bf16.mxu1 %vm3881_vm7, %v4075_v9  ;;  %v4070_v2 = vpop.permute.xlu0 %4069 }
 0x72d   : > { %7980 = vmatprep.subr.bf16.mxu0 %v10497_v42  ;;  %4130 = vmatprep.subr.bf16.mxu1 %v12095_v45 }
 0x72f   : > { %7981 = vmatpush3.bf16.msra.mxu0 %v10510_v7 }
 0x730   : > { %4131 = vmatpush1.bf16.msra.mxu1 %v10408_v52  ;;  %7982 = vmatprep.subr.bf16.mxu0 %v10516_v29  ;;  %v4071_v52 = vsel %vm1467_vm4, %v3969_v44, %v4070_v2 }
 0x731   : > { %4132 = vmatprep.subr.bf16.mxu1 %v12095_v45 }
 0x733   : > { %7983 = vmatpush3.bf16.msra.mxu0 %v10529_v33 }
 0x734   : > { %4133 = vmatpush1.bf16.msra.mxu1 %v10427_v24  ;;  %v4082_v24 = vsel %vm1736_vm5, %v4071_v52, %v3973_v4 }
 0x735   : > { %4134 = vmatprep.subr.bf16.mxu1 %v12095_v45 }
 0x736   : > { %4120 = vmatmul.mubr.bf16.vlgmr.msra.gmra.mrb[220].mxu0 %v10563_v25 }
 0x737   : > { %8329 = vmatprep.mubr.msk.bf16.mxu0 %vm4224_vm1, %v10673_v59 }
 0x738   : > { %4135 = vmatpush1.bf16.msra.mxu1 %v10446_v46 }
 0x739   : > { %4136 = vmatprep.subr.bf16.mxu1 %v12095_v45 }
 0x73c   : > { %4137 = vmatpush1.bf16.msra.mxu1 %v10465_v38 }
 0x73d   : > { %4138 = vmatprep.subr.bf16.mxu1 %v12095_v45 }
 0x740   : > { %4139 = vmatpush1.bf16.msra.mxu1 %v10484_v16  ;;  %v4169_v16 = vld [vmem:[%s11997_s11] sm:$0x7] }
 0x741   : > { %4140 = vmatprep.subr.bf16.mxu1 %v12095_v45  ;;  %v4174_v21 = vrot.slane %v4169_v16, %v9874_v48  ;;  %v4178_v37 = vrot.slane %v4169_v16, %v9902_v10  ;;  %v4182_v9 = vrot.slane %v4169_v16, %v9928_v63  ;;  %v10696_v16 = vld [vmem:[%s11999_s13 + $0x80] sm:$0xff]  }
 0x744   : > { %4141 = vmatpush1.bf16.msra.mxu1 %v10503_v23 }
 0x745   : > { %4142 = vmatprep.subr.bf16.mxu1 %v12095_v45 }
 0x748   : > { %4143 = vmatpush1.bf16.msra.mxu1 %v10522_v26 }
 0x749   : > { %4144 = vmatprep.subr.bf16.mxu1 %v12095_v45 }
 0x74c   : > { %4145 = vmatpush1.bf16.msra.mxu1 %v10539_v47 }
 0x74d   : > { %4146 = vmatprep.subr.bf16.mxu1 %v12095_v45 }
 0x750   : > { %4147 = vmatpush1.bf16.msra.mxu1 %v10546_v58 }
 0x751   : > { %4148 = vmatprep.subr.bf16.mxu1 %v12095_v45 }
 0x754   : > { %4149 = vmatpush1.bf16.msra.mxu1 %v10555_v51 }
 0x757   : > { %4161 = vmatmul.mubr.bf16.vlgmr.msra.gmra.mrb[112].mxu1 %v4082_v24 }
 0x758   : > { %4278 = vmatprep.mubr.bf16.mxu1 %v12095_v45 }
 0x7c9   : > { %v7940_v46 = vpop.f32.mrb[212].mxu0 }
 0x7ca   : > { %v7941_v14 = vpop.f32.mrb[213].mxu0 }
 0x7cb   : > { %v7942_v22 = vadd.f32 %v7941_v14, %v7940_v46  ;;  %v7943_v38 = vpop.f32.mrb[214].mxu0 }
 0x7cc   : > { %v7944_v40 = vpop.f32.mrb[215].mxu0 }
 0x7cd   : > { %v7945_v39 = vadd.f32 %v7944_v40, %v7943_v38 }
 0x7d2   : > { %v3960_v42 = vpop.f32.mrb[104].mxu1 }
 0x7d3   : > { %v3961_v23 = vadd.f32 %v7942_v22, %v3960_v42  ;;  %v3962_v7 = vpop.f32.mrb[105].mxu1 }
 0x7d4   : > { %v3963_v29 = vpop.f32.mrb[106].mxu1 }
 0x7d5   : > { %v4186_v26 = vadd.f32 %v4174_v21, %v3961_v23  ;;  %v3964_v33 = vadd.f32 %v7945_v39, %v3963_v29  ;;  %v3965_v47 = vpop.f32.mrb[107].mxu1  ;;  %v10701_v29 = vld [vmem:[%s11999_s13 + $0x40] sm:$0xff]  }
 0x7d6   : > { %v10720_v47 = vld [vmem:[%s11999_s13 + $0x48] sm:$0xff]  }
 0x7d7   : > { %v4198_v58 = vmul.f32 0.01, %v4186_v26  ;;  %v4189_v34 = vadd.f32 %v4174_v21, %v3964_v33  ;;  %vm4192_vm4 = vcmp.ge.f32.partialorder %v4186_v26, 0.0  ;;  %v10712_v33 = vld [vmem:[%s11999_s13] sm:$0xff]  }
 0x7d9   : > { %vm4195_vm3 = vcmp.ge.f32.partialorder %v4189_v34, 0.0  ;;  %v4201_v51 = vmul.f32 0.01, %v4189_v34  ;;  %v4204_v54 = vsel %vm4192_vm4, %v4186_v26, %v4198_v58  ;;  %v10707_v26 = vld [vmem:[%s11999_s13 + $0x88] sm:$0xff]  }
 0x7da   : > { %v10725_v58 = vld [vmem:[%s11999_s13 + $0x8] sm:$0xff]  }
 0x7db   : > { %v4207_v60 = vsel %vm4195_vm3, %v4189_v34, %v4201_v51  ;;  %v10730_v34 = vld [vmem:[%s11999_s13 + $0x50] sm:$0xff]  }
 0x7dc   : > { %v4210_v50 = vpack.c.bf16 %v4207_v60, %v4204_v54  ;;  %v10736_v51 = vld [vmem:[%s11999_s13 + $0x90] sm:$0xff]   ;;  %v10750_v60 = vld [vmem:[%s11999_s13 + $0x58] sm:$0xff]  }
 0x7dd   : > { %v10744_v54 = vld [vmem:[%s11999_s13 + $0x10] sm:$0xff]  }
 0x7de   : > { %v4236_v55 = vand.u32 %v4234_v30, %v4210_v50  ;;  %v10756_v50 = vld [vmem:[%s11999_s13 + $0x98] sm:$0xff]  }
 0x7e9   : > { %v7962_v43 = vpop.f32.mrb[216].mxu0 }
 0x7ea   : > { %v7963_v32 = vpop.f32.mrb[217].mxu0 }
 0x7eb   : > { %v7964_v25 = vadd.f32 %v7963_v32, %v7962_v43  ;;  %v7965_v11 = vpop.f32.mrb[218].mxu0  ;;  %v10763_v43 = vld [vmem:[%s11999_s13 + $0x18] sm:$0xff]   ;;  %v10769_v32 = vld [vmem:[%s11999_s13 + $0x60] sm:$0xff]  }
 0x7ec   : > { %v7966_v57 = vpop.f32.mrb[219].mxu0 }
 0x7ed   : > { %v7967_v35 = vadd.f32 %v7966_v57, %v7965_v11  ;;  %v10782_v11 = vld [vmem:[%s11999_s13 + $0x20] sm:$0xff]   ;;  %v10788_v57 = vld [vmem:[%s11999_s13 + $0x68] sm:$0xff]  }
 0x7fe   : > { %v4061_v62 = vpop.f32.mrb[108].mxu1 }
 0x7ff   : > { %v4062_v27 = vadd.f32 %v7964_v25, %v4061_v62  ;;  %v4063_v3 = vpop.f32.mrb[109].mxu1  ;;  %v10775_v25 = vld [vmem:[%s11999_s13 + $0xa0] sm:$0xff]   ;;  %v10807_v62 = vld [vmem:[%s11999_s13 + $0x70] sm:$0xff]  }
 0x800   : > { %v4064_v61 = vpop.f32.mrb[110].mxu1  ;;  %v10820_v3 = vld [vmem:[%s11999_s13 + $0x30] sm:$0xff]  }
 0x801   : > { %v4187_v19 = vadd.f32 %v4178_v37, %v4062_v27  ;;  %v4065_v56 = vadd.f32 %v7967_v35, %v4064_v61  ;;  %v4066_v1 = vpop.f32.mrb[111].mxu1  ;;  %v10794_v35 = vld [vmem:[%s11999_s13 + $0xa8] sm:$0xff]   ;;  %v10813_v27 = vld [vmem:[%s11999_s13 + $0xb0] sm:$0xff]   ;;  %v10826_v61 = vld [vmem:[%s11999_s13 + $0x78] sm:$0xff]  }
 0x802   : > { %v10846_v1 = vld [vmem:[%s11999_s13 + $0xc0] sm:$0xff]  }
 0x803   : > { %v4199_v13 = vmul.f32 0.01, %v4187_v19  ;;  %v4190_v53 = vadd.f32 %v4178_v37, %v4065_v56  ;;  %vm4193_vm9 = vcmp.ge.f32.partialorder %v4187_v19, 0.0  ;;  %v10801_v37 = vld [vmem:[%s11999_s13 + $0x28] sm:$0xff]   ;;  %v10839_v56 = vld [vmem:[%s11999_s13 + $0x38] sm:$0xff]  }
 0x805   : > { %vm4196_vm10 = vcmp.ge.f32.partialorder %v4190_v53, 0.0  ;;  %v4202_v20 = vmul.f32 0.01, %v4190_v53  ;;  %v4205_v12 = vsel %vm4193_vm9, %v4187_v19, %v4199_v13  ;;  %v10832_v19 = vld [vmem:[%s11999_s13 + $0xb8] sm:$0xff]   ;;  %v10855_v13 = vld [vmem:[%s11999_s13 + $0xc8] sm:$0xff]  }
 0x807   : > { %v4208_v36 = vsel %vm4196_vm10, %v4190_v53, %v4202_v20  ;;  %v10862_v53 = vld [vmem:[%s11999_s13 + $0xd0] sm:$0xff]   ;;  %v10869_v20 = vld [vmem:[%s11999_s13 + $0xd8] sm:$0xff]  }
 0x808   : > { %v4211_v8 = vpack.c.bf16 %v4208_v36, %v4205_v12  ;;  %v10884_v12 = vld [vmem:[%s11999_s13 + $0xe8] sm:$0xff]  }
 0x809   : > { %v7984_v18 = vpop.f32.mrb[220].mxu0 }
 0x80a   : > { %v7985_v44 = vpop.f32.mrb[221].mxu0  ;;  %v4239_v0 = vand.u32 %v4234_v30, %v4211_v8 }
 0x80b   : > { %v7986_v4 = vadd.f32 %v7985_v44, %v7984_v18  ;;  %v7987_v49 = vpop.f32.mrb[222].mxu0 }
 0x80c   : > { %v7988_v28 = vpop.f32.mrb[223].mxu0  ;;  %4246 = vmatprep.subr.bf16.mxu1 %v4239_v0 }
 0x80d   : > { %v7989_v41 = vadd.f32 %v7988_v28, %v7987_v49  ;;  %4247 = vmatpush1.bf16.msra.mxu1 %v4236_v55 }
 0x80e   : > { %4665 = vmatprep.subr.bf16.mxu1 %v12095_v45 }
 0x810   : > { %7361 = vmatmul.mubr.msk.bf16.vlgmr.msra.gmra.mrb[116].mxu1 %vm4224_vm1, %v10673_v59 }
 0x811   : > { %4288 = vmatprep.mubr.bf16.mxu1 %v12095_v45  ;;  %4666 = vmatpush1.bf16.msra.mxu1 %v10696_v16 }
 0x812   : > { %4667 = vmatprep.subr.bf16.mxu1 %v12095_v45 }
 0x815   : > { %4668 = vmatpush1.bf16.msra.mxu1 %v10707_v26 }
 0x816   : > { %4669 = vmatprep.subr.bf16.mxu1 %v12095_v45 }
 0x818   : > { %7362 = vmatmul.mubr.msk.bf16.gmra.mrb[120].mxu1 %vm4224_vm1, %v8601_v5 }
 0x819   : > { %4670 = vmatpush1.bf16.msra.mxu1 %v10736_v51 }
 0x81a   : > { %4671 = vmatprep.subr.bf16.mxu1 %v12095_v45 }
 0x81d   : > { %4672 = vmatpush1.bf16.msra.mxu1 %v10756_v50 }
 0x81e   : > { %4673 = vmatprep.subr.bf16.mxu1 %v12095_v45 }
 0x821   : > { %4674 = vmatpush1.bf16.msra.mxu1 %v10775_v25 }
 0x822   : > { %4675 = vmatprep.subr.bf16.mxu1 %v12095_v45 }
 0x825   : > { %4676 = vmatpush1.bf16.msra.mxu1 %v10794_v35 }
 0x826   : > { %4677 = vmatprep.subr.bf16.mxu1 %v12095_v45 }
 0x829   : > { %4678 = vmatpush1.bf16.msra.mxu1 %v10813_v27 }
 0x82a   : > { %v4162_v2 = vpop.f32.mrb[112].mxu1  ;;  %4679 = vmatprep.subr.bf16.mxu1 %v12095_v45 }
 0x82b   : > { %v4163_v52 = vadd.f32 %v7986_v4, %v4162_v2  ;;  %v4164_v24 = vpop.f32.mrb[113].mxu1 }
 0x82c   : > { %v4165_v46 = vpop.f32.mrb[114].mxu1 }
 0x82d   : > { %v4188_v14 = vadd.f32 %v4182_v9, %v4163_v52  ;;  %v4166_v22 = vadd.f32 %v7989_v41, %v4165_v46  ;;  %v4167_v38 = vpop.f32.mrb[115].mxu1  ;;  %4680 = vmatpush1.bf16.msra.mxu1 %v10832_v19 }
 0x82e   : > { %4681 = vmatprep.subr.bf16.mxu1 %v12095_v45 }
 0x82f   : > { %v4200_v40 = vmul.f32 0.01, %v4188_v14  ;;  %v4191_v39 = vadd.f32 %v4182_v9, %v4166_v22  ;;  %vm4194_vm12 = vcmp.ge.f32.partialorder %v4188_v14, 0.0 }
 0x831   : > { %vm4197_vm13 = vcmp.ge.f32.partialorder %v4191_v39, 0.0  ;;  %v4203_v59 = vmul.f32 0.01, %v4191_v39  ;;  %v4206_v21 = vsel %vm4194_vm12, %v4188_v14, %v4200_v40  ;;  %4682 = vmatpush1.bf16.msra.mxu1 %v10846_v1 }
 0x832   : > { %4683 = vmatprep.subr.bf16.mxu1 %v12095_v45 }
 0x833   : > { %v4209_v42 = vsel %vm4197_vm13, %v4191_v39, %v4203_v59 }
 0x834   : > { %v4212_v23 = vpack.c.bf16 %v4209_v42, %v4206_v21 }
 0x835   : > { %4684 = vmatpush1.bf16.msra.mxu1 %v10855_v13 }
 0x836   : > { %v4242_v7 = vand.u32 %v4234_v30, %v4212_v23  ;;  %4685 = vmatprep.subr.bf16.mxu1 %v12095_v45 }
 0x838   : > { %8327 = vmatprep.subr.bf16.mxu0 %v4242_v7 }
 0x839   : > { %8328 = vmatpush3.bf16.msra.mxu0 %v4242_v7  ;;  %4686 = vmatpush1.bf16.msra.mxu1 %v10862_v53 }
 0x83a   : > { %7993 = vmatprep.subr.bf16.mxu0 %v10701_v29  ;;  %4687 = vmatprep.subr.bf16.mxu1 %v12095_v45 }
 0x83c   : > { %8330 = vmatmul.mubr.msk.bf16.vlgmr.msra.gmra.mrb[224].mxu0 %vm4224_vm1, %v8601_v5 }
 0x83d   : > { %7994 = vmatpush3.bf16.msra.mxu0 %v10712_v33  ;;  %4688 = vmatpush1.bf16.msra.mxu1 %v10869_v20 }
 0x83e   : > { %7995 = vmatprep.subr.bf16.mxu0 %v10720_v47  ;;  %4689 = vmatprep.subr.bf16.mxu1 %v12095_v45 }
 0x841   : > { %7996 = vmatpush3.bf16.msra.mxu0 %v10725_v58  ;;  %4690 = vmatpush1.bf16.msra.mxu1 %v10877_v31 }
 0x842   : > { %7997 = vmatprep.subr.bf16.mxu0 %v10730_v34  ;;  %4691 = vmatprep.subr.bf16.mxu1 %v12095_v45 }
 0x845   : > { %7998 = vmatpush3.bf16.msra.mxu0 %v10744_v54  ;;  %4692 = vmatpush1.bf16.msra.mxu1 %v10884_v12 }
 0x846   : > { %7999 = vmatprep.subr.bf16.mxu0 %v10750_v60  ;;  %8037 = vmatprep.subr.bf16.mxu1 %v10701_v29 }
 0x849   : > { %8000 = vmatpush3.bf16.msra.mxu0 %v10763_v43 }
 0x84a   : > { %8001 = vmatprep.subr.bf16.mxu0 %v10769_v32 }
 0x84d   : > { %8002 = vmatpush3.bf16.msra.mxu0 %v10782_v11 }
 0x84e   : > { %8003 = vmatprep.subr.bf16.mxu0 %v10788_v57 }
 0x851   : > { %8004 = vmatpush3.bf16.msra.mxu0 %v10801_v37 }
 0x852   : > { %8005 = vmatprep.subr.bf16.mxu0 %v10807_v62 }
 0x855   : > { %8006 = vmatpush3.bf16.msra.mxu0 %v10820_v3 }
 0x856   : > { %8007 = vmatprep.subr.bf16.mxu0 %v10826_v61 }
 0x859   : > { %8008 = vmatpush3.bf16.msra.mxu0 %v10839_v56 }
 0x85a   : > { %8015 = vmatprep.subr.bf16.mxu0 %v10701_v29 }
 0x8e3   : > { %v4280_v36 = vpop.f32.mrb[116].mxu1 }
 0x8e4   : > { %v4282_v8 = vpop.f32.mrb[117].mxu1 }
 0x8e5   : > { %v4284_v30 = vpop.f32.mrb[118].mxu1 }
 0x8e6   : > { %v4348_v18 = vpack.c.bf16 %v4284_v30, %v4280_v36  ;;  %v4286_v44 = vpop.f32.mrb[119].mxu1  ;;  %v11125_v36 = vld [vmem:[%s12001_s15 + $0x30] sm:$0xff]   ;;  %v11130_v30 = vld [vmem:[%s12000_s14] sm:$0x7] }
 0x8e7   : > { %v10888_v0 = vpack.c.bf16 %v4286_v44, %v4282_v8 }
 0x8e8   : > { %v4418_v4 = vrot.slane %v4348_v18, 4 }
 0x8e9   : > { %v4419_v49 = vrot.slane %v10888_v0, 4 }
 0x8ea   : > { %4420 = vrot.lane.b32.xlu0 %v4418_v4, %s8980_s29 }
 0x8eb   : > { %4422 = vrot.lane.b32.xlu1 %v4419_v49, %s8980_s29  ;;  %v4290_v55 = vpop.f32.mrb[120].mxu1  ;;  %v4910_v49 = vrot.slane %v11130_v30, %v9874_v48 }
 0x8ec   : > { %v4352_v28 = vpack.c.bf16 %v4290_v55, %v4290_v55  ;;  %v4292_v41 = vpop.f32.mrb[121].mxu1  ;;  %v11144_v55 = vld [vmem:[%s12001_s15 + $0x38] sm:$0xff]  }
 0x8ed   : > { %v4353_v5 = vpack.c.bf16 %v4292_v41, %v4292_v41  ;;  %v4294_v9 = vpop.f32.mrb[122].mxu1 }
 0x8ee   : > { %4427 = vrot.lane.b32.xlu0 %v4352_v28, %s8981_s2  ;;  %v4295_v2 = vpop.f32.mrb[123].mxu1 }
 0x8ef   : > { %4429 = vrot.lane.b32.xlu1 %v4353_v5, %s8981_s2 }
 0x90f   : > { %v8331_v52 = vpop.f32.mrb[224].mxu0 }
 0x910   : > { %v4354_v24 = vpack.c.bf16 %v8331_v52, %v8331_v52  ;;  %v4331_v46 = vpop.f32.mrb[225].mxu0 }
 0x911   : > { %v8332_v14 = vpop.f32.mrb[226].mxu0 }
 0x912   : > { %v4335_v22 = vpop.f32.mrb[227].mxu0  ;;  %4711 = vrot.lane.b32.xlu1 %v4354_v24, %s8981_s2 }
 0x913   : > { %v10896_v38 = vpack.c.bf16 %v4335_v22, %v4331_v46  ;;  %v11151_v46 = vld [vmem:[%s12001_s15 + $0xc0] sm:$0xff]  }
 0x915   : > { %v4706_v40 = vrot.slane %v10896_v38, 4 }
 0x916   : > { %4811 = vrot.lane.b32.xlu1 %v8979_v15, %s8981_s2 }
 0x917   : > { %4707 = vrot.lane.b32.xlu0 %v4706_v40, %s8980_s29 }
 0x91b   : > { %4807 = vrot.lane.b32.xlu0 %v10189_v17, %s8980_s29 }
 0x95c   : > { %v4421_v39 = vpop.permute.xlu0 %4420 }
 0x95d   : > { %v4423_v59 = vpop.permute.xlu1 %4422  ;;  %v4435_v21 = vsel %vm1736_vm5, %v10888_v0, %v4421_v39 }
 0x95e   : > { %4657 = vmatprep.mubr.bf16.mxu0 %v4435_v21  ;;  %v4716_v42 = vsel %vm1736_vm5, %v10896_v38, %v4423_v59  ;;  %v4424_v17 = vsel %vm1736_vm5, %v4421_v39, %v4423_v59 }
 0x95f   : > { %4658 = vmatmul.mubr.bf16.vlgmr.msra.gmra.mrb[228].mxu0 %v4348_v18  ;;  %v11136_v18 = vld [vmem:[%s12001_s15 + $0x78] sm:$0xff]  }
 0x960   : > { %8016 = vmatpush3.bf16.msra.mxu0 %v10712_v33  ;;  %4757 = vmatprep.mubr.bf16.mxu0 %v4716_v42  ;;  %v4428_v15 = vpop.permute.xlu0 %4427 }
 0x961   : > { %v4430_v23 = vpop.permute.xlu1 %4429  ;;  %8017 = vmatprep.subr.bf16.mxu0 %v10720_v47  ;;  %v4440_v29 = vsel %vm4431_vm14, %v4424_v17, %v4428_v15 }
 0x962   : > { %v4432_v7 = vsel %vm4431_vm14, %v4428_v15, %v4430_v23 }
 0x963   : > { %7395 = vmatprep.mubr.msk.bf16.mxu1 %vm968_vm0, %v4432_v7 }
 0x964   : > { %8018 = vmatpush3.bf16.msra.mxu0 %v10725_v58  ;;  %4698 = vmatmul.mubr.bf16.vlgmr.msra.gmra.mrb[124].mxu1 %v4440_v29 }
 0x965   : > { %8019 = vmatprep.subr.bf16.mxu0 %v10730_v34  ;;  %8038 = vmatpush3.bf16.msra.mxu1 %v10712_v33 }
 0x966   : > { %8039 = vmatprep.subr.bf16.mxu1 %v10720_v47 }
 0x968   : > { %8020 = vmatpush3.bf16.msra.mxu0 %v10744_v54 }
 0x969   : > { %8021 = vmatprep.subr.bf16.mxu0 %v10750_v60  ;;  %8040 = vmatpush3.bf16.msra.mxu1 %v10725_v58 }
 0x96a   : > { %8041 = vmatprep.subr.bf16.mxu1 %v10730_v34 }
 0x96c   : > { %8022 = vmatpush3.bf16.msra.mxu0 %v10763_v43 }
 0x96d   : > { %8023 = vmatprep.subr.bf16.mxu0 %v10769_v32  ;;  %8042 = vmatpush3.bf16.msra.mxu1 %v10744_v54 }
 0x96e   : > { %8043 = vmatprep.subr.bf16.mxu1 %v10750_v60 }
 0x970   : > { %8024 = vmatpush3.bf16.msra.mxu0 %v10782_v11 }
 0x971   : > { %8025 = vmatprep.subr.bf16.mxu0 %v10788_v57  ;;  %8044 = vmatpush3.bf16.msra.mxu1 %v10763_v43 }
 0x972   : > { %8045 = vmatprep.subr.bf16.mxu1 %v10769_v32 }
 0x974   : > { %8026 = vmatpush3.bf16.msra.mxu0 %v10801_v37 }
 0x975   : > { %8027 = vmatprep.subr.bf16.mxu0 %v10807_v62  ;;  %8046 = vmatpush3.bf16.msra.mxu1 %v10782_v11  ;;  %v11034_v11 = vld [vmem:[%s12001_s15 + $0x110] sm:$0xff]  }
 0x976   : > { %8047 = vmatprep.subr.bf16.mxu1 %v10788_v57  ;;  %v11041_v57 = vld [vmem:[%s12001_s15 + $0x118] sm:$0xff]  }
 0x978   : > { %8028 = vmatpush3.bf16.msra.mxu0 %v10820_v3 }
 0x979   : > { %8029 = vmatprep.subr.bf16.mxu0 %v10826_v61  ;;  %8048 = vmatpush3.bf16.msra.mxu1 %v10801_v37  ;;  %v11052_v37 = vld [vmem:[%s12001_s15] sm:$0xff]  }
 0x97a   : > { %8049 = vmatprep.subr.bf16.mxu1 %v10807_v62  ;;  %v11060_v62 = vld [vmem:[%s12001_s15 + $0x48] sm:$0xff]  }
 0x97c   : > { %8030 = vmatpush3.bf16.msra.mxu0 %v10839_v56 }
 0x97d   : > { %4765 = vmatprep.subr.bf16.mxu0 %v12095_v45  ;;  %8050 = vmatpush3.bf16.msra.mxu1 %v10820_v3  ;;  %v11072_v3 = vld [vmem:[%s12001_s15 + $0x50] sm:$0xff]  }
 0x97e   : > { %8051 = vmatprep.subr.bf16.mxu1 %v10826_v61  ;;  %v11077_v61 = vld [vmem:[%s12001_s15 + $0x10] sm:$0xff]  }
 0x97f   : > { %4758 = vmatmul.mubr.bf16.vlgmr.msra.gmra.mrb[232].mxu0 %v10888_v0 }
 0x980   : > { %4766 = vmatpush1.bf16.msra.mxu0 %v10696_v16 }
 0x981   : > { %4767 = vmatprep.subr.bf16.mxu0 %v12095_v45  ;;  %8052 = vmatpush3.bf16.msra.mxu1 %v10839_v56  ;;  %v11089_v56 = vld [vmem:[%s12001_s15 + $0x18] sm:$0xff]  }
 0x982   : > { %4865 = vmatprep.subr.bf16.mxu1 %v12095_v45 }
 0x984   : > { %4768 = vmatpush1.bf16.msra.mxu0 %v10707_v26  ;;  %v10948_v33 = vpop.permute.xlu1 %4711 }
 0x985   : > { %4769 = vmatprep.subr.bf16.mxu0 %v12095_v45  ;;  %v4713_v47 = vsel %vm4431_vm14, %v4430_v23, %v10948_v33 }
 0x986   : > { %7396 = vmatprep.mubr.msk.bf16.mxu0 %vm968_vm0, %v4713_v47 }
 0x988   : > { %4770 = vmatpush1.bf16.msra.mxu0 %v10736_v51  ;;  %v4812_v58 = vpop.permute.xlu1 %4811 }
 0x989   : > { %v4708_v34 = vpop.permute.xlu0 %4707  ;;  %4771 = vmatprep.subr.bf16.mxu0 %v12095_v45  ;;  %v4813_v43 = vsel %vm4431_vm14, %v10948_v33, %v4812_v58 }
 0x98a   : > { %v4709_v54 = vsel %vm1736_vm5, %v4423_v59, %v4708_v34  ;;  %v4816_v60 = vsel %vm1736_vm5, 0.0|0.0, %v4708_v34 }
 0x98b   : > { %4857 = vmatprep.mubr.bf16.mxu1 %v4816_v60  ;;  %v4720_v32 = vsel %vm4431_vm14, %v4709_v54, %v4430_v23 }
 0x98c   : > { %4772 = vmatpush1.bf16.msra.mxu0 %v10756_v50  ;;  %4858 = vmatmul.mubr.bf16.vlgmr.msra.gmra.mrb[128].mxu1 %v10896_v38 }
 0x98d   : > { %4866 = vmatpush1.bf16.msra.mxu1 %v10696_v16  ;;  %4773 = vmatprep.subr.bf16.mxu0 %v12095_v45  ;;  %v4808_v16 = vpop.permute.xlu0 %4807 }
 0x98e   : > { %4867 = vmatprep.subr.bf16.mxu1 %v12095_v45  ;;  %7397 = vmatprep.mubr.msk.bf16.mxu1 %vm968_vm0, %v4813_v43 }
 0x990   : > { %4774 = vmatpush1.bf16.msra.mxu0 %v10775_v25 }
 0x991   : > { %4868 = vmatpush1.bf16.msra.mxu1 %v10707_v26  ;;  %4775 = vmatprep.subr.bf16.mxu0 %v12095_v45  ;;  %v4809_v26 = vsel %vm1736_vm5, %v4708_v34, %v4808_v16  ;;  %v4914_v34 = vrot.slane %v11130_v30, %v9902_v10 }
 0x992   : > { %4869 = vmatprep.subr.bf16.mxu1 %v12095_v45 }
 0x994   : > { %4776 = vmatpush1.bf16.msra.mxu0 %v10794_v35 }
 0x995   : > { %4870 = vmatpush1.bf16.msra.mxu1 %v10736_v51  ;;  %4777 = vmatprep.subr.bf16.mxu0 %v12095_v45  ;;  %v4820_v51 = vsel %vm4431_vm14, %v4809_v26, %v10948_v33 }
 0x996   : > { %4871 = vmatprep.subr.bf16.mxu1 %v12095_v45 }
 0x998   : > { %4778 = vmatpush1.bf16.msra.mxu0 %v10813_v27 }
 0x999   : > { %4872 = vmatpush1.bf16.msra.mxu1 %v10756_v50  ;;  %4779 = vmatprep.subr.bf16.mxu0 %v12095_v45  ;;  %v11020_v50 = vld [vmem:[%s12001_s15 + $0x100] sm:$0xff]  }
 0x99a   : > { %4873 = vmatprep.subr.bf16.mxu1 %v12095_v45 }
 0x99c   : > { %4780 = vmatpush1.bf16.msra.mxu0 %v10832_v19 }
 0x99d   : > { %4874 = vmatpush1.bf16.msra.mxu1 %v10775_v25  ;;  %4781 = vmatprep.subr.bf16.mxu0 %v12095_v45  ;;  %v11027_v25 = vld [vmem:[%s12001_s15 + $0x108] sm:$0xff]  }
 0x99e   : > { %4875 = vmatprep.subr.bf16.mxu1 %v12095_v45 }
 0x9a0   : > { %4782 = vmatpush1.bf16.msra.mxu0 %v10846_v1 }
 0x9a1   : > { %4876 = vmatpush1.bf16.msra.mxu1 %v10794_v35  ;;  %4783 = vmatprep.subr.bf16.mxu0 %v12095_v45  ;;  %v11047_v35 = vld [vmem:[%s12001_s15 + $0x40] sm:$0xff]  }
 0x9a2   : > { %4877 = vmatprep.subr.bf16.mxu1 %v12095_v45 }
 0x9a4   : > { %4784 = vmatpush1.bf16.msra.mxu0 %v10855_v13 }
 0x9a5   : > { %4878 = vmatpush1.bf16.msra.mxu1 %v10813_v27  ;;  %4785 = vmatprep.subr.bf16.mxu0 %v12095_v45  ;;  %v11065_v27 = vld [vmem:[%s12001_s15 + $0x8] sm:$0xff]  }
 0x9a6   : > { %4879 = vmatprep.subr.bf16.mxu1 %v12095_v45 }
 0x9a8   : > { %4786 = vmatpush1.bf16.msra.mxu0 %v10862_v53 }
 0x9a9   : > { %4880 = vmatpush1.bf16.msra.mxu1 %v10832_v19  ;;  %4787 = vmatprep.subr.bf16.mxu0 %v12095_v45  ;;  %v11084_v19 = vld [vmem:[%s12001_s15 + $0x58] sm:$0xff]  }
 0x9aa   : > { %4881 = vmatprep.subr.bf16.mxu1 %v12095_v45 }
 0x9ac   : > { %4788 = vmatpush1.bf16.msra.mxu0 %v10869_v20 }
 0x9ad   : > { %4882 = vmatpush1.bf16.msra.mxu1 %v10846_v1  ;;  %4789 = vmatprep.subr.bf16.mxu0 %v12095_v45  ;;  %v11094_v1 = vld [vmem:[%s12001_s15 + $0x60] sm:$0xff]  }
 0x9ae   : > { %4883 = vmatprep.subr.bf16.mxu1 %v12095_v45 }
 0x9b0   : > { %4790 = vmatpush1.bf16.msra.mxu0 %v10877_v31 }
 0x9b1   : > { %4884 = vmatpush1.bf16.msra.mxu1 %v10855_v13  ;;  %4791 = vmatprep.subr.bf16.mxu0 %v12095_v45  ;;  %v11101_v13 = vld [vmem:[%s12001_s15 + $0x20] sm:$0xff]  }
 0x9b2   : > { %4885 = vmatprep.subr.bf16.mxu1 %v12095_v45 }
 0x9b4   : > { %4792 = vmatpush1.bf16.msra.mxu0 %v10884_v12 }
 0x9b5   : > { %4886 = vmatpush1.bf16.msra.mxu1 %v10862_v53  ;;  %8059 = vmatprep.subr.bf16.mxu0 %v11047_v35  ;;  %v11107_v53 = vld [vmem:[%s12001_s15 + $0x68] sm:$0xff]  }
 0x9b6   : > { %4887 = vmatprep.subr.bf16.mxu1 %v12095_v45 }
 0x9b7   : > { %4798 = vmatmul.mubr.bf16.vlgmr.msra.gmra.mrb[236].mxu0 %v4720_v32 }
 0x9b8   : > { %8060 = vmatpush3.bf16.msra.mxu0 %v11052_v37 }
 0x9b9   : > { %4888 = vmatpush1.bf16.msra.mxu1 %v10869_v20  ;;  %8061 = vmatprep.subr.bf16.mxu0 %v11060_v62  ;;  %v11113_v20 = vld [vmem:[%s12001_s15 + $0x28] sm:$0xff]  }
 0x9ba   : > { %4889 = vmatprep.subr.bf16.mxu1 %v12095_v45 }
 0x9bc   : > { %8062 = vmatpush3.bf16.msra.mxu0 %v11065_v27 }
 0x9bd   : > { %4890 = vmatpush1.bf16.msra.mxu1 %v10877_v31  ;;  %8063 = vmatprep.subr.bf16.mxu0 %v11072_v3  ;;  %v11119_v31 = vld [vmem:[%s12001_s15 + $0x70] sm:$0xff]  }
 0x9be   : > { %4891 = vmatprep.subr.bf16.mxu1 %v12095_v45 }
 0x9c0   : > { %8064 = vmatpush3.bf16.msra.mxu0 %v11077_v61 }
 0x9c1   : > { %4892 = vmatpush1.bf16.msra.mxu1 %v10884_v12  ;;  %8065 = vmatprep.subr.bf16.mxu0 %v11084_v19 }
 0x9c2   : > { %8333 = vmatprep.subr.bf16.mxu1 %v12073_v6 }
 0x9c4   : > { %4898 = vmatmul.mubr.bf16.vlgmr.msra.gmra.mrb[132].mxu1 %v4820_v51  ;;  %8066 = vmatpush3.bf16.msra.mxu0 %v11089_v56 }
 0x9c5   : > { %8341 = vmatprep.mubr.msk.bf16.mxu1 %vm8977_vm2, %v12073_v6  ;;  %8334 = vmatpush3.bf16.msra.mxu1 %v11020_v50 }
 0x9c6   : > { %8335 = vmatprep.subr.bf16.mxu1 %v12073_v6  ;;  %8067 = vmatprep.subr.bf16.mxu0 %v11094_v1 }
 0x9c8   : > { %8068 = vmatpush3.bf16.msra.mxu0 %v11101_v13 }
 0x9c9   : > { %8336 = vmatpush3.bf16.msra.mxu1 %v11027_v25  ;;  %8069 = vmatprep.subr.bf16.mxu0 %v11107_v53 }
 0x9ca   : > { %8337 = vmatprep.subr.bf16.mxu1 %v12073_v6 }
 0x9cc   : > { %8070 = vmatpush3.bf16.msra.mxu0 %v11113_v20 }
 0x9cd   : > { %8338 = vmatpush3.bf16.msra.mxu1 %v11034_v11  ;;  %8071 = vmatprep.subr.bf16.mxu0 %v11119_v31 }
 0x9ce   : > { %8339 = vmatprep.subr.bf16.mxu1 %v12073_v6 }
 0x9d0   : > { %8072 = vmatpush3.bf16.msra.mxu0 %v11125_v36 }
 0x9d1   : > { %8340 = vmatpush3.bf16.msra.mxu1 %v11041_v57  ;;  %8073 = vmatprep.subr.bf16.mxu0 %v11136_v18 }
 0x9d2   : > { %8108 = vmatprep.subr.bf16.mxu1 %v11047_v35 }
 0x9d4   : > { %8074 = vmatpush3.bf16.msra.mxu0 %v11144_v55 }
 0x9d5   : > { %8081 = vmatprep.subr.bf16.mxu0 %v11151_v46 }
 0xa32   : > { %v8009_v12 = vpop.f32.mrb[228].mxu0 }
 0xa33   : > { %v8010_v8 = vpop.f32.mrb[229].mxu0 }
 0xa34   : > { %v8011_v44 = vadd.f32 %v8010_v8, %v8009_v12  ;;  %v8012_v0 = vpop.f32.mrb[230].mxu0 }
 0xa35   : > { %v8013_v4 = vpop.f32.mrb[231].mxu0 }
 0xa36   : > { %v4918_v4 = vrot.slane %v11130_v30, %v9928_v63 }
 0xa37   : > { %v4699_v28 = vpop.f32.mrb[124].mxu1 }
 0xa38   : > { %v4700_v41 = vadd.f32 %v8011_v44, %v4699_v28  ;;  %v4701_v5 = vpop.f32.mrb[125].mxu1 }
 0xa39   : > { %v4702_v9 = vpop.f32.mrb[126].mxu1 }
 0xa3a   : > { %v4922_v2 = vadd.f32 %v4910_v49, %v4700_v41  ;;  %v4703_v52 = vpop.f32.mrb[127].mxu1 }
 0xa3c   : > { %vm4925_vm0 = vcmp.ge.f32.partialorder %v4922_v2, 0.0  ;;  %v4928_v24 = vmul.f32 0.01, %v4922_v2 }
 0xa3e   : > { %v4931_v14 = vsel %vm4925_vm0, %v4922_v2, %v4928_v24 }
 0xa3f   : > { %v11153_v22 = vpack.c.bf16 %v4931_v14, %v4931_v14 }
 0xa41   : > { %v5012_v38 = vshll.u32 %v11153_v22, 16  ;;  %v5010_v40 = vshrl.u32 %v11153_v22, 16  ;;  %v5031_v49 = vrot.slane %v11153_v22, 1 }
 0xa43   : > { %v5014_v39 = vrot.slane %v5012_v38, 1 }
 0xa45   : > { %v11158_v59 = vor.u32 %v5014_v39, %v5010_v40 }
 0xa47   : > { %5023 = vrot.lane.b32.xlu0 %v11158_v59, %s8981_s2 }
 0xa52   : > { %v8031_v21 = vpop.f32.mrb[232].mxu0 }
 0xa53   : > { %v8032_v42 = vpop.f32.mrb[233].mxu0 }
 0xa54   : > { %v8033_v15 = vadd.f32 %v8032_v42, %v8031_v21  ;;  %v8034_v23 = vpop.f32.mrb[234].mxu0 }
 0xa55   : > { %v8035_v17 = vpop.f32.mrb[235].mxu0 }
 0xa5f   : > { %v8053_v7 = vpop.f32.mrb[128].mxu1 }
 0xa60   : > { %v8054_v29 = vpop.f32.mrb[129].mxu1 }
 0xa61   : > { %v8055_v33 = vadd.f32 %v8054_v29, %v8053_v7  ;;  %v8056_v47 = vpop.f32.mrb[130].mxu1  ;;  %v11211_v7 = vld [vmem:[%s12001_s15 + $0x80] sm:$0xff]  }
 0xa62   : > { %v8057_v58 = vpop.f32.mrb[131].mxu1  ;;  %v11225_v47 = vld [vmem:[%s12001_s15 + $0x88] sm:$0xff]  }
 0xa63   : > { %v11231_v58 = vld [vmem:[%s12001_s15 + $0xd0] sm:$0xff]  }
 0xa8a   : > { %v4799_v54 = vpop.f32.mrb[236].mxu0 }
 0xa8b   : > { %v4800_v60 = vadd.f32 %v8033_v15, %v4799_v54  ;;  %v4801_v43 = vpop.f32.mrb[237].mxu0  ;;  %v11249_v54 = vld [vmem:[%s12001_s15 + $0x98] sm:$0xff]  }
 0xa8c   : > { %v4802_v32 = vpop.f32.mrb[238].mxu0  ;;  %v11261_v43 = vld [vmem:[%s12001_s15 + $0xa0] sm:$0xff]  }
 0xa8d   : > { %v4923_v16 = vadd.f32 %v4914_v34, %v4800_v60  ;;  %v4803_v26 = vpop.f32.mrb[239].mxu0  ;;  %v11243_v34 = vld [vmem:[%s12001_s15 + $0xd8] sm:$0xff]   ;;  %v11255_v60 = vld [vmem:[%s12001_s15 + $0xe0] sm:$0xff]   ;;  %v11267_v32 = vld [vmem:[%s12001_s15 + $0xe8] sm:$0xff]  }
 0xa8e   : > { %v11279_v26 = vld [vmem:[%s12001_s15 + $0xf0] sm:$0xff]  }
 0xa8f   : > { %vm4926_vm5 = vcmp.ge.f32.partialorder %v4923_v16, 0.0  ;;  %v4929_v51 = vmul.f32 0.01, %v4923_v16 }
 0xa91   : > { %v4932_v12 = vsel %vm4926_vm5, %v4923_v16, %v4929_v51  ;;  %v11273_v16 = vld [vmem:[%s12001_s15 + $0xa8] sm:$0xff]   ;;  %v11285_v51 = vld [vmem:[%s12001_s15 + $0xb0] sm:$0xff]  }
 0xa92   : > { %v11164_v8 = vpack.c.bf16 %v4932_v12, %v4932_v12  ;;  %v11291_v12 = vld [vmem:[%s12001_s15 + $0xf8] sm:$0xff]  }
 0xa94   : > { %5378 = vrot.lane.b32.xlu0 %v11164_v8, %s8981_s2  ;;  %v11169_v44 = vrot.slane %v11164_v8, 1  ;;  %v5019_v0 = vshll.u32 %v11164_v8, 16  ;;  %v5017_v28 = vshrl.u32 %v11164_v8, 16 }
 0xa96   : > { %8342 = vmatmul.mubr.msk.bf16.vlgmr.msra.gmra.mrb[136].mxu1 %vm4431_vm14, %v11169_v44  ;;  %v5021_v41 = vrot.slane %v5019_v0, 1  ;;  %v11297_v0 = vld [vmem:[%s12001_s15 + $0xb8] sm:$0xff]  }
 0xa97   : > { %v4899_v5 = vpop.f32.mrb[132].mxu1  ;;  %8109 = vmatpush3.bf16.msra.mxu1 %v11052_v37 }
 0xa98   : > { %v4900_v9 = vadd.f32 %v8055_v33, %v4899_v5  ;;  %v4901_v2 = vpop.f32.mrb[133].mxu1  ;;  %5383 = vrot.lane.b32.xlu0 %v5031_v49, %s8981_s2  ;;  %v11180_v52 = vor.u32 %v5021_v41, %v5017_v28  ;;  %8110 = vmatprep.subr.bf16.mxu1 %v11060_v62  ;;  %v11218_v33 = vld [vmem:[%s12001_s15 + $0xc8] sm:$0xff]  }
 0xa99   : > { %v4902_v24 = vpop.f32.mrb[134].mxu1 }
 0xa9a   : > { %v4924_v14 = vadd.f32 %v4918_v4, %v4900_v9  ;;  %5025 = vrot.lane.b32.xlu1 %v11180_v52, %s8981_s2  ;;  %v4903_v30 = vpop.f32.mrb[135].mxu1 }
 0xa9b   : > { %8111 = vmatpush3.bf16.msra.mxu1 %v11065_v27  ;;  %v8692_v30 = vld [vmem:[%s12003_s17 + $0x80] ss:$8 sps:$4 sm:$0xff]  }
 0xa9c   : > { %vm4927_vm15 = vcmp.ge.f32.partialorder %v4924_v14, 0.0  ;;  %v4930_v38 = vmul.f32 0.01, %v4924_v14  ;;  %8112 = vmatprep.subr.bf16.mxu1 %v11072_v3 }
 0xa9e   : > { %v4933_v40 = vsel %vm4927_vm15, %v4924_v14, %v4930_v38  ;;  %5376 = vrot.lane.b32.xlu1 %v11153_v22, %s8981_s2  ;;  %v8694_v14 = vld [vmem:[%s12003_s17 + $0x84] ss:$8 sps:$4 sm:$0xff]   ;;  %v8697_v38 = vld [vmem:[%s12003_s17 + $0x94] ss:$8 sps:$4 sm:$0xff]  }
 0xa9f   : > { %v11189_v39 = vpack.c.bf16 %v4933_v40, %v4933_v40  ;;  %8113 = vmatpush3.bf16.msra.mxu1 %v11077_v61  ;;  %v8695_v40 = vld [vmem:[%s12003_s17 + $0x90] ss:$8 sps:$4 sm:$0xff]  }
 0xaa0   : > { %8114 = vmatprep.subr.bf16.mxu1 %v11084_v19 }
 0xaa1   : > { %v5519_v21 = vshll.u32 %v11189_v39, 16  ;;  %v5517_v42 = vshrl.u32 %v11189_v39, 16 }
 0xaa2   : > { %5385 = vrot.lane.b32.xlu1 %v11169_v44, %s8981_s2 }
 0xaa3   : > { %v5521_v15 = vrot.slane %v5519_v21, 1  ;;  %8115 = vmatpush3.bf16.msra.mxu1 %v11089_v56  ;;  %v8698_v21 = vld [vmem:[%s12003_s17 + $0xa0] ss:$8 sps:$4 sm:$0xff]  }
 0xaa4   : > { %8116 = vmatprep.subr.bf16.mxu1 %v11094_v1 }
 0xaa5   : > { %v5522_v23 = vor.u32 %v5521_v15, %v5517_v42  ;;  %v8703_v42 = vld [vmem:[%s12003_s17 + $0xb4] ss:$8 sps:$4 sm:$0xff]   ;;  %v8701_v15 = vld [vmem:[%s12003_s17 + $0xb0] ss:$8 sps:$4 sm:$0xff]  }
 0xaa7   : > { %5523 = vrot.lane.b32.xlu0 %v5522_v23, %s8981_s2  ;;  %8117 = vmatpush3.bf16.msra.mxu1 %v11101_v13  ;;  %v8706_v23 = vld [vmem:[%s12003_s17 + $0xc4] ss:$8 sps:$4 sm:$0xff]   ;;  %s7605_s2 = sshll.u32 %s9124_s5, 4  ;;  %s7077_s5 = scalar_lea.sflag [#allocation3], %s725_s1 }
 0xaa8   : > { %8118 = vmatprep.subr.bf16.mxu1 %v11107_v53  ;;  %s11944_s3 = scalar_lea.hbm %s12009_s23, %s7605_s2 }
 0xaab   : > { %8119 = vmatpush3.bf16.msra.mxu1 %v11113_v20 }
 0xaac   : > { %8120 = vmatprep.subr.bf16.mxu1 %v11119_v31 }
 0xaaf   : > { %8121 = vmatpush3.bf16.msra.mxu1 %v11125_v36 }
 0xab0   : > { %8122 = vmatprep.subr.bf16.mxu1 %v11136_v18 }
 0xab3   : > { %8123 = vmatpush3.bf16.msra.mxu1 %v11144_v55 }
 0xab4   : > { %8345 = vmatprep.subr.bf16.mxu1 %v12073_v6 }
 0xab9   : > { %v5024_v17 = vpop.permute.xlu0 %5023 }
 0xaba   : > { %v5035_v29 = vsel %vm4431_vm14, %v11164_v8, %v5024_v17 }
 0xabb   : > { %5288 = vmatprep.mubr.bf16.mxu0 %v5035_v29  ;;  %v8707_v29 = vld [vmem:[%s12003_s17 + $0xd0] ss:$8 sps:$4 sm:$0xff]  }
 0xabc   : > { %5289 = vmatmul.mubr.bf16.vlgmr.msra.gmra.mrb[240].mxu0 %v11153_v22  ;;  %v11237_v22 = vld [vmem:[%s12001_s15 + $0x90] sm:$0xff]  }
 0xabd   : > { %5328 = vmatprep.mubr.bf16.mxu0 %v5031_v49  ;;  %8082 = vmatpush3.bf16.msra.mxu0 %v11211_v7 }
 0xabe   : > { %8083 = vmatprep.subr.bf16.mxu0 %v11218_v33 }
 0xac1   : > { %8084 = vmatpush3.bf16.msra.mxu0 %v11225_v47 }
 0xac2   : > { %8085 = vmatprep.subr.bf16.mxu0 %v11231_v58 }
 0xac5   : > { %8086 = vmatpush3.bf16.msra.mxu0 %v11237_v22 }
 0xac6   : > { %8087 = vmatprep.subr.bf16.mxu0 %v11243_v34 }
 0xac9   : > { %8088 = vmatpush3.bf16.msra.mxu0 %v11249_v54 }
 0xaca   : > { %8089 = vmatprep.subr.bf16.mxu0 %v11255_v60 }
 0xacd   : > { %8090 = vmatpush3.bf16.msra.mxu0 %v11261_v43 }
 0xace   : > { %8091 = vmatprep.subr.bf16.mxu0 %v11267_v32 }
 0xad1   : > { %8092 = vmatpush3.bf16.msra.mxu0 %v11273_v16 }
 0xad2   : > { %8093 = vmatprep.subr.bf16.mxu0 %v11279_v26 }
 0xad5   : > { %8094 = vmatpush3.bf16.msra.mxu0 %v11285_v51 }
 0xad6   : > { %8095 = vmatprep.subr.bf16.mxu0 %v11291_v12 }
 0xad9   : > { %8096 = vmatpush3.bf16.msra.mxu0 %v11297_v0 }
 0xada   : > { %8130 = vmatprep.subr.bf16.mxu0 %v11151_v46 }
 0xb06   : > { %v5379_v4 = vpop.permute.xlu0 %5378 }
 0xb07   : > { %v5391_v49 = vsel %vm4431_vm14, %v5379_v4, %v11158_v59 }
 0xb08   : > { %5428 = vmatprep.mubr.bf16.mxu1 %v5391_v49 }
 0xb0a   : > { %v5384_v59 = vpop.permute.xlu0 %5383 }
 0xb0c   : > { %v11304_v28 = vpop.permute.xlu1 %5025 }
 0xb0d   : > { %v5027_v41 = vsel %vm4431_vm14, %v5024_v17, %v11304_v28  ;;  %v8704_v17 = vld [vmem:[%s12003_s17 + $0xc0] ss:$8 sps:$4 sm:$0xff]  }
 0xb0e   : > { %5329 = vmatmul.mubr.bf16.vlgmr.msra.gmra.mrb[244].mxu0 %v5027_v41 }
 0xb0f   : > { %8131 = vmatpush3.bf16.msra.mxu0 %v11211_v7 }
 0xb10   : > { %v5377_v5 = vpop.permute.xlu1 %5376  ;;  %8132 = vmatprep.subr.bf16.mxu0 %v11218_v33 }
 0xb11   : > { %v5380_v9 = vsel %vm4431_vm14, %v5377_v5, %v5379_v4 }
 0xb12   : > { %5429 = vmatmul.mubr.bf16.vlgmr.msra.gmra.mrb[140].mxu1 %v5380_v9 }
 0xb13   : > { %8133 = vmatpush3.bf16.msra.mxu0 %v11225_v47  ;;  %8346 = vmatpush3.bf16.msra.mxu1 %v11020_v50 }
 0xb14   : > { %v5386_v2 = vpop.permute.xlu1 %5385  ;;  %8134 = vmatprep.subr.bf16.mxu0 %v11231_v58  ;;  %8347 = vmatprep.subr.bf16.mxu1 %v12073_v6 }
 0xb15   : > { %v5387_v24 = vsel %vm4431_vm14, %v5384_v59, %v5386_v2  ;;  %8353 = vmatprep.mubr.msk.bf16.mxu1 %vm8977_vm2, %v12073_v6 }
 0xb16   : > { %5468 = vmatprep.mubr.bf16.mxu0 %v5387_v24 }
 0xb17   : > { %8135 = vmatpush3.bf16.msra.mxu0 %v11237_v22  ;;  %8348 = vmatpush3.bf16.msra.mxu1 %v11027_v25 }
 0xb18   : > { %8136 = vmatprep.subr.bf16.mxu0 %v11243_v34  ;;  %8349 = vmatprep.subr.bf16.mxu1 %v12073_v6 }
 0xb1b   : > { %8137 = vmatpush3.bf16.msra.mxu0 %v11249_v54  ;;  %8350 = vmatpush3.bf16.msra.mxu1 %v11034_v11 }
 0xb1c   : > { %8138 = vmatprep.subr.bf16.mxu0 %v11255_v60  ;;  %8351 = vmatprep.subr.bf16.mxu1 %v12073_v6 }
 0xb1f   : > { %8139 = vmatpush3.bf16.msra.mxu0 %v11261_v43  ;;  %8352 = vmatpush3.bf16.msra.mxu1 %v11041_v57 }
 0xb20   : > { %8140 = vmatprep.subr.bf16.mxu0 %v11267_v32  ;;  %8179 = vmatprep.subr.bf16.mxu1 %v11151_v46  ;;  %v5531_v46 = vsel %vm4431_vm14, %v11189_v39, %v11304_v28 }
 0xb22   : > { %8354 = vmatmul.mubr.msk.bf16.vlgmr.msra.gmra.mrb[144].mxu1 %vm4431_vm14, %v5386_v2 }
 0xb23   : > { %8141 = vmatpush3.bf16.msra.mxu0 %v11273_v16  ;;  %8180 = vmatpush3.bf16.msra.mxu1 %v11211_v7  ;;  %v8709_v7 = vld [vmem:[%s12003_s17 + $0xd4] ss:$8 sps:$4 sm:$0xff]  }
 0xb24   : > { %5608 = vmatprep.mubr.bf16.mxu1 %v11169_v44  ;;  %8142 = vmatprep.subr.bf16.mxu0 %v11279_v26  ;;  %v8691_v44 = vld [vmem:[%s12003_s17 + $0x74] ss:$8 sps:$4 sm:$0xff]  }
 0xb25   : > { %8181 = vmatprep.subr.bf16.mxu1 %v11218_v33  ;;  %v8712_v33 = vld [vmem:[%s12003_s17 + $0xe4] ss:$8 sps:$4 sm:$0xff]  }
 0xb27   : > { %8143 = vmatpush3.bf16.msra.mxu0 %v11285_v51  ;;  %8182 = vmatpush3.bf16.msra.mxu1 %v11225_v47  ;;  %v8710_v47 = vld [vmem:[%s12003_s17 + $0xe0] ss:$8 sps:$4 sm:$0xff]  }
 0xb28   : > { %8144 = vmatprep.subr.bf16.mxu0 %v11291_v12  ;;  %8183 = vmatprep.subr.bf16.mxu1 %v11231_v58  ;;  %v8715_v58 = vld [vmem:[%s12003_s17 + $0xf4] ss:$8 sps:$4 sm:$0xff]  }
 0xb2b   : > { %8145 = vmatpush3.bf16.msra.mxu0 %v11297_v0  ;;  %8184 = vmatpush3.bf16.msra.mxu1 %v11237_v22  ;;  %v8713_v22 = vld [vmem:[%s12003_s17 + $0xf0] ss:$8 sps:$4 sm:$0xff]  }
 0xb2c   : > { %8157 = vmatprep.subr.bf16.mxu0 %v11047_v35  ;;  %8185 = vmatprep.subr.bf16.mxu1 %v11243_v34  ;;  %v8670_v35 = vld [vmem:[%s12003_s17 + $0x4] ss:$8 sps:$4 sm:$0xff]  }
 0xb2e   : > { %5469 = vmatmul.mubr.bf16.vlgmr.msra.gmra.mrb[248].mxu0 %v11180_v52 }
 0xb2f   : > { %8158 = vmatpush3.bf16.msra.mxu0 %v11052_v37  ;;  %5568 = vmatprep.mubr.bf16.mxu0 %v5531_v46  ;;  %v5524_v37 = vpop.permute.xlu0 %5523 }
 0xb30   : > { %8186 = vmatpush3.bf16.msra.mxu1 %v11249_v54  ;;  %8159 = vmatprep.subr.bf16.mxu0 %v11060_v62  ;;  %v8668_v62 = vld [vmem:[%s12003_s17] ss:$8 sps:$4 sm:$0xff]   ;;  %v8718_v54 = vld [vmem:[%s12003_s17 + $0x104] ss:$8 sps:$4 sm:$0xff]  }
 0xb31   : > { %8187 = vmatprep.subr.bf16.mxu1 %v11255_v60 }
 0xb33   : > { %8160 = vmatpush3.bf16.msra.mxu0 %v11065_v27  ;;  %v8673_v27 = vld [vmem:[%s12003_s17 + $0x14] ss:$8 sps:$4 sm:$0xff]  }
 0xb34   : > { %8188 = vmatpush3.bf16.msra.mxu1 %v11261_v43  ;;  %8161 = vmatprep.subr.bf16.mxu0 %v11072_v3  ;;  %v5525_v3 = vsel %vm4431_vm14, %v11304_v28, %v5524_v37 }
 0xb35   : > { %8189 = vmatprep.subr.bf16.mxu1 %v11267_v32 }
 0xb37   : > { %8162 = vmatpush3.bf16.msra.mxu0 %v11077_v61  ;;  %v8671_v61 = vld [vmem:[%s12003_s17 + $0x10] ss:$8 sps:$4 sm:$0xff]  }
 0xb38   : > { %8190 = vmatpush3.bf16.msra.mxu1 %v11273_v16  ;;  %8163 = vmatprep.subr.bf16.mxu0 %v11084_v19  ;;  %v8676_v19 = vld [vmem:[%s12003_s17 + $0x24] ss:$8 sps:$4 sm:$0xff]  }
 0xb39   : > { %8191 = vmatprep.subr.bf16.mxu1 %v11279_v26 }
 0xb3b   : > { %8164 = vmatpush3.bf16.msra.mxu0 %v11089_v56  ;;  %v8674_v56 = vld [vmem:[%s12003_s17 + $0x20] ss:$8 sps:$4 sm:$0xff]  }
 0xb3c   : > { %8192 = vmatpush3.bf16.msra.mxu1 %v11285_v51  ;;  %8165 = vmatprep.subr.bf16.mxu0 %v11094_v1  ;;  %v8679_v1 = vld [vmem:[%s12003_s17 + $0x34] ss:$8 sps:$4 sm:$0xff]  }
 0xb3d   : > { %8193 = vmatprep.subr.bf16.mxu1 %v11291_v12 }
 0xb3f   : > { %8166 = vmatpush3.bf16.msra.mxu0 %v11101_v13  ;;  %v8677_v13 = vld [vmem:[%s12003_s17 + $0x30] ss:$8 sps:$4 sm:$0xff]  }
 0xb40   : > { %8194 = vmatpush3.bf16.msra.mxu1 %v11297_v0  ;;  %8167 = vmatprep.subr.bf16.mxu0 %v11107_v53  ;;  %v8682_v53 = vld [vmem:[%s12003_s17 + $0x44] ss:$8 sps:$4 sm:$0xff]  }
 0xb41   : > { %6585 = vmatprep.subr.bf16.mxu1 %v8670_v35 }
 0xb43   : > { %5609 = vmatmul.mubr.bf16.vlgmr.msra.gmra.mrb[148].mxu1 %v5525_v3  ;;  %8168 = vmatpush3.bf16.msra.mxu0 %v11113_v20  ;;  %v8680_v20 = vld [vmem:[%s12003_s17 + $0x40] ss:$8 sps:$4 sm:$0xff]  }
 0xb44   : > { %8169 = vmatprep.subr.bf16.mxu0 %v11119_v31  ;;  %6586 = vmatpush1.bf16.msra.mxu1 %v8668_v62  ;;  %v8685_v31 = vld [vmem:[%s12003_s17 + $0x54] ss:$8 sps:$4 sm:$0xff]   ;;  %v11489_v62 = vld [vmem:[%s12002_s16] sm:$0x7] }
 0xb45   : > { %6587 = vmatprep.subr.bf16.mxu1 %v8673_v27  ;;  %v5661_v27 = vrot.slane %v11489_v62, %v9874_v48 }
 0xb47   : > { %8170 = vmatpush3.bf16.msra.mxu0 %v11125_v36 }
 0xb48   : > { %8171 = vmatprep.subr.bf16.mxu0 %v11136_v18  ;;  %6588 = vmatpush1.bf16.msra.mxu1 %v8671_v61 }
 0xb49   : > { %6589 = vmatprep.subr.bf16.mxu1 %v8676_v19 }
 0xb4b   : > { %8172 = vmatpush3.bf16.msra.mxu0 %v11144_v55 }
 0xb4c   : > { %8357 = vmatprep.subr.bf16.mxu0 %v12073_v6  ;;  %6590 = vmatpush1.bf16.msra.mxu1 %v8674_v56 }
 0xb4d   : > { %6591 = vmatprep.subr.bf16.mxu1 %v8679_v1 }
 0xb4e   : > { %5569 = vmatmul.mubr.bf16.vlgmr.msra.gmra.mrb[252].mxu0 %v11164_v8  ;;  %v8689_v8 = vld [vmem:[%s12003_s17 + $0x70] ss:$8 sps:$4 sm:$0xff]  }
 0xb4f   : > { %8358 = vmatpush3.bf16.msra.mxu0 %v11020_v50  ;;  %8365 = vmatprep.mubr.msk.bf16.mxu0 %vm8977_vm2, %v12073_v6  ;;  %v5528_v50 = vrot.slane %v11189_v39, 1  ;;  %v8700_v39 = vld [vmem:[%s12003_s17 + $0xa4] ss:$8 sps:$4 sm:$0xff]  }
 0xb50   : > { %8359 = vmatprep.subr.bf16.mxu0 %v12073_v6  ;;  %6592 = vmatpush1.bf16.msra.mxu1 %v8677_v13 }
 0xb51   : > { %6593 = vmatprep.subr.bf16.mxu1 %v8682_v53 }
 0xb53   : > { %8360 = vmatpush3.bf16.msra.mxu0 %v11027_v25  ;;  %v8683_v25 = vld [vmem:[%s12003_s17 + $0x50] ss:$8 sps:$4 sm:$0xff]  }
 0xb54   : > { %8361 = vmatprep.subr.bf16.mxu0 %v12073_v6  ;;  %6594 = vmatpush1.bf16.msra.mxu1 %v8680_v20 }
 0xb55   : > { %6595 = vmatprep.subr.bf16.mxu1 %v8685_v31 }
 0xb57   : > { %8362 = vmatpush3.bf16.msra.mxu0 %v11034_v11  ;;  %v8688_v11 = vld [vmem:[%s12003_s17 + $0x64] ss:$8 sps:$4 sm:$0xff]  }
 0xb58   : > { %8363 = vmatprep.subr.bf16.mxu0 %v12073_v6  ;;  %6596 = vmatpush1.bf16.msra.mxu1 %v8683_v25 }
 0xb59   : > { %6597 = vmatprep.subr.bf16.mxu1 %v8688_v11 }
 0xb5b   : > { %8364 = vmatpush3.bf16.msra.mxu0 %v11041_v57  ;;  %v8686_v57 = vld [vmem:[%s12003_s17 + $0x60] ss:$8 sps:$4 sm:$0xff]  }
 0xb5c   : > { %6598 = vmatpush1.bf16.msra.mxu1 %v8686_v57 }
 0xb5d   : > { %6599 = vmatprep.subr.bf16.mxu1 %v8691_v44  ;;  %v8721_v44 = vld [vmem:[%s12003_s17 + $0x114] ss:$8 sps:$4 sm:$0xff]  }
 0xb5e   : > { %8366 = vmatmul.mubr.msk.bf16.vlgmr.msra.gmra.mrb[0].mxu0 %vm4431_vm14, %v5528_v50  ;;  %v5665_v50 = vrot.slane %v11489_v62, %v9902_v10 }
 0xb60   : > { %6600 = vmatpush1.bf16.msra.mxu1 %v8689_v8  ;;  %v8716_v8 = vld [vmem:[%s12003_s17 + $0x100] ss:$8 sps:$4 sm:$0xff]  }
 0xb61   : > { %6601 = vmatprep.subr.bf16.mxu1 %v8694_v14  ;;  %v8719_v14 = vld [vmem:[%s12003_s17 + $0x110] ss:$8 sps:$4 sm:$0xff]  }
 0xb64   : > { %6602 = vmatpush1.bf16.msra.mxu1 %v8692_v30  ;;  %v8724_v30 = vld [vmem:[%s12003_s17 + $0x124] ss:$8 sps:$4 sm:$0xff]  }
 0xb65   : > { %6603 = vmatprep.subr.bf16.mxu1 %v8697_v38 }
 0xb68   : > { %6604 = vmatpush1.bf16.msra.mxu1 %v8695_v40  ;;  %v8722_v40 = vld [vmem:[%s12003_s17 + $0x120] ss:$8 sps:$4 sm:$0xff]  }
 0xb69   : > { %v5370_v36 = vpop.f32.mrb[136].mxu1  ;;  %6605 = vmatprep.subr.bf16.mxu1 %v8700_v39 }
 0xb6a   : > { %v8343_v18 = vpop.f32.mrb[137].mxu1 }
 0xb6b   : > { %v5373_v55 = vpop.f32.mrb[138].mxu1 }
 0xb6c   : > { %v8344_v52 = vpop.f32.mrb[139].mxu1  ;;  %6606 = vmatpush1.bf16.msra.mxu1 %v8698_v21  ;;  %v8727_v21 = vld [vmem:[%s12003_s17 + $0x134] ss:$8 sps:$4 sm:$0xff]  }
 0xb6d   : > { %6607 = vmatprep.subr.bf16.mxu1 %v8703_v42 }
 0xb70   : > { %6608 = vmatpush1.bf16.msra.mxu1 %v8701_v15 }
 0xb71   : > { %6609 = vmatprep.subr.bf16.mxu1 %v8706_v23 }
 0xb74   : > { %6610 = vmatpush1.bf16.msra.mxu1 %v8704_v17  ;;  %v8725_v17 = vld [vmem:[%s12003_s17 + $0x130] ss:$8 sps:$4 sm:$0xff]  }
 0xb75   : > { %6611 = vmatprep.subr.bf16.mxu1 %v8709_v7  ;;  %v8730_v7 = vld [vmem:[%s12003_s17 + $0x144] ss:$8 sps:$4 sm:$0xff]  }
 0xb78   : > { %6612 = vmatpush1.bf16.msra.mxu1 %v8707_v29  ;;  %v8728_v29 = vld [vmem:[%s12003_s17 + $0x140] ss:$8 sps:$4 sm:$0xff]  }
 0xb79   : > { %6613 = vmatprep.subr.bf16.mxu1 %v8712_v33  ;;  %v8733_v33 = vld [vmem:[%s12003_s17 + $0x154] ss:$8 sps:$4 sm:$0xff]  }
 0xb7c   : > { %6614 = vmatpush1.bf16.msra.mxu1 %v8710_v47 }
 0xb7d   : > { %6615 = vmatprep.subr.bf16.mxu1 %v8715_v58 }
 0xb80   : > { %6616 = vmatpush1.bf16.msra.mxu1 %v8713_v22  ;;  %v8731_v22 = vld [vmem:[%s12003_s17 + $0x150] ss:$8 sps:$4 sm:$0xff]  }
 0xb81   : > { %6626 = vmatprep.subr.bf16.mxu1 %v8718_v54 }
 0xb8f   : > { %v8075_v34 = vpop.f32.mrb[240].mxu0 }
 0xb90   : > { %v8076_v60 = vpop.f32.mrb[241].mxu0 }
 0xb91   : > { %v8077_v43 = vadd.f32 %v8076_v60, %v8075_v34  ;;  %v8078_v32 = vpop.f32.mrb[242].mxu0  ;;  %v8736_v60 = vld [vmem:[%s12003_s17 + $0x164] ss:$8 sps:$4 sm:$0xff]  }
 0xb92   : > { %v8079_v16 = vpop.f32.mrb[243].mxu0 }
 0xb93   : > { %v8734_v16 = vld [vmem:[%s12003_s17 + $0x160] ss:$8 sps:$4 sm:$0xff]  }
 0xbe1   : > { %v8097_v26 = vpop.f32.mrb[244].mxu0 }
 0xbe2   : > { %v8098_v51 = vpop.f32.mrb[245].mxu0 }
 0xbe3   : > { %v8099_v12 = vadd.f32 %v8098_v51, %v8097_v26  ;;  %v8100_v0 = vpop.f32.mrb[246].mxu0  ;;  %v8739_v26 = vld [vmem:[%s12003_s17 + $0x174] ss:$8 sps:$4 sm:$0xff]   ;;  %v8737_v51 = vld [vmem:[%s12003_s17 + $0x170] ss:$8 sps:$4 sm:$0xff]  }
 0xbe4   : > { %v8101_v4 = vpop.f32.mrb[247].mxu0  ;;  %v8740_v0 = vld [vmem:[%s12003_s17 + $0x180] ss:$8 sps:$4 sm:$0xff]  }
 0xbe5   : > { %v5331_v49 = vadd.f32 %v8099_v12, %v8077_v43  ;;  %v8124_v28 = vpop.f32.mrb[140].mxu1  ;;  %v8742_v12 = vld [vmem:[%s12003_s17 + $0x184] ss:$8 sps:$4 sm:$0xff]   ;;  %v8745_v4 = vld [vmem:[%s12003_s17 + $0x194] ss:$8 sps:$4 sm:$0xff]  }
 0xbe6   : > { %v8125_v41 = vpop.f32.mrb[141].mxu1 }
 0xbe7   : > { %v5371_v5 = vadd.f32 %v5370_v36, %v5331_v49  ;;  %v8126_v9 = vadd.f32 %v8125_v41, %v8124_v28  ;;  %v8127_v59 = vpop.f32.mrb[142].mxu1  ;;  %v5669_v49 = vrot.slane %v11489_v62, %v9928_v63  ;;  %v8746_v63 = vld [vmem:[%s12003_s17 + $0x1a0] ss:$8 sps:$4 sm:$0xff]   ;;  %v8754_v62 = vld [vmem:[%s12003_s17 + $0x1c4] ss:$8 sps:$4 sm:$0xff]  }
 0xbe8   : > { %v8128_v2 = vpop.f32.mrb[143].mxu1 }
 0xbe9   : > { %v5673_v3 = vadd.f32 %v5661_v27, %v5371_v5  ;;  %v8748_v2 = vld [vmem:[%s12003_s17 + $0x1a4] ss:$8 sps:$4 sm:$0xff]   ;;  %v8752_v27 = vld [vmem:[%s12003_s17 + $0x1c0] ss:$8 sps:$4 sm:$0xff]  }
 0xbeb   : > { %v5679_v53 = vmul.f32 0.01, %v5673_v3  ;;  %vm5676_vm6 = vcmp.ge.f32.partialorder %v5673_v3, 0.0 }
 0xbed   : > { %v5682_v11 = vsel %vm5676_vm6, %v5673_v3, %v5679_v53  ;;  %v8757_v3 = vld [vmem:[%s12003_s17 + $0x1d4] ss:$8 sps:$4 sm:$0xff]  }
 0xbee   : > { %v11495_v36 = vpack.c.bf16 %v5682_v11, %v5682_v11  ;;  %v8769_v11 = vld [vmem:[%s12003_s17 + $0x214] ss:$8 sps:$4 sm:$0xff]  }
 0xbf0   : > { %v5833_v52 = vshrl.u32 %v11495_v36, 16 }
 0xbf5   : > { %v5510_v24 = vpop.f32.mrb[144].mxu1 }
 0xbf6   : > { %v8355_v46 = vpop.f32.mrb[145].mxu1 }
 0xbf7   : > { %v5513_v35 = vpop.f32.mrb[146].mxu1 }
 0xbf8   : > { %v8356_v37 = vpop.f32.mrb[147].mxu1  ;;  %v8751_v35 = vld [vmem:[%s12003_s17 + $0x1b4] ss:$8 sps:$4 sm:$0xff]  }
 0xbf9   : > { %v8749_v37 = vld [vmem:[%s12003_s17 + $0x1b0] ss:$8 sps:$4 sm:$0xff]  }
 0xc01   : > { %v8146_v61 = vpop.f32.mrb[248].mxu0 }
 0xc02   : > { %v8147_v19 = vpop.f32.mrb[249].mxu0 }
 0xc03   : > { %v8148_v56 = vadd.f32 %v8147_v19, %v8146_v61  ;;  %v8149_v1 = vpop.f32.mrb[250].mxu0  ;;  %v8755_v61 = vld [vmem:[%s12003_s17 + $0x1d0] ss:$8 sps:$4 sm:$0xff]   ;;  %v8760_v19 = vld [vmem:[%s12003_s17 + $0x1e4] ss:$8 sps:$4 sm:$0xff]  }
 0xc04   : > { %v8150_v13 = vpop.f32.mrb[251].mxu0  ;;  %v8758_v1 = vld [vmem:[%s12003_s17 + $0x1e0] ss:$8 sps:$4 sm:$0xff]  }
 0xc05   : > { %v5471_v20 = vadd.f32 %v8148_v56, %v8126_v9  ;;  %v8743_v9 = vld [vmem:[%s12003_s17 + $0x190] ss:$8 sps:$4 sm:$0xff]   ;;  %v8763_v13 = vld [vmem:[%s12003_s17 + $0x1f4] ss:$8 sps:$4 sm:$0xff]  }
 0xc07   : > { %v5511_v31 = vadd.f32 %v5510_v24, %v5471_v20  ;;  %v8761_v20 = vld [vmem:[%s12003_s17 + $0x1f0] ss:$8 sps:$4 sm:$0xff]  }
 0xc09   : > { %v5674_v25 = vadd.f32 %v5665_v50, %v5511_v31  ;;  %v8766_v50 = vld [vmem:[%s12003_s17 + $0x204] ss:$8 sps:$4 sm:$0xff]  }
 0xc0b   : > { %vm5677_vm7 = vcmp.ge.f32.partialorder %v5674_v25, 0.0  ;;  %v5680_v57 = vmul.f32 0.01, %v5674_v25 }
 0xc0d   : > { %v5683_v18 = vsel %vm5677_vm7, %v5674_v25, %v5680_v57  ;;  %v8764_v25 = vld [vmem:[%s12003_s17 + $0x200] ss:$8 sps:$4 sm:$0xff]  }
 0xc0e   : > { %v11497_v55 = vpack.c.bf16 %v5683_v18, %v5683_v18  ;;  %v8767_v18 = vld [vmem:[%s12003_s17 + $0x210] ss:$8 sps:$4 sm:$0xff]  }
 0xc10   : > { %6617 = vmatprep.mubr.bf16.mxu1 %v11497_v55 }
 0xc11   : > { %6618 = vmatmul.mubr.bf16.vlgmr.msra.gmra.mrb[152].mxu1 %v11495_v36 }
 0xc12   : > { %6627 = vmatpush1.bf16.msra.mxu1 %v8716_v8  ;;  %6658 = vmatprep.mubr.bf16.mxu1 %v5833_v52  ;;  %v8772_v8 = vld [vmem:[%s12003_s17 + $0x224] ss:$8 sps:$4 sm:$0xff]   ;;  %v8775_v52 = vld [vmem:[%s12003_s17 + $0x234] ss:$8 sps:$4 sm:$0xff]  }
 0xc13   : > { %6628 = vmatprep.subr.bf16.mxu1 %v8721_v44  ;;  %v8770_v44 = vld [vmem:[%s12003_s17 + $0x220] ss:$8 sps:$4 sm:$0xff]  }
 0xc16   : > { %v8195_v38 = vpop.f32.mrb[148].mxu1  ;;  %6629 = vmatpush1.bf16.msra.mxu1 %v8719_v14  ;;  %v8773_v14 = vld [vmem:[%s12003_s17 + $0x230] ss:$8 sps:$4 sm:$0xff]  }
 0xc17   : > { %v8196_v39 = vpop.f32.mrb[149].mxu1  ;;  %6630 = vmatprep.subr.bf16.mxu1 %v8724_v30  ;;  %v8778_v30 = vld [vmem:[%s12003_s17 + $0x244] ss:$8 sps:$4 sm:$0xff]  }
 0xc18   : > { %v8197_v42 = vadd.f32 %v8196_v39, %v8195_v38  ;;  %v8198_v15 = vpop.f32.mrb[150].mxu1  ;;  %v8776_v38 = vld [vmem:[%s12003_s17 + $0x240] ss:$8 sps:$4 sm:$0xff]   ;;  %v8779_v39 = vld [vmem:[%s12003_s17 + $0x250] ss:$8 sps:$4 sm:$0xff]  }
 0xc19   : > { %v8199_v23 = vpop.f32.mrb[151].mxu1  ;;  %v8787_v15 = vld [vmem:[%s12003_s17 + $0x274] ss:$8 sps:$4 sm:$0xff]  }
 0xc1a   : > { %6631 = vmatpush1.bf16.msra.mxu1 %v8722_v40  ;;  %v8781_v40 = vld [vmem:[%s12003_s17 + $0x254] ss:$8 sps:$4 sm:$0xff]   ;;  %v8785_v23 = vld [vmem:[%s12003_s17 + $0x270] ss:$8 sps:$4 sm:$0xff]  }
 0xc1b   : > { %6632 = vmatprep.subr.bf16.mxu1 %v8727_v21  ;;  %v8784_v21 = vld [vmem:[%s12003_s17 + $0x264] ss:$8 sps:$4 sm:$0xff]  }
 0xc1e   : > { %6633 = vmatpush1.bf16.msra.mxu1 %v8725_v17  ;;  %v8790_v17 = vld [vmem:[%s12003_s17 + $0x284] ss:$8 sps:$4 sm:$0xff]  }
 0xc1f   : > { %6634 = vmatprep.subr.bf16.mxu1 %v8730_v7  ;;  %v8788_v7 = vld [vmem:[%s12003_s17 + $0x280] ss:$8 sps:$4 sm:$0xff]  }
 0xc21   : > { %v8173_v47 = vpop.f32.mrb[252].mxu0 }
 0xc22   : > { %6635 = vmatpush1.bf16.msra.mxu1 %v8728_v29  ;;  %v8174_v58 = vpop.f32.mrb[253].mxu0  ;;  %v8793_v29 = vld [vmem:[%s12003_s17 + $0x294] ss:$8 sps:$4 sm:$0xff]  }
 0xc23   : > { %v8175_v34 = vadd.f32 %v8174_v58, %v8173_v47  ;;  %v8176_v54 = vpop.f32.mrb[254].mxu0  ;;  %6636 = vmatprep.subr.bf16.mxu1 %v8733_v33  ;;  %v8884_v33 = vld [vmem:[%s12005_s19 + $0x40] sm:$0xff]   ;;  %v8886_v58 = vld [vmem:[%s12005_s19 + $0x48] sm:$0xff]  }
 0xc24   : > { %v8177_v43 = vpop.f32.mrb[255].mxu0  ;;  %v8885_v47 = vld [vmem:[%s12005_s19] sm:$0xff]   ;;  %8206 = vmatprep.subr.bf16.mxu0 %v8884_v33  ;;  %v8887_v54 = vld [vmem:[%s12005_s19 + $0x8] sm:$0xff]   ;;  %v8857_v33 = vld [vmem:[%s12003_s17 + $0x3f0] ss:$8 sps:$4 sm:$0xff]  }
 0xc25   : > { %v5611_v32 = vadd.f32 %v8197_v42, %v8175_v34  ;;  %v8782_v42 = vld [vmem:[%s12003_s17 + $0x260] ss:$8 sps:$4 sm:$0xff]   ;;  %v8796_v34 = vld [vmem:[%s12003_s17 + $0x2a4] ss:$8 sps:$4 sm:$0xff]   ;;  %8207 = vmatpush3.bf16.msra.mxu0 %v8885_v47 }
 0xc26   : > { %6637 = vmatpush1.bf16.msra.mxu1 %v8731_v22  ;;  %v8791_v22 = vld [vmem:[%s12003_s17 + $0x290] ss:$8 sps:$4 sm:$0xff]   ;;  %8208 = vmatprep.subr.bf16.mxu0 %v8886_v58  ;;  %v8794_v43 = vld [vmem:[%s12003_s17 + $0x2a0] ss:$8 sps:$4 sm:$0xff]   ;;  %v8862_v47 = vld [vmem:[%s12003_s17 + $0x404] ss:$8 sps:$4 sm:$0xff]  }
 0xc27   : > { %6638 = vmatprep.subr.bf16.mxu1 %v8736_v60  ;;  %v8888_v60 = vld [vmem:[%s12005_s19 + $0x50] sm:$0xff]   ;;  %v8860_v58 = vld [vmem:[%s12003_s17 + $0x400] ss:$8 sps:$4 sm:$0xff]  }
 0xc29   : > { %8209 = vmatpush3.bf16.msra.mxu0 %v8887_v54  ;;  %v8863_v54 = vld [vmem:[%s12003_s17 + $0x410] ss:$8 sps:$4 sm:$0xff]  }
 0xc2a   : > { %6639 = vmatpush1.bf16.msra.mxu1 %v8734_v16  ;;  %v8889_v16 = vld [vmem:[%s12005_s19 + $0x10] sm:$0xff]   ;;  %8210 = vmatprep.subr.bf16.mxu0 %v8888_v60  ;;  %v8868_v60 = vld [vmem:[%s12003_s17 + $0x424] ss:$8 sps:$4 sm:$0xff]  }
 0xc2b   : > { %6640 = vmatprep.subr.bf16.mxu1 %v8739_v26  ;;  %v8890_v26 = vld [vmem:[%s12005_s19 + $0x58] sm:$0xff]  }
 0xc2d   : > { %8211 = vmatpush3.bf16.msra.mxu0 %v8889_v16  ;;  %v8872_v16 = vld [vmem:[%s12003_s17 + $0x440] ss:$8 sps:$4 sm:$0xff]  }
 0xc2e   : > { %6641 = vmatpush1.bf16.msra.mxu1 %v8737_v51  ;;  %v8797_v51 = vld [vmem:[%s12003_s17 + $0x2b0] ss:$8 sps:$4 sm:$0xff]   ;;  %8212 = vmatprep.subr.bf16.mxu0 %v8890_v26  ;;  %v8877_v26 = vld [vmem:[%s12003_s17 + $0x454] ss:$8 sps:$4 sm:$0xff]  }
 0xc2f   : > { %6642 = vmatprep.subr.bf16.mxu1 %v8742_v12  ;;  %v8802_v12 = vld [vmem:[%s12003_s17 + $0x2c4] ss:$8 sps:$4 sm:$0xff]  }
 0xc31   : > { %v5650_v28 = vpop.f32.mrb[0].mxu0 }
 0xc32   : > { %v5651_v41 = vadd.f32 %v5650_v28, %v5611_v32  ;;  %6643 = vmatpush1.bf16.msra.mxu1 %v8740_v0  ;;  %v8367_v5 = vpop.f32.mrb[1].mxu0  ;;  %v8799_v32 = vld [vmem:[%s12003_s17 + $0x2b4] ss:$8 sps:$4 sm:$0xff]  }
 0xc33   : > { %v5653_v59 = vpop.f32.mrb[2].mxu0  ;;  %6644 = vmatprep.subr.bf16.mxu1 %v8745_v4  ;;  %v8891_v0 = vld [vmem:[%s12005_s19 + $0x18] sm:$0xff]   ;;  %v8892_v4 = vld [vmem:[%s12005_s19 + $0x60] sm:$0xff]   ;;  %v8894_v5 = vld [vmem:[%s12005_s19 + $0x68] sm:$0xff]  }
 0xc34   : > { %v5675_v24 = vadd.f32 %v5669_v49, %v5651_v41  ;;  %v8368_v46 = vpop.f32.mrb[3].mxu0  ;;  %v8800_v49 = vld [vmem:[%s12003_s17 + $0x2c0] ss:$8 sps:$4 sm:$0xff]   ;;  %v8805_v28 = vld [vmem:[%s12003_s17 + $0x2d4] ss:$8 sps:$4 sm:$0xff]   ;;  %8213 = vmatpush3.bf16.msra.mxu0 %v8891_v0 }
 0xc35   : > { %v8893_v41 = vld [vmem:[%s12005_s19 + $0x20] sm:$0xff]   ;;  %8214 = vmatprep.subr.bf16.mxu0 %v8892_v4  ;;  %v8811_v46 = vld [vmem:[%s12003_s17 + $0x2f4] ss:$8 sps:$4 sm:$0xff]  }
 0xc36   : > { %6645 = vmatpush1.bf16.msra.mxu1 %v8743_v9  ;;  %v5681_v56 = vmul.f32 0.01, %v5675_v24  ;;  %vm5678_vm1 = vcmp.ge.f32.partialorder %v5675_v24, 0.0  ;;  %v8803_v9 = vld [vmem:[%s12003_s17 + $0x2d0] ss:$8 sps:$4 sm:$0xff]  }
 0xc37   : > { %6646 = vmatprep.subr.bf16.mxu1 %v8748_v2  ;;  %v8808_v59 = vld [vmem:[%s12003_s17 + $0x2e4] ss:$8 sps:$4 sm:$0xff]   ;;  %v8878_v0 = vld [vmem:[%s12003_s17 + $0x460] ss:$8 sps:$4 sm:$0xff]   ;;  %v8883_v4 = vld [vmem:[%s12003_s17 + $0x474] ss:$8 sps:$4 sm:$0xff]  }
 0xc38   : > { %v5684_v53 = vsel %vm5678_vm1, %v5675_v24, %v5681_v56  ;;  %8215 = vmatpush3.bf16.msra.mxu0 %v8893_v41  ;;  %v8895_v2 = vld [vmem:[%s12005_s19 + $0x28] sm:$0xff]   ;;  %v8896_v41 = vld [vmem:[%s12005_s19 + $0x70] sm:$0xff]  }
 0xc39   : > { %v11600_v31 = vpack.c.bf16 %v5684_v53, %v5684_v53  ;;  %8216 = vmatprep.subr.bf16.mxu0 %v8894_v5  ;;  %v8806_v24 = vld [vmem:[%s12003_s17 + $0x2e0] ss:$8 sps:$4 sm:$0xff]   ;;  %v8897_v5 = vld [vmem:[%s12005_s19 + $0x30] sm:$0xff]  }
 0xc3a   : > { %6647 = vmatpush1.bf16.msra.mxu1 %v8746_v63  ;;  %v8809_v63 = vld [vmem:[%s12003_s17 + $0x2f0] ss:$8 sps:$4 sm:$0xff]   ;;  %v8818_v56 = vld [vmem:[%s12003_s17 + $0x320] ss:$8 sps:$4 sm:$0xff]  }
 0xc3b   : > { %6648 = vmatprep.subr.bf16.mxu1 %v8751_v35  ;;  %v5839_v57 = vshrl.u32 %v11600_v31, 16  ;;  %v8814_v35 = vld [vmem:[%s12003_s17 + $0x304] ss:$8 sps:$4 sm:$0xff]   ;;  %v8824_v53 = vld [vmem:[%s12003_s17 + $0x340] ss:$8 sps:$4 sm:$0xff]  }
 0xc3c   : > { %8217 = vmatpush3.bf16.msra.mxu0 %v8895_v2 }
 0xc3d   : > { %8218 = vmatprep.subr.bf16.mxu0 %v8896_v41 }
 0xc3e   : > { %6649 = vmatpush1.bf16.msra.mxu1 %v8749_v37  ;;  %v8812_v37 = vld [vmem:[%s12003_s17 + $0x300] ss:$8 sps:$4 sm:$0xff]  }
 0xc3f   : > { %6650 = vmatprep.subr.bf16.mxu1 %v8754_v62  ;;  %v5836_v62 = vshrl.u32 %v11497_v55, 16 }
 0xc40   : > { %8219 = vmatpush3.bf16.msra.mxu0 %v8897_v5 }
 0xc42   : > { %6651 = vmatpush1.bf16.msra.mxu1 %v8752_v27  ;;  %v8817_v27 = vld [vmem:[%s12003_s17 + $0x314] ss:$8 sps:$4 sm:$0xff]  }
 0xc43   : > { %6652 = vmatprep.subr.bf16.mxu1 %v8757_v3  ;;  %v5848_v3 = vrot.slane %v11497_v55, 1  ;;  %v8823_v55 = vld [vmem:[%s12003_s17 + $0x334] ss:$8 sps:$4 sm:$0xff]  }
 0xc46   : > { %6653 = vmatpush1.bf16.msra.mxu1 %v8755_v61  ;;  %v8815_v61 = vld [vmem:[%s12003_s17 + $0x310] ss:$8 sps:$4 sm:$0xff]  }
 0xc47   : > { %6654 = vmatprep.subr.bf16.mxu1 %v8760_v19  ;;  %v8820_v19 = vld [vmem:[%s12003_s17 + $0x324] ss:$8 sps:$4 sm:$0xff]  }
 0xc4a   : > { %6655 = vmatpush1.bf16.msra.mxu1 %v8758_v1  ;;  %v8821_v1 = vld [vmem:[%s12003_s17 + $0x330] ss:$8 sps:$4 sm:$0xff]  }
 0xc4b   : > { %6656 = vmatprep.subr.bf16.mxu1 %v8763_v13  ;;  %v8826_v13 = vld [vmem:[%s12003_s17 + $0x344] ss:$8 sps:$4 sm:$0xff]  }
 0xc4e   : > { %6657 = vmatpush1.bf16.msra.mxu1 %v8761_v20  ;;  %v8829_v20 = vld [vmem:[%s12003_s17 + $0x354] ss:$8 sps:$4 sm:$0xff]  }
 0xc4f   : > { %6667 = vmatprep.subr.bf16.mxu1 %v8766_v50  ;;  %v8827_v50 = vld [vmem:[%s12003_s17 + $0x350] ss:$8 sps:$4 sm:$0xff]  }
 0xc51   : > { %6659 = vmatmul.mubr.bf16.vlgmr.msra.gmra.mrb[152].mxu1 %v11600_v31 }
 0xc52   : > { %6668 = vmatpush1.bf16.msra.mxu1 %v8764_v25  ;;  %6699 = vmatprep.mubr.bf16.mxu1 %v5839_v57  ;;  %v8832_v25 = vld [vmem:[%s12003_s17 + $0x364] ss:$8 sps:$4 sm:$0xff]   ;;  %v8835_v57 = vld [vmem:[%s12003_s17 + $0x374] ss:$8 sps:$4 sm:$0xff]  }
 0xc53   : > { %6669 = vmatprep.subr.bf16.mxu1 %v8769_v11  ;;  %v8830_v11 = vld [vmem:[%s12003_s17 + $0x360] ss:$8 sps:$4 sm:$0xff]  }
 0xc56   : > { %6670 = vmatpush1.bf16.msra.mxu1 %v8767_v18  ;;  %v8833_v18 = vld [vmem:[%s12003_s17 + $0x370] ss:$8 sps:$4 sm:$0xff]  }
 0xc57   : > { %6671 = vmatprep.subr.bf16.mxu1 %v8772_v8  ;;  %v8838_v8 = vld [vmem:[%s12003_s17 + $0x384] ss:$8 sps:$4 sm:$0xff]  }
 0xc5a   : > { %6672 = vmatpush1.bf16.msra.mxu1 %v8770_v44  ;;  %v8836_v44 = vld [vmem:[%s12003_s17 + $0x380] ss:$8 sps:$4 sm:$0xff]  }
 0xc5b   : > { %6673 = vmatprep.subr.bf16.mxu1 %v8775_v52  ;;  %v8841_v52 = vld [vmem:[%s12003_s17 + $0x394] ss:$8 sps:$4 sm:$0xff]  }
 0xc5e   : > { %6674 = vmatpush1.bf16.msra.mxu1 %v8773_v14  ;;  %v8839_v14 = vld [vmem:[%s12003_s17 + $0x390] ss:$8 sps:$4 sm:$0xff]  }
 0xc5f   : > { %6675 = vmatprep.subr.bf16.mxu1 %v8778_v30  ;;  %v8844_v30 = vld [vmem:[%s12003_s17 + $0x3a4] ss:$8 sps:$4 sm:$0xff]  }
 0xc62   : > { %6676 = vmatpush1.bf16.msra.mxu1 %v8776_v38  ;;  %v8842_v38 = vld [vmem:[%s12003_s17 + $0x3a0] ss:$8 sps:$4 sm:$0xff]  }
 0xc63   : > { %6677 = vmatprep.subr.bf16.mxu1 %v8781_v40  ;;  %v8847_v40 = vld [vmem:[%s12003_s17 + $0x3b4] ss:$8 sps:$4 sm:$0xff]  }
 0xc66   : > { %6678 = vmatpush1.bf16.msra.mxu1 %v8779_v39  ;;  %v8845_v39 = vld [vmem:[%s12003_s17 + $0x3b0] ss:$8 sps:$4 sm:$0xff]  }
 0xc67   : > { %6679 = vmatprep.subr.bf16.mxu1 %v8784_v21  ;;  %v8850_v21 = vld [vmem:[%s12003_s17 + $0x3c4] ss:$8 sps:$4 sm:$0xff]  }
 0xc6a   : > { %6680 = vmatpush1.bf16.msra.mxu1 %v8782_v42  ;;  %v8848_v42 = vld [vmem:[%s12003_s17 + $0x3c0] ss:$8 sps:$4 sm:$0xff]  }
 0xc6b   : > { %6681 = vmatprep.subr.bf16.mxu1 %v8787_v15  ;;  %v8853_v15 = vld [vmem:[%s12003_s17 + $0x3d4] ss:$8 sps:$4 sm:$0xff]  }
 0xc6e   : > { %6682 = vmatpush1.bf16.msra.mxu1 %v8785_v23  ;;  %v8851_v23 = vld [vmem:[%s12003_s17 + $0x3d0] ss:$8 sps:$4 sm:$0xff]  }
 0xc6f   : > { %6683 = vmatprep.subr.bf16.mxu1 %v8790_v17  ;;  %v8856_v17 = vld [vmem:[%s12003_s17 + $0x3e4] ss:$8 sps:$4 sm:$0xff]  }
 0xc72   : > { %6684 = vmatpush1.bf16.msra.mxu1 %v8788_v7  ;;  %v8854_v7 = vld [vmem:[%s12003_s17 + $0x3e0] ss:$8 sps:$4 sm:$0xff]  }
 0xc73   : > { %6685 = vmatprep.subr.bf16.mxu1 %v8793_v29  ;;  %v8859_v29 = vld [vmem:[%s12003_s17 + $0x3f4] ss:$8 sps:$4 sm:$0xff]  }
 0xc76   : > { %6686 = vmatpush1.bf16.msra.mxu1 %v8791_v22  ;;  %v5847_v22 = vrot.slane %v11495_v36, 1  ;;  %v8866_v36 = vld [vmem:[%s12003_s17 + $0x420] ss:$8 sps:$4 sm:$0xff]  }
 0xc77   : > { %6687 = vmatprep.subr.bf16.mxu1 %v8796_v34  ;;  %v8865_v34 = vld [vmem:[%s12003_s17 + $0x414] ss:$8 sps:$4 sm:$0xff]  }
 0xc7a   : > { %6688 = vmatpush1.bf16.msra.mxu1 %v8794_v43  ;;  %v8871_v43 = vld [vmem:[%s12003_s17 + $0x434] ss:$8 sps:$4 sm:$0xff]  }
 0xc7b   : > { %6689 = vmatprep.subr.bf16.mxu1 %v8799_v32  ;;  %v8874_v32 = vld [vmem:[%s12003_s17 + $0x444] ss:$8 sps:$4 sm:$0xff]  }
 0xc7e   : > { %6690 = vmatpush1.bf16.msra.mxu1 %v8797_v51  ;;  %v8875_v51 = vld [vmem:[%s12003_s17 + $0x450] ss:$8 sps:$4 sm:$0xff]  }
 0xc7f   : > { %6691 = vmatprep.subr.bf16.mxu1 %v8802_v12  ;;  %v8880_v12 = vld [vmem:[%s12003_s17 + $0x464] ss:$8 sps:$4 sm:$0xff]  }
 0xc82   : > { %6692 = vmatpush1.bf16.msra.mxu1 %v8800_v49  ;;  %v8881_v49 = vld [vmem:[%s12003_s17 + $0x470] ss:$8 sps:$4 sm:$0xff]  }
 0xc83   : > { %6693 = vmatprep.subr.bf16.mxu1 %v8805_v28  ;;  %v5849_v28 = vrot.slane %v11600_v31, 1  ;;  %v5853_v31 = vld [vmem:[%s12004_s18] sm:$0x3] }
 0xc84   : > { %v6578_v2 = vrot.slane %v5853_v31, %v9874_v48 }
 0xc86   : > { %6694 = vmatpush1.bf16.msra.mxu1 %v8803_v9  ;;  %v8898_v9 = vld [vmem:[%s12005_s19 + $0x78] sm:$0xff]  }
 0xc87   : > { %6695 = vmatprep.subr.bf16.mxu1 %v8808_v59  ;;  %v8899_v59 = vld [vmem:[%s12005_s19 + $0x38] sm:$0xff]   ;;  %8220 = vmatprep.subr.bf16.mxu0 %v8898_v9 }
 0xc88   : > { %8221 = vmatpush3.bf16.msra.mxu0 %v8899_v59 }
 0xc89   : > { %8369 = vmatprep.subr.bf16.mxu0 %v12073_v6 }
 0xc8a   : > { %6696 = vmatpush1.bf16.msra.mxu1 %v8806_v24  ;;  %v6582_v24 = vrot.slane %v5853_v31, %v9902_v10  ;;  %v8901_v10 = vld [vmem:[%s12007_s21 + $0x8] sm:$0xff]  }
 0xc8b   : > { %6697 = vmatprep.subr.bf16.mxu1 %v8811_v46 }
 0xc8e   : > { %6698 = vmatpush1.bf16.msra.mxu1 %v8809_v63 }
 0xc8f   : > { %6708 = vmatprep.subr.bf16.mxu1 %v8814_v35 }
 0xc91   : > { %6700 = vmatmul.mubr.bf16.vlgmr.msra.gmra.mrb[152].mxu1 %v5836_v62 }
 0xc92   : > { %6709 = vmatpush1.bf16.msra.mxu1 %v8812_v37  ;;  %6740 = vmatprep.mubr.bf16.mxu1 %v5848_v3 }
 0xc93   : > { %6710 = vmatprep.subr.bf16.mxu1 %v8817_v27 }
 0xc96   : > { %6711 = vmatpush1.bf16.msra.mxu1 %v8815_v61 }
 0xc97   : > { %6712 = vmatprep.subr.bf16.mxu1 %v8820_v19 }
 0xc9a   : > { %6713 = vmatpush1.bf16.msra.mxu1 %v8818_v56 }
 0xc9b   : > { %6714 = vmatprep.subr.bf16.mxu1 %v8823_v55 }
 0xc9e   : > { %6715 = vmatpush1.bf16.msra.mxu1 %v8821_v1  ;;  %v8900_v1 = vld [vmem:[%s12007_s21] sm:$0xff]  }
 0xc9f   : > { %6716 = vmatprep.subr.bf16.mxu1 %v8826_v13  ;;  %v8902_v13 = vld [vmem:[%s12007_s21 + $0x10] sm:$0xff]  }
 0xca2   : > { %6717 = vmatpush1.bf16.msra.mxu1 %v8824_v53  ;;  %v8903_v53 = vld [vmem:[%s12007_s21 + $0x18] sm:$0xff]  }
 0xca3   : > { %6718 = vmatprep.subr.bf16.mxu1 %v8829_v20  ;;  %v8904_v20 = vld [vmem:[%s12007_s21 + $0x20] sm:$0xff]  }
 0xca6   : > { %6719 = vmatpush1.bf16.msra.mxu1 %v8827_v50  ;;  %v8905_v50 = vld [vmem:[%s12007_s21 + $0x28] sm:$0xff]  }
 0xca7   : > { %6720 = vmatprep.subr.bf16.mxu1 %v8832_v25  ;;  %v8906_v25 = vld [vmem:[%s12007_s21 + $0x30] sm:$0xff]  }
 0xcaa   : > { %6721 = vmatpush1.bf16.msra.mxu1 %v8830_v11  ;;  %v8907_v11 = vld [vmem:[%s12007_s21 + $0x38] sm:$0xff]  }
 0xcab   : > { %6722 = vmatprep.subr.bf16.mxu1 %v8835_v57 }
 0xcae   : > { %6723 = vmatpush1.bf16.msra.mxu1 %v8833_v18  ;;  %v6830_v18 = vld [vmem:[%s12006_s20] sm:$0x1] }
 0xcaf   : > { %6724 = vmatprep.subr.bf16.mxu1 %v8838_v8 }
 0xcb2   : > { %6725 = vmatpush1.bf16.msra.mxu1 %v8836_v44 }
 0xcb3   : > { %6726 = vmatprep.subr.bf16.mxu1 %v8841_v52 }
 0xcb6   : > { %6727 = vmatpush1.bf16.msra.mxu1 %v8839_v14 }
 0xcb7   : > { %6728 = vmatprep.subr.bf16.mxu1 %v8844_v30 }
 0xcba   : > { %6729 = vmatpush1.bf16.msra.mxu1 %v8842_v38 }
 0xcbb   : > { %6730 = vmatprep.subr.bf16.mxu1 %v8847_v40 }
 0xcbe   : > { %6731 = vmatpush1.bf16.msra.mxu1 %v8845_v39 }
 0xcbf   : > { %6732 = vmatprep.subr.bf16.mxu1 %v8850_v21 }
 0xcc2   : > { %6733 = vmatpush1.bf16.msra.mxu1 %v8848_v42 }
 0xcc3   : > { %6734 = vmatprep.subr.bf16.mxu1 %v8853_v15 }
 0xcc6   : > { %6735 = vmatpush1.bf16.msra.mxu1 %v8851_v23 }
 0xcc7   : > { %6736 = vmatprep.subr.bf16.mxu1 %v8856_v17 }
 0xcca   : > { %6737 = vmatpush1.bf16.msra.mxu1 %v8854_v7 }
 0xccb   : > { %6738 = vmatprep.subr.bf16.mxu1 %v8859_v29 }
 0xcce   : > { %6739 = vmatpush1.bf16.msra.mxu1 %v8857_v33 }
 0xccf   : > { %6749 = vmatprep.subr.bf16.mxu1 %v8862_v47 }
 0xcd1   : > { %6741 = vmatmul.mubr.bf16.vlgmr.msra.gmra.mrb[152].mxu1 %v5847_v22 }
 0xcd2   : > { %6750 = vmatpush1.bf16.msra.mxu1 %v8860_v58  ;;  %6781 = vmatprep.mubr.bf16.mxu1 %v12095_v45  ;;  %v8869_v45 = vld [vmem:[%s12003_s17 + $0x430] ss:$8 sps:$4 sm:$0xff]  }
 0xcd3   : > { %6751 = vmatprep.subr.bf16.mxu1 %v8865_v34 }
 0xcd6   : > { %6752 = vmatpush1.bf16.msra.mxu1 %v8863_v54 }
 0xcd7   : > { %6753 = vmatprep.subr.bf16.mxu1 %v8868_v60 }
 0xcda   : > { %6754 = vmatpush1.bf16.msra.mxu1 %v8866_v36 }
 0xcdb   : > { %6755 = vmatprep.subr.bf16.mxu1 %v8871_v43 }
 0xcde   : > { %6756 = vmatpush1.bf16.msra.mxu1 %v8869_v45 }
 0xcdf   : > { %6757 = vmatprep.subr.bf16.mxu1 %v8874_v32 }
 0xce2   : > { %6758 = vmatpush1.bf16.msra.mxu1 %v8872_v16 }
 0xce3   : > { %6759 = vmatprep.subr.bf16.mxu1 %v8877_v26 }
 0xce6   : > { %6760 = vmatpush1.bf16.msra.mxu1 %v8875_v51 }
 0xce7   : > { %6761 = vmatprep.subr.bf16.mxu1 %v8880_v12 }
 0xcea   : > { %6762 = vmatpush1.bf16.msra.mxu1 %v8878_v0 }
 0xceb   : > { %6763 = vmatprep.subr.bf16.mxu1 %v8883_v4 }
 0xcee   : > { %6764 = vmatpush1.bf16.msra.mxu1 %v8881_v49 }
 0xcf1   : > { %6782 = vmatmul.mubr.bf16.vlgmr.msra.gmra.mrb[152].mxu1 %v5849_v28 }
 0xdc4   : > { %v6783_v46 = vpop.f32.mrb[152].mxu1 }
 0xdc5   : > { %v8389_v63 = vadd.f32 %v6783_v46, %v6578_v2  ;;  %v6785_v35 = vpop.f32.mrb[153].mxu1 }
 0xdc6   : > { %v8390_v37 = vadd.f32 %v6785_v35, %v6582_v24  ;;  %v6787_v62 = vpop.f32.mrb[154].mxu1 }
 0xdc7   : > { %vm6790_vm4 = vcmp.ge.f32.partialorder %v8389_v63, 0.0  ;;  %v6792_v27 = vmul.f32 0.01, %v8389_v63  ;;  %v6788_v3 = vpop.f32.mrb[155].mxu1 }
 0xdc8   : > { %vm6791_vm3 = vcmp.ge.f32.partialorder %v8390_v37, 0.0  ;;  %v6793_v61 = vmul.f32 0.01, %v8390_v37 }
 0xdc9   : > { %v6794_v19 = vsel %vm6790_vm4, %v8389_v63, %v6792_v27 }
 0xdca   : > { %v6795_v56 = vsel %vm6791_vm3, %v8390_v37, %v6793_v61  ;;  %v6796_v48 = vpack.c.bf16 %v6794_v19, %v6794_v19 }
 0xdcb   : > { %v6797_v55 = vpack.c.bf16 %v6795_v56, %v6795_v56 }
 0xdcd   : > { %6959 = vmatprep.mubr.bf16.mxu0 %v6797_v55 }
 0xdce   : > { %6960 = vmatmul.mubr.bf16.vlgmr.msra.gmra.mrb[4].mxu0 %v6796_v48 }
 0xdcf   : > { %8370 = vmatpush3.bf16.msra.mxu0 %v8900_v1  ;;  %8385 = vmatprep.mubr.msk.bf16.mxu0 %vm8977_vm2, %v12073_v6  ;;  %vm7074_vm2 = vcmask 32768  }
 0xdd0   : > { %8371 = vmatprep.subr.bf16.mxu0 %v12073_v6 }
 0xdd3   : > { %8372 = vmatpush3.bf16.msra.mxu0 %v8901_v10 }
 0xdd4   : > { %8373 = vmatprep.subr.bf16.mxu0 %v12073_v6 }
 0xdd7   : > { %8374 = vmatpush3.bf16.msra.mxu0 %v8902_v13 }
 0xdd8   : > { %8375 = vmatprep.subr.bf16.mxu0 %v12073_v6 }
 0xddb   : > { %8376 = vmatpush3.bf16.msra.mxu0 %v8903_v53 }
 0xddc   : > { %8377 = vmatprep.subr.bf16.mxu0 %v12073_v6 }
 0xddf   : > { %8378 = vmatpush3.bf16.msra.mxu0 %v8904_v20 }
 0xde0   : > { %8379 = vmatprep.subr.bf16.mxu0 %v12073_v6 }
 0xde3   : > { %8380 = vmatpush3.bf16.msra.mxu0 %v8905_v50 }
 0xde4   : > { %8381 = vmatprep.subr.bf16.mxu0 %v12073_v6 }
 0xde7   : > { %8382 = vmatpush3.bf16.msra.mxu0 %v8906_v25 }
 0xde8   : > { %8383 = vmatprep.subr.bf16.mxu0 %v12073_v6  ;;  %v6985_v6 = vld [vmem:[%s12008_s22] sm:$0x1] }
 0xdeb   : > { %8384 = vmatpush3.bf16.msra.mxu0 %v8907_v11 }
 0xea1   : > { %v8222_v57 = vpop.f32.mrb[4].mxu0 }
 0xea2   : > { %v8223_v8 = vpop.f32.mrb[5].mxu0 }
 0xea3   : > { %v8224_v44 = vadd.f32 %v8223_v8, %v8222_v57  ;;  %v8225_v52 = vpop.f32.mrb[6].mxu0 }
 0xea4   : > { %v8226_v14 = vpop.f32.mrb[7].mxu0 }
 0xea5   : > { %v6962_v30 = vadd.f32 %v8224_v44, %v6830_v18 }
 0xea7   : > { %v6967_v38 = vmax.f32 %v6962_v30, 0.0 }
 0xea9   : > { %v6968_v40 = vpack.c.bf16 %v6967_v38, %v6967_v38 }
 0xeab   : > { %8386 = vmatmul.mubr.bf16.vlgmr.msra.gmra.mrb[8].mxu0 %v6968_v40 }
 0xf7e   : > { %v7068_v39 = vpop.f32.mrb[8].mxu0 }
 0xf7f   : > { %v7069_v21 = vadd.f32 %v7068_v39, %v6985_v6  ;;  %v8387_v42 = vpop.f32.mrb[9].mxu0 }
 0xf80   : > { %v7071_v15 = vpop.f32.mrb[10].mxu0 }
 0xf81   : > { %v8388_v23 = vpop.f32.mrb[11].mxu0  ;;  %7075 = vst.msk [vmem:[%s726_s8] sm:$0x1] %vm7074_vm2, %v7069_v21 }
 0xf82   : > { %8921 = shalt.err (!%p8918_p3)
}
 0xf83   : > { %s8922_s1 = scalar_lea.hbm %s11944_s3, 16  ;;  %s8926_s29 = scalar_lea.hbm %s12009_s23, 32 }
 0xf84   : > { %p8923_p4 = scmp.ne.s32.totalorder %s11944_s3, %s8922_s1  ;;  %p8927_p9 = scmp.lt.u32.totalorder %s11944_s3, %s12009_s23 }
 0xf85   : > { %p8928_p10 = scmp.lt.u32.totalorder %s8926_s29, %s8922_s1  ;;  %p8930_p12 = scmp.lt.u32.totalorder %s8922_s1, %s11944_s3 }
 0xf86   : > { %p8924_p7 = pnand %p8923_p4, %p9141_p5 }
 0xf87   : > { %p8929_p11 = por %p8928_p10, %p8927_p9 }
 0xf88   : > { %p8925_p8 = pneg %p8924_p7 }
 0xf89   : > { %p8931_p13 = por %p8930_p12, %p8929_p11 }
 0xf8b   : > { %p8932_p0 = pnand %p8931_p13, %p8925_p8 }
 0xf8d   : > { %8935 = shalt.err (!%p8932_p0)
}
 0xf8e   : > { %8408 = dma.vmem_to_hbm [thread:$0]  (%p9141_p5), %s11946_s26, 16, %s11944_s3, %s7077_s5  }
 0xf8f PF: > { %p8414_p1 = scmp.ge.s32.totalorder %s8970_s25, 2  ;;  %s7101_s27 = sand.u32 1, %s8958_s4  }
 0xf90   : > { %s7102_s6 = scalar_lea.sflag [#allocation3], %s7101_s27 }
 0xf91   : > { %p8411_p2 = pnand %p8414_p1, %p9145_p6 }
 0xf93   : > { %8953 = dma.done.wait (!%p8411_p2), %s7102_s6, 16  }
 0xf94   : > { %8955 = vsyncadd (!%p8411_p2), %s7102_s6, 4294967280  ;;  %s12102_s25 = sld [smem:[#allocation6_spill]]  ;;  %s12103_s1 = sld [smem:[#allocation5_spill]] }
 0xf95   : > { %s12104_s24 = sld [smem:[#allocation7_spill]]  ;;  %s12105_s4 = smov %s8962_s30 }
 0xf9a   : > { %p33_p3 = scmp.ge.s32.totalorder %s12102_s25, 4   ;;  %s12106_s30 = smov %s12103_s1 }
 0xf9c   :  { %35 = sbr.rel (!%p33_p3) target bundleno = 11 (0xb), region = 153 }
 0xfa3   :  { %7106 = vsyncpa [#allocation3], 1 }
 0xfa4   :  { %7108 = vsyncpa [#allocation3 + $0x1], 1 }

</bundles_post_ra>
